<compile_context>
chip_gen: v7x
topology: tpu7x:2x2x1
jax: 0.10.0
libtpu: 0.0.40
codegen_flags: <defaults>
</compile_context>

<pallas_src>
import jax
import jax.numpy as jnp
from jax.experimental import pallas as pl
from jax.experimental.pallas import tpu as pltpu


def linear_bias_kernel(x_ref, w_ref, b_ref, o_ref):
    # grid = (K // tk,): axis 0 is the reduction axis.  o_ref (f32) is resident
    # across it, so accumulate in place; bias seeds the accumulator at k == 0.
    k = pl.program_id(0)

    @pl.when(k == 0)
    def _():
        o_ref[...] = jnp.broadcast_to(b_ref[...], o_ref.shape)

    o_ref[...] += jnp.dot(
        x_ref[...], w_ref[...], preferred_element_type=jnp.float32
    )


def linear_dropout(x, w, b, *, tk=1024):
    """x: (B, H, W, K) float32, w: (K, N), b: (N,) -> (B, H, W, N)."""
    B, H, W, K = x.shape
    N = w.shape[1]
    M = B * H * W  # 196 — full (non-tiled) row block; equals the array dim.

    assert K % tk == 0, "tk must divide in_features"

    x2d = x.reshape(M, K)
    b2d = b.reshape(1, N)

    itemsize = jnp.dtype(x.dtype).itemsize
    cost = pl.CostEstimate(
        flops=2 * M * K * N,
        transcendentals=0,
        bytes_accessed=(M * K + K * N + N + M * N) * itemsize,
    )

    out2d = pl.pallas_call(
        linear_bias_kernel,
        out_shape=jax.ShapeDtypeStruct((M, N), x.dtype),
        grid_spec=pltpu.PrefetchScalarGridSpec(
            num_scalar_prefetch=0,
            grid=(K // tk,),
            in_specs=[
                pl.BlockSpec((M, tk), lambda k: (0, k)),   # activations
                pl.BlockSpec((tk, N), lambda k: (k, 0)),   # weight (full N)
                pl.BlockSpec((1, N), lambda k: (0, 0)),    # bias
            ],
            out_specs=pl.BlockSpec((M, N), lambda k: (0, 0)),
        ),
        compiler_params=pltpu.CompilerParams(
            dimension_semantics=("arbitrary",),
            vmem_limit_bytes=32 * 1024 * 1024,
        ),
        cost_estimate=cost,
    )(x2d, w, b2d)

    return out2d.reshape(B, H, W, N)


if __name__ == "__main__":
    key = jax.random.PRNGKey(0)
    kx, kw, kb = jax.random.split(key, 3)

    B, Hs, Ws, Cin, Cout = 1, 14, 14, 2048, 512

    x = jax.random.normal(kx, (B, Hs, Ws, Cin), dtype=jnp.float32)
    # Deterministic parameter init (PyTorch-style uniform bound 1/sqrt(fan_in)).
    bound = 1.0 / jnp.sqrt(jnp.float32(Cin))
    w = jax.random.uniform(kw, (Cin, Cout), jnp.float32, -bound, bound)
    b = jax.random.uniform(kb, (Cout,), jnp.float32, -bound, bound)

    out = jax.block_until_ready(linear_dropout(x, w, b))

    # Correctness check against plain JAX reference (Dropout p=0.0 = identity).
    ref = x.reshape(-1, Cin) @ w + b
    assert out.shape == (B, Hs, Ws, Cout)
    assert jnp.allclose(out.reshape(-1, Cout), ref, atol=1e-3, rtol=1e-3)

    print("KERNEL_OK")
</pallas_src>

<mosaic_0001>
module attributes {stable_mosaic.version = 11 : i64} {
  func.func @linear_bias_kernel(%arg0: i32, %arg1: memref<196x1024xf32, #tpu.memory_space<vmem>>, %arg2: memref<1024x512xf32, #tpu.memory_space<vmem>>, %arg3: memref<1x512xf32, #tpu.memory_space<vmem>>, %arg4: memref<196x512xf32, #tpu.memory_space<vmem>>) attributes {dimension_semantics = [#tpu.dimension_semantics<arbitrary>], iteration_bounds = array<i64: 2>, scalar_prefetch = 0 : i64, scratch_operands = 0 : i64, tpu.core_type = #tpu.core_type<tc>, window_params = [{transform_indices = @transform_0, window_bounds = array<i64: 196, 1024>}, {transform_indices = @transform_1, window_bounds = array<i64: 1024, 512>}, {pipeline_mode = #tpu.pipeline_mode<synchronous>, transform_indices = @transform_2, window_bounds = array<i64: 1, 512>}, {pipeline_mode = #tpu.pipeline_mode<synchronous>, transform_indices = @transform_3, window_bounds = array<i64: 196, 512>}]} {
    %c0_i32 = arith.constant 0 : i32
    %0 = arith.cmpi eq, %arg0, %c0_i32 : i32
    %1 = arith.extui %0 : i1 to i32
    %c0_i32_0 = arith.constant 0 : i32
    %2 = arith.cmpi ne, %1, %c0_i32_0 : i32
    scf.if %2 {
      %c0_8 = arith.constant 0 : index
      %c0_9 = arith.constant 0 : index
      %9 = vector.load %arg3[%c0_8, %c0_9] : memref<1x512xf32, #tpu.memory_space<vmem>>, vector<1x512xf32>
      %10 = vector.shape_cast %9 : vector<1x512xf32> to vector<1x512xf32>
      %11 = vector.broadcast %10 : vector<1x512xf32> to vector<196x512xf32>
      %c0_10 = arith.constant 0 : index
      %c0_11 = arith.constant 0 : index
      %12 = vector.load %arg4[%c0_10, %c0_11] : memref<196x512xf32, #tpu.memory_space<vmem>>, vector<196x512xf32>
      tpu.vector_store %arg4[%c0_10, %c0_11], %11 {strides = array<i32>} : memref<196x512xf32, #tpu.memory_space<vmem>>, vector<196x512xf32>,
    } else {
    }
    %c0 = arith.constant 0 : index
    %c0_1 = arith.constant 0 : index
    %3 = vector.load %arg4[%c0, %c0_1] : memref<196x512xf32, #tpu.memory_space<vmem>>, vector<196x512xf32>
    %c0_2 = arith.constant 0 : index
    %c0_3 = arith.constant 0 : index
    %4 = vector.load %arg1[%c0_2, %c0_3] : memref<196x1024xf32, #tpu.memory_space<vmem>>, vector<196x1024xf32>
    %c0_4 = arith.constant 0 : index
    %c0_5 = arith.constant 0 : index
    %5 = vector.load %arg2[%c0_4, %c0_5] : memref<1024x512xf32, #tpu.memory_space<vmem>>, vector<1024x512xf32>
    %cst = arith.constant dense<0.000000e+00> : vector<196x512xf32>
    %6 = tpu.matmul %4, %5, %cst {dimension_numbers = #tpu.dot_dimension_numbers<[1], [0], [0], [1], [0, 0, 1, 1], [], []>} : vector<196x1024xf32>, vector<1024x512xf32>, vector<196x512xf32> -> vector<196x512xf32>
    %7 = arith.addf %3, %6 : vector<196x512xf32>
    %c0_6 = arith.constant 0 : index
    %c0_7 = arith.constant 0 : index
    %8 = vector.load %arg4[%c0_6, %c0_7] : memref<196x512xf32, #tpu.memory_space<vmem>>, vector<196x512xf32>
    tpu.vector_store %arg4[%c0_6, %c0_7], %7 {strides = array<i32>} : memref<196x512xf32, #tpu.memory_space<vmem>>, vector<196x512xf32>,
    return
  }
  func.func @transform_0(%arg0: i32) -> (i32, i32) {
    %c0_i32 = arith.constant 0 : i32
    %c0_i32_0 = arith.constant 0 : i32
    return %c0_i32, %arg0 : i32, i32
  }
  func.func @transform_1(%arg0: i32) -> (i32, i32) {
    %c0_i32 = arith.constant 0 : i32
    %c0_i32_0 = arith.constant 0 : i32
    return %arg0, %c0_i32 : i32, i32
  }
  func.func @transform_2(%arg0: i32) -> (i32, i32) {
    %c0_i32 = arith.constant 0 : i32
    %c0_i32_0 = arith.constant 0 : i32
    %c0_i32_1 = arith.constant 0 : i32
    return %c0_i32, %c0_i32_0 : i32, i32
  }
  func.func @transform_3(%arg0: i32) -> (i32, i32) {
    %c0_i32 = arith.constant 0 : i32
    %c0_i32_0 = arith.constant 0 : i32
    %c0_i32_1 = arith.constant 0 : i32
    return %c0_i32, %c0_i32_0 : i32, i32
  }
}

</mosaic_0001>

<bundles_post_ra>
// kernel: tpu_custom_call.1
= control target key start
LH: loop header
LB: loop body
LE: loop exit
PB: predicated region body
PF: predicated region fallthrough
CT: control target
= control target key end

     0   :  { %8 = vsyncpa [#allocation3], 0  ;;  %s5261_s0 = inlined_call_operand.hbm [shape: f32[196,2048], index: 0, kind: input, shape index: {}]   ;;  %s5262_s1 = inlined_call_operand.hbm [shape: f32[2048,512], index: 1, kind: input, shape index: {}]   ;;  %s5263_s2 = inlined_call_operand.hbm [shape: f32[1,512], index: 2, kind: input, shape index: {}]   ;;  %s5264_s3 = inlined_call_operand.hbm [shape: f32[196,512], index: 3, kind: output, shape index: {}]  }
   0x1   :  { %10 = vsyncpa [#allocation3 + $0x1], 0 }
   0x2   :  { %11 = vsyncpa [#allocation6], 0 }
   0x3   :  { %13 = vsyncpa [#allocation6 + $0x1], 0 }
   0x4   :  { %14 = vsyncpa [#allocation4], 0  ;;  %s4278_s12 = smov 0   ;;  %s4280_s13 = smov 0  }
   0x5   :  { %s4282_s14 = smov 0   ;;  %s4284_s15 = smov 0  }
   0x6 LB: > { %s4297_s16 = sadd.s32 4294967295, %s4245_s15   ;;  %s4300_s17 = sadd.s32 1, %s4245_s15   ;;  %s4245_s15 = sphi %s4284_s15, %s5283_s15   ;;  %s4241_s14 = sphi %s4282_s14, %s5282_s14   ;;  %s4237_s13 = sphi %s4280_s13, %s5281_s13   ;;  %s4233_s12 = sphi %s4278_s12, %s5280_s12  }
   0x7   : > { %s24_s18 = ssub.s32 %s4245_s15, %s4300_s17  ;;  %s27_s19 = sadd.s32 1, %s4241_s14 }
   0x8   : > { %p25_p0 = scmp.eq.s32.totalorder %s24_s18, 0  ;;  %p34_p1 = scmp.ne.s32.totalorder %s4241_s14, %s4237_s13 }
   0x9   : > { %p35_p2 = scmp.eq.s32.totalorder %s4245_s15, 0  ;;  %p40_p3 = scmp.ne.s32.totalorder %s4237_s13, %s4233_s12 }
   0xa   : > { %s4310_s20 = scalar_select %p25_p0, %s4241_s14, %s27_s19  }
   0xb   : > { %p4312_p4 = por %p35_p2, %p34_p1  ;;  %p5265_p5 = scmp.eq.s32.totalorder %s4297_s16, 0 }
   0xc   : > { %p3182_p6 = scmp.ge.s32.totalorder %s4245_s15, 1  ;;  %p119_p7 = scmp.lt.s32.totalorder %s4245_s15, 3 }
   0xd   : > { %p4321_p8 = por %p5265_p5, %p40_p3  ;;  %s4247_s24 = smov [#allocation7]  }
   0xe   : > { %p4326_p10 = pnand %p3182_p6, %p119_p7  ;;  %s132_s25 = sshll.u32 %s4247_s24, 4  ;;  %s133_s25 = int_to_ptr.vmem [resolvable:$true] %s132_s25 }
   0xf   : > { %s5270_s22 = scalar_select %p4321_p8, 1, 0 }
  0x10   : > { %s5271_s23 = scalar_select %p4326_p10, 1, 0 }
  0x11   : > { %p4028_p11 = pneg %p4326_p10  ;;  %p4040_p12 = scmp.lt.s32.totalorder %s4245_s15, 2 }
  0x12   : > { %s4334_s26 = sand.u32 1, %s4241_s14   ;;  %s3199_s30 = sshll.u32 %s4245_s15, 10 }
  0x13   : > { %p4338_p13 = pnand %p4028_p11, %p5265_p5  ;;  %p4344_p0 = pnand %p4040_p12, %p4312_p4 }
  0x14   : > { %s4014_s29 = smul.u32 1600, %s4334_s26  ;;  %s4085_s6 = scalar_lea.hbm %s5263_s2, 64 }
  0x15   : > { %s5273_s28 = scalar_select %p4344_p0, 1, 0 }
  0x16   : > { %p4086_p1 = scmp.ne.s32.totalorder %s5263_s2, %s4085_s6  ;;  %p4087_p2 = pneg %p4338_p13 }
  0x17   : > { %p4092_p4 = scmp.lt.u32.totalorder %s4085_s6, %s5263_s2 }
  0x18   : > { %p4088_p3 = pnand %p4087_p2, %p4086_p1 }
  0x1a   : > { %p4089_p6 = pneg %p4088_p3 }
  0x1c   : > { %p4094_p7 = pnand %p4092_p4, %p4089_p6 }
  0x1e   : > { %4097 = shalt.err (!%p4094_p7)
}
  0x1f   : > { %s4098_s11 = scalar_lea.vmem %s133_s25, 64  ;;  %p4106_p5 = scmp.lt.s32.totalorder %s133_s25, %s133_s25 }
  0x20   : > { %p4099_p11 = scmp.ne.s32.totalorder %s133_s25, %s4098_s11  ;;  %p4107_p8 = scmp.lt.s32.totalorder %s4098_s11, %s4098_s11 }
  0x22   : > { %p4101_p12 = pnand %p4099_p11, %p4087_p2  ;;  %p4108_p10 = por %p4107_p8, %p4106_p5 }
  0x24   : > { %p4102_p9 = pneg %p4101_p12 }
  0x26   : > { %p4109_p0 = pnand %p4108_p10, %p4102_p9 }
  0x28   : > { %4112 = shalt.err (!%p4109_p0)
}
  0x29   : > { %4031 = dma.hbm_to_vmem [thread:$0]  (!%p4338_p13), %s5263_s2, 64, %s133_s25, [#allocation6]  }
  0x2a   : > { %s4369_s24 = scalar_lea.hbm %s5261_s0, %s3199_s30  ;;  %s147_s4 = scalar_lea.vmem [#allocation2], %s4014_s29 }
  0x2b   : > { %s154_s5 = sshll.u32 %s147_s4, 4  ;;  %s144_s27 = scalar_lea.sflag [#allocation3], %s4334_s26  ;;  %s4371_s5 = int_to_ptr.vmem [resolvable:$true] %s154_s5 }
  0x2c   : > { %s4113_s6 = scalar_lea.hbm %s4369_s24, 25600  ;;  %p5274_p8 = scmp.ne.s32.totalorder %s5273_s28, 0 }
  0x2d   : > { %p4114_p5 = scmp.ne.s32.totalorder %s4369_s24, %s4113_s6  ;;  %s4118_s7 = scalar_lea.hbm %s5261_s0, 51200 }
  0x2e   : > { %p4115_p9 = pneg %p5274_p8  ;;  %p4119_p0 = scmp.lt.u32.totalorder %s4369_s24, %s5261_s0 }
  0x2f   : > { %p4120_p1 = scmp.lt.u32.totalorder %s4118_s7, %s4113_s6  ;;  %p4122_p3 = scmp.lt.u32.totalorder %s4113_s6, %s4369_s24 }
  0x30   : > { %p4116_p10 = pnand %p4115_p9, %p4114_p5 }
  0x31   : > { %p4121_p2 = por %p4120_p1, %p4119_p0 }
  0x32   : > { %p4117_p13 = pneg %p4116_p10 }
  0x33   : > { %p4123_p6 = por %p4122_p3, %p4121_p2 }
  0x35   : > { %p4124_p4 = pnand %p4123_p6, %p4117_p13 }
  0x37   : > { %4127 = shalt.err (!%p4124_p4)
}
  0x38   : > { %s4128_s29 = scalar_lea.vmem %s4371_s5, 25600  ;;  %s4248_s10 = smov [#allocation2]  }
  0x39   : > { %p4129_p7 = scmp.ne.s32.totalorder %s4371_s5, %s4128_s29  ;;  %s4133_s11 = sshll.u32 %s4248_s10, 4  ;;  %s4134_s11 = int_to_ptr.vmem [resolvable:$false] %s4133_s11 }
  0x3a   : > { %s4135_s12 = scalar_lea.vmem %s4134_s11, 51200  ;;  %p4136_p5 = scmp.lt.s32.totalorder %s4371_s5, %s4134_s11 }
  0x3b   : > { %p4131_p11 = pnand %p4129_p7, %p4115_p9  ;;  %p4137_p10 = scmp.lt.s32.totalorder %s4135_s12, %s4128_s29 }
  0x3d   : > { %p4132_p12 = pneg %p4131_p11  ;;  %p4138_p0 = por %p4137_p10, %p4136_p5 }
  0x3f   : > { %p4139_p1 = pnand %p4138_p0, %p4132_p12 }
  0x41   : > { %4142 = shalt.err (!%p4139_p1)
}
  0x42   : > { %s4249_s18 = smov 2048   ;;  %s4250_s19 = smov 1024  }
  0x43   : > { %s4251_s21 = smov 64   ;;  %s164_s4 = sand.u32 1, %s4245_s15  }
  0x44   : > { %4035 = dma.hbm_to_vmem [thread:$0]  (!%p5274_p8), %s4369_s24, 25600, %s4371_s5, %s144_s27, %s4249_s18, %s4250_s19, %s4251_s21  }
  0x45   : > { %s3187_s6 = sshll.u32 %s4334_s26, 12  ;;  %s3201_s25 = sshll.u32 %s4245_s15, 16 }
  0x46   : > { %s168_s30 = scalar_lea.vmem [#allocation5], %s3187_s6  ;;  %s4407_s29 = scalar_lea.hbm %s5262_s1, %s3201_s25 }
  0x47   : > { %s176_s7 = sshll.u32 %s168_s30, 4  ;;  %s4411_s10 = scalar_lea.sflag [#allocation6], %s164_s4  ;;  %s4409_s7 = int_to_ptr.vmem [resolvable:$true] %s176_s7 }
  0x48   : > { %s4143_s11 = scalar_lea.hbm %s4407_s29, 65536  ;;  %s4148_s24 = scalar_lea.hbm %s5262_s1, 131072 }
  0x49   : > { %p4144_p13 = scmp.ne.s32.totalorder %s4407_s29, %s4143_s11  ;;  %p4149_p6 = scmp.lt.u32.totalorder %s4407_s29, %s5262_s1 }
  0x4a   : > { %p4150_p4 = scmp.lt.u32.totalorder %s4148_s24, %s4143_s11  ;;  %p4152_p11 = scmp.lt.u32.totalorder %s4143_s11, %s4407_s29 }
  0x4b   : > { %p4146_p2 = pnand %p4144_p13, %p4115_p9 }
  0x4c   : > { %p4151_p7 = por %p4150_p4, %p4149_p6 }
  0x4d   : > { %p4147_p3 = pneg %p4146_p2 }
  0x4e   : > { %p4153_p12 = por %p4152_p11, %p4151_p7 }
  0x50   : > { %p4154_p5 = pnand %p4153_p12, %p4147_p3 }
  0x52   : > { %4157 = shalt.err (!%p4154_p5)
}
  0x53   : > { %s4158_s12 = scalar_lea.vmem %s4409_s7, 65536  ;;  %s4252_s18 = smov [#allocation5]  }
  0x54   : > { %p4159_p10 = scmp.ne.s32.totalorder %s4409_s7, %s4158_s12  ;;  %s4163_s19 = sshll.u32 %s4252_s18, 4  ;;  %s4164_s19 = int_to_ptr.vmem [resolvable:$false] %s4163_s19 }
  0x55   : > { %s4165_s21 = scalar_lea.vmem %s4164_s19, 131072  ;;  %p4166_p13 = scmp.lt.s32.totalorder %s4409_s7, %s4164_s19 }
  0x56   : > { %p4161_p0 = pnand %p4159_p10, %p4115_p9  ;;  %p4167_p2 = scmp.lt.s32.totalorder %s4165_s21, %s4158_s12 }
  0x58   : > { %p4162_p1 = pneg %p4161_p0  ;;  %p4168_p6 = por %p4167_p2, %p4166_p13 }
  0x5a   : > { %p4169_p4 = pnand %p4168_p6, %p4162_p1 }
  0x5c   : > { %4172 = shalt.err (!%p4169_p4)
}
  0x5d   : > { %s4253_s4 = smov 512   ;;  %s4254_s6 = smov 32  }
  0x5e   : > { %4038 = dma.hbm_to_vmem [thread:$0]  (!%p5274_p8), %s4407_s29, 65536, %s4409_s7, %s4411_s10, %s4253_s4, %s4253_s4, %s4254_s6  }
  0x5f   : > { %p5275_p9 = scmp.ne.s32.totalorder %s5271_s23, 0 }
  0x60   : > { %s190_s25 = sand.u32 (!%p5275_p9), 1, %s4237_s13   ;;  %p5276_p3 = scmp.ne.s32.totalorder (!%p5275_p9), %s5270_s22, 0 }
  0x61   : > { %188 = sbr.rel (%p5275_p9) target bundleno = 866 (0x362), region = 32  ;;  %s191_s8 = scalar_lea.sflag (!%p5275_p9), [#allocation3], %s190_s25 }
  0x62   : > { %s4015_s30 = smul.u32 (!%p5275_p9), 1600, %s190_s25 }
  0x64   : > { %s4440_s9 = scalar_lea.vmem (!%p5275_p9), [#allocation2], %s4015_s30 }
  0x68   : > { %4216 = dma.done.wait (%p5276_p3), %s191_s8, 25600  }
  0x69   : > { %4218 = vsyncadd (%p5276_p3), %s191_s8, 4294941696  ;;  %s199_s11 = sand.u32 1, %s4297_s16   ;;  %s3192_s28 = sshll.u32 %s190_s25, 12 }
  0x6a   : > { %s200_s7 = scalar_lea.sflag [#allocation6], %s199_s11  ;;  %s4447_s29 = scalar_lea.vmem [#allocation5], %s3192_s28 }
  0x6b   : > { %4220 = dma.done.wait (%p5276_p3), %s200_s7, 65536  }
  0x6c   : > { %4222 = vsyncadd (%p5276_p3), %s200_s7, 4294901760  ;;  %p5277_p8 = scmp.eq.s32.totalorder %s4297_s16, 0 }
  0x6e   : > { %4224 = dma.done.wait (%p5277_p8), [#allocation6], 64   ;;  %p5278_p7 = pmov %p5277_p8 }
  0x6f   : > { %p5279_p11 = scmp.ne.s32.totalorder %s4297_s16, 0 }
  0x70   : > { %4226 = vsyncadd (%p5278_p7), [#allocation6], 4294967232  ;;  %v238_v0 = vlaneseq (!%p5279_p11)  ;;  %v236_v2 = vld [vmem:[#allocation7] sm:$0xf] (!%p5279_p11) }
  0x71   : > { %235 = sbr.rel (%p5279_p11) target bundleno = 170 (0xaa), region = 48 }
  0x72   : > { %v239_v1 = vshrl.u32 (!%p5279_p11), %v238_v0, 7 }
  0x74   : > { %v240_v3 = vsub.s32 (!%p5279_p11), 0, %v239_v1  ;;  %v244_v4 = vsub.s32 (!%p5279_p11), 1, %v239_v1  ;;  %v248_v5 = vsub.s32 (!%p5279_p11), 2, %v239_v1  ;;  %v252_v6 = vsub.s32 (!%p5279_p11), 3, %v239_v1 }
  0x76   : > { %v241_v7 = vrot.slane (!%p5279_p11), %v236_v2, %v240_v3  ;;  %v245_v8 = vrot.slane (!%p5279_p11), %v236_v2, %v244_v4  ;;  %v4459_v9 = vrot.slane (!%p5279_p11), %v236_v2, %v248_v5  ;;  %v4461_v10 = vrot.slane (!%p5279_p11), %v236_v2, %v252_v6 }
  0x78   : > { %258 = vst [vmem:[#allocation8] sm:$0xff] %v241_v7  ;;  %262 = vst [vmem:[#allocation8 + $0x20] sm:$0xff] %v241_v7 }
  0x79   : > { %266 = vst [vmem:[#allocation8 + $0x40] sm:$0xff] %v241_v7  ;;  %270 = vst [vmem:[#allocation8 + $0x60] sm:$0xff] %v241_v7 }
  0x7a   : > { %274 = vst [vmem:[#allocation8 + $0x80] sm:$0xff] %v241_v7  ;;  %278 = vst [vmem:[#allocation8 + $0xa0] sm:$0xff] %v241_v7 }
  0x7b   : > { %282 = vst [vmem:[#allocation8 + $0xc0] sm:$0xff] %v241_v7  ;;  %286 = vst [vmem:[#allocation8 + $0xe0] sm:$0xff] %v241_v7 }
  0x7c   : > { %290 = vst [vmem:[#allocation8 + $0x100] sm:$0xff] %v241_v7  ;;  %294 = vst [vmem:[#allocation8 + $0x120] sm:$0xff] %v241_v7 }
  0x7d   : > { %298 = vst [vmem:[#allocation8 + $0x140] sm:$0xff] %v241_v7  ;;  %302 = vst [vmem:[#allocation8 + $0x160] sm:$0xff] %v241_v7 }
  0x7e   : > { %306 = vst [vmem:[#allocation8 + $0x180] sm:$0xff] %v241_v7  ;;  %310 = vst [vmem:[#allocation8 + $0x1a0] sm:$0xff] %v241_v7 }
  0x7f   : > { %314 = vst [vmem:[#allocation8 + $0x1c0] sm:$0xff] %v241_v7  ;;  %318 = vst [vmem:[#allocation8 + $0x1e0] sm:$0xff] %v241_v7 }
  0x80   : > { %322 = vst [vmem:[#allocation8 + $0x200] sm:$0xff] %v241_v7  ;;  %326 = vst [vmem:[#allocation8 + $0x220] sm:$0xff] %v241_v7 }
  0x81   : > { %330 = vst [vmem:[#allocation8 + $0x240] sm:$0xff] %v241_v7  ;;  %334 = vst [vmem:[#allocation8 + $0x260] sm:$0xff] %v241_v7 }
  0x82   : > { %338 = vst [vmem:[#allocation8 + $0x280] sm:$0xff] %v241_v7  ;;  %342 = vst [vmem:[#allocation8 + $0x2a0] sm:$0xff] %v241_v7 }
  0x83   : > { %346 = vst [vmem:[#allocation8 + $0x2c0] sm:$0xff] %v241_v7  ;;  %350 = vst [vmem:[#allocation8 + $0x2e0] sm:$0xff] %v241_v7 }
  0x84   : > { %354 = vst [vmem:[#allocation8 + $0x300] sm:$0xf] %v241_v7  ;;  %259 = vst [vmem:[#allocation8 + $0x8] sm:$0xff] %v245_v8 }
  0x85   : > { %263 = vst [vmem:[#allocation8 + $0x28] sm:$0xff] %v245_v8  ;;  %267 = vst [vmem:[#allocation8 + $0x48] sm:$0xff] %v245_v8 }
  0x86   : > { %271 = vst [vmem:[#allocation8 + $0x68] sm:$0xff] %v245_v8  ;;  %275 = vst [vmem:[#allocation8 + $0x88] sm:$0xff] %v245_v8 }
  0x87   : > { %279 = vst [vmem:[#allocation8 + $0xa8] sm:$0xff] %v245_v8  ;;  %283 = vst [vmem:[#allocation8 + $0xc8] sm:$0xff] %v245_v8 }
  0x88   : > { %287 = vst [vmem:[#allocation8 + $0xe8] sm:$0xff] %v245_v8  ;;  %291 = vst [vmem:[#allocation8 + $0x108] sm:$0xff] %v245_v8 }
  0x89   : > { %295 = vst [vmem:[#allocation8 + $0x128] sm:$0xff] %v245_v8  ;;  %299 = vst [vmem:[#allocation8 + $0x148] sm:$0xff] %v245_v8 }
  0x8a   : > { %303 = vst [vmem:[#allocation8 + $0x168] sm:$0xff] %v245_v8  ;;  %307 = vst [vmem:[#allocation8 + $0x188] sm:$0xff] %v245_v8 }
  0x8b   : > { %311 = vst [vmem:[#allocation8 + $0x1a8] sm:$0xff] %v245_v8  ;;  %315 = vst [vmem:[#allocation8 + $0x1c8] sm:$0xff] %v245_v8 }
  0x8c   : > { %319 = vst [vmem:[#allocation8 + $0x1e8] sm:$0xff] %v245_v8  ;;  %323 = vst [vmem:[#allocation8 + $0x208] sm:$0xff] %v245_v8 }
  0x8d   : > { %327 = vst [vmem:[#allocation8 + $0x228] sm:$0xff] %v245_v8  ;;  %331 = vst [vmem:[#allocation8 + $0x248] sm:$0xff] %v245_v8 }
  0x8e   : > { %335 = vst [vmem:[#allocation8 + $0x268] sm:$0xff] %v245_v8  ;;  %339 = vst [vmem:[#allocation8 + $0x288] sm:$0xff] %v245_v8 }
  0x8f   : > { %343 = vst [vmem:[#allocation8 + $0x2a8] sm:$0xff] %v245_v8  ;;  %347 = vst [vmem:[#allocation8 + $0x2c8] sm:$0xff] %v245_v8 }
  0x90   : > { %351 = vst [vmem:[#allocation8 + $0x2e8] sm:$0xff] %v245_v8  ;;  %355 = vst [vmem:[#allocation8 + $0x308] sm:$0xf] %v245_v8 }
  0x91   : > { %260 = vst [vmem:[#allocation8 + $0x10] sm:$0xff] %v4459_v9  ;;  %264 = vst [vmem:[#allocation8 + $0x30] sm:$0xff] %v4459_v9 }
  0x92   : > { %268 = vst [vmem:[#allocation8 + $0x50] sm:$0xff] %v4459_v9  ;;  %272 = vst [vmem:[#allocation8 + $0x70] sm:$0xff] %v4459_v9 }
  0x93   : > { %276 = vst [vmem:[#allocation8 + $0x90] sm:$0xff] %v4459_v9  ;;  %280 = vst [vmem:[#allocation8 + $0xb0] sm:$0xff] %v4459_v9 }
  0x94   : > { %284 = vst [vmem:[#allocation8 + $0xd0] sm:$0xff] %v4459_v9  ;;  %288 = vst [vmem:[#allocation8 + $0xf0] sm:$0xff] %v4459_v9 }
  0x95   : > { %292 = vst [vmem:[#allocation8 + $0x110] sm:$0xff] %v4459_v9  ;;  %296 = vst [vmem:[#allocation8 + $0x130] sm:$0xff] %v4459_v9 }
  0x96   : > { %300 = vst [vmem:[#allocation8 + $0x150] sm:$0xff] %v4459_v9  ;;  %304 = vst [vmem:[#allocation8 + $0x170] sm:$0xff] %v4459_v9 }
  0x97   : > { %308 = vst [vmem:[#allocation8 + $0x190] sm:$0xff] %v4459_v9  ;;  %312 = vst [vmem:[#allocation8 + $0x1b0] sm:$0xff] %v4459_v9 }
  0x98   : > { %316 = vst [vmem:[#allocation8 + $0x1d0] sm:$0xff] %v4459_v9  ;;  %320 = vst [vmem:[#allocation8 + $0x1f0] sm:$0xff] %v4459_v9 }
  0x99   : > { %324 = vst [vmem:[#allocation8 + $0x210] sm:$0xff] %v4459_v9  ;;  %328 = vst [vmem:[#allocation8 + $0x230] sm:$0xff] %v4459_v9 }
  0x9a   : > { %332 = vst [vmem:[#allocation8 + $0x250] sm:$0xff] %v4459_v9  ;;  %336 = vst [vmem:[#allocation8 + $0x270] sm:$0xff] %v4459_v9 }
  0x9b   : > { %340 = vst [vmem:[#allocation8 + $0x290] sm:$0xff] %v4459_v9  ;;  %344 = vst [vmem:[#allocation8 + $0x2b0] sm:$0xff] %v4459_v9 }
  0x9c   : > { %348 = vst [vmem:[#allocation8 + $0x2d0] sm:$0xff] %v4459_v9  ;;  %352 = vst [vmem:[#allocation8 + $0x2f0] sm:$0xff] %v4459_v9 }
  0x9d   : > { %356 = vst [vmem:[#allocation8 + $0x310] sm:$0xf] %v4459_v9  ;;  %261 = vst [vmem:[#allocation8 + $0x18] sm:$0xff] %v4461_v10 }
  0x9e   : > { %265 = vst [vmem:[#allocation8 + $0x38] sm:$0xff] %v4461_v10  ;;  %269 = vst [vmem:[#allocation8 + $0x58] sm:$0xff] %v4461_v10 }
  0x9f   : > { %273 = vst [vmem:[#allocation8 + $0x78] sm:$0xff] %v4461_v10  ;;  %277 = vst [vmem:[#allocation8 + $0x98] sm:$0xff] %v4461_v10 }
  0xa0   : > { %281 = vst [vmem:[#allocation8 + $0xb8] sm:$0xff] %v4461_v10  ;;  %285 = vst [vmem:[#allocation8 + $0xd8] sm:$0xff] %v4461_v10 }
  0xa1   : > { %289 = vst [vmem:[#allocation8 + $0xf8] sm:$0xff] %v4461_v10  ;;  %293 = vst [vmem:[#allocation8 + $0x118] sm:$0xff] %v4461_v10 }
  0xa2   : > { %297 = vst [vmem:[#allocation8 + $0x138] sm:$0xff] %v4461_v10  ;;  %301 = vst [vmem:[#allocation8 + $0x158] sm:$0xff] %v4461_v10 }
  0xa3   : > { %305 = vst [vmem:[#allocation8 + $0x178] sm:$0xff] %v4461_v10  ;;  %309 = vst [vmem:[#allocation8 + $0x198] sm:$0xff] %v4461_v10 }
  0xa4   : > { %313 = vst [vmem:[#allocation8 + $0x1b8] sm:$0xff] %v4461_v10  ;;  %317 = vst [vmem:[#allocation8 + $0x1d8] sm:$0xff] %v4461_v10 }
  0xa5   : > { %321 = vst [vmem:[#allocation8 + $0x1f8] sm:$0xff] %v4461_v10  ;;  %325 = vst [vmem:[#allocation8 + $0x218] sm:$0xff] %v4461_v10 }
  0xa6   : > { %329 = vst [vmem:[#allocation8 + $0x238] sm:$0xff] %v4461_v10  ;;  %333 = vst [vmem:[#allocation8 + $0x258] sm:$0xff] %v4461_v10 }
  0xa7   : > { %337 = vst [vmem:[#allocation8 + $0x278] sm:$0xff] %v4461_v10  ;;  %341 = vst [vmem:[#allocation8 + $0x298] sm:$0xff] %v4461_v10 }
  0xa8   : > { %345 = vst [vmem:[#allocation8 + $0x2b8] sm:$0xff] %v4461_v10  ;;  %349 = vst [vmem:[#allocation8 + $0x2d8] sm:$0xff] %v4461_v10 }
  0xa9   : > { %353 = vst [vmem:[#allocation8 + $0x2f8] sm:$0xff] %v4461_v10  ;;  %357 = vst [vmem:[#allocation8 + $0x318] sm:$0xf] %v4461_v10 }
  0xaa PF: > { %v659_v11 = vld [vmem:[%s4447_s29 + $0x8] sm:$0xff]  ;;  %v661_v13 = vld [vmem:[%s4447_s29 + $0x18] sm:$0xff]  ;;  %v658_v16 = vld [vmem:[%s4447_s29] sm:$0xff]  ;;  %s4255_s22 = smov [#allocation8]   ;;  %p4042_p12 = scmp.eq.s32.totalorder %s4297_s16, 1 }
  0xab   : > { %v663_v12 = vld [vmem:[%s4447_s29 + $0x28] sm:$0xff]  ;;  %v665_v15 = vld [vmem:[%s4447_s29 + $0x38] sm:$0xff]  ;;  %v662_v17 = vld [vmem:[%s4447_s29 + $0x20] sm:$0xff]  ;;  %s3096_s23 = sshll.u32 %s4255_s22, 4  ;;  %s3097_s23 = int_to_ptr.vmem [resolvable:$true] %s3096_s23 }
  0xac   : > { %v3202_v14 = vpack.c.bf16 %v663_v12, %v659_v11  ;;  %v3458_v18 = vpack.c.bf16 %v665_v15, %v661_v13  ;;  %v3204_v19 = vpack.c.bf16 %v662_v17, %v658_v16  ;;  %v660_v20 = vld [vmem:[%s4447_s29 + $0x10] sm:$0xff]  ;;  %v667_v22 = vld [vmem:[%s4447_s29 + $0x48] sm:$0xff]  ;;  %v669_v25 = vld [vmem:[%s4447_s29 + $0x58] sm:$0xff]  ;;  %s4173_s10 = scalar_lea.vmem %s3097_s23, 12800  ;;  %p4180_p1 = scmp.lt.s32.totalorder %s3097_s23, %s3097_s23 }
  0xad   : > { %v664_v21 = vld [vmem:[%s4447_s29 + $0x30] sm:$0xff]  ;;  %v671_v24 = vld [vmem:[%s4447_s29 + $0x68] sm:$0xff]  ;;  %v673_v26 = vld [vmem:[%s4447_s29 + $0x78] sm:$0xff]  ;;  %p4174_p5 = scmp.ne.s32.totalorder %s3097_s23, %s4173_s10  ;;  %p4181_p13 = scmp.lt.s32.totalorder %s4173_s10, %s4173_s10 }
  0xae   : > { %3203 = vmatprep.subr.bf16.mxu0 %v3202_v14  ;;  %v3460_v23 = vpack.c.bf16 %v664_v21, %v660_v20  ;;  %3459 = vmatprep.subr.bf16.mxu1 %v3458_v18  ;;  %v3206_v27 = vpack.c.bf16 %v671_v24, %v667_v22  ;;  %v3462_v28 = vpack.c.bf16 %v673_v26, %v669_v25  ;;  %v666_v29 = vld [vmem:[%s4447_s29 + $0x40] sm:$0xff]  ;;  %v668_v31 = vld [vmem:[%s4447_s29 + $0x50] sm:$0xff]  ;;  %v675_v34 = vld [vmem:[%s4447_s29 + $0x88] sm:$0xff] }
  0xaf   : > { %3205 = vmatpush1.bf16.msra.mxu0 %v3204_v19  ;;  %v670_v30 = vld [vmem:[%s4447_s29 + $0x60] sm:$0xff]  ;;  %v672_v33 = vld [vmem:[%s4447_s29 + $0x70] sm:$0xff]  ;;  %v679_v35 = vld [vmem:[%s4447_s29 + $0xa8] sm:$0xff]  ;;  %p4175_p10 = pnand %p4174_p5, %p4042_p12  ;;  %p4182_p2 = por %p4181_p13, %p4180_p1 }
  0xb0   : > { %3461 = vmatpush1.bf16.msra.mxu1 %v3460_v23  ;;  %v3208_v32 = vpack.c.bf16 %v670_v30, %v666_v29  ;;  %3207 = vmatprep.subr.bf16.mxu0 %v3206_v27  ;;  %v3464_v36 = vpack.c.bf16 %v672_v33, %v668_v31  ;;  %v3210_v37 = vpack.c.bf16 %v679_v35, %v675_v34  ;;  %v677_v38 = vld [vmem:[%s4447_s29 + $0x98] sm:$0xff]  ;;  %v674_v40 = vld [vmem:[%s4447_s29 + $0x80] sm:$0xff]  ;;  %v676_v43 = vld [vmem:[%s4447_s29 + $0x90] sm:$0xff] }
  0xb1   : > { %3463 = vmatprep.subr.bf16.mxu1 %v3462_v28  ;;  %v681_v39 = vld [vmem:[%s4447_s29 + $0xb8] sm:$0xff]  ;;  %v678_v42 = vld [vmem:[%s4447_s29 + $0xa0] sm:$0xff]  ;;  %v680_v44 = vld [vmem:[%s4447_s29 + $0xb0] sm:$0xff]  ;;  %p4176_p0 = pneg %p4175_p10 }
  0xb2   : > { %v3466_v41 = vpack.c.bf16 %v681_v39, %v677_v38  ;;  %v3212_v45 = vpack.c.bf16 %v678_v42, %v674_v40  ;;  %v683_v46 = vld [vmem:[%s4447_s29 + $0xc8] sm:$0xff]  ;;  %v685_v48 = vld [vmem:[%s4447_s29 + $0xd8] sm:$0xff]  ;;  %v3468_v49 = vpack.c.bf16 %v680_v44, %v676_v43  ;;  %v682_v52 = vld [vmem:[%s4447_s29 + $0xc0] sm:$0xff] }
  0xb3   : > { %3209 = vmatpush1.bf16.msra.mxu0 %v3208_v32  ;;  %v687_v47 = vld [vmem:[%s4447_s29 + $0xe8] sm:$0xff]  ;;  %v689_v51 = vld [vmem:[%s4447_s29 + $0xf8] sm:$0xff]  ;;  %v686_v53 = vld [vmem:[%s4447_s29 + $0xe0] sm:$0xff]  ;;  %p4183_p6 = pnand %p4182_p2, %p4176_p0 }
  0xb4   : > { %3465 = vmatpush1.bf16.msra.mxu1 %v3464_v36  ;;  %3211 = vmatprep.subr.bf16.mxu0 %v3210_v37  ;;  %v3214_v50 = vpack.c.bf16 %v687_v47, %v683_v46  ;;  %v3470_v54 = vpack.c.bf16 %v689_v51, %v685_v48  ;;  %v684_v55 = vld [vmem:[%s4447_s29 + $0xd0] sm:$0xff]  ;;  %v691_v57 = vld [vmem:[%s4447_s29 + $0x108] sm:$0xff]  ;;  %v693_v59 = vld [vmem:[%s4447_s29 + $0x118] sm:$0xff]  ;;  %v3216_v61 = vpack.c.bf16 %v686_v53, %v682_v52 }
  0xb5   : > { %3467 = vmatprep.subr.bf16.mxu1 %v3466_v41  ;;  %v688_v56 = vld [vmem:[%s4447_s29 + $0xf0] sm:$0xff]  ;;  %v695_v58 = vld [vmem:[%s4447_s29 + $0x128] sm:$0xff]  ;;  %v697_v60 = vld [vmem:[%s4447_s29 + $0x138] sm:$0xff] }
  0xb6   : > { %v3472_v62 = vpack.c.bf16 %v688_v56, %v684_v55  ;;  %v3218_v63 = vpack.c.bf16 %v695_v58, %v691_v57  ;;  %v690_v0 = vld [vmem:[%s4447_s29 + $0x100] sm:$0xff]  ;;  %v692_v2 = vld [vmem:[%s4447_s29 + $0x110] sm:$0xff]  ;;  %v3474_v3 = vpack.c.bf16 %v697_v60, %v693_v59  ;;  %v699_v5 = vld [vmem:[%s4447_s29 + $0x148] sm:$0xff] }
  0xb7   : > { %3213 = vmatpush1.bf16.msra.mxu0 %v3212_v45  ;;  %v694_v1 = vld [vmem:[%s4447_s29 + $0x120] sm:$0xff]  ;;  %v696_v4 = vld [vmem:[%s4447_s29 + $0x130] sm:$0xff]  ;;  %v703_v6 = vld [vmem:[%s4447_s29 + $0x168] sm:$0xff] }
  0xb8   : > { %3469 = vmatpush1.bf16.msra.mxu1 %v3468_v49  ;;  %3215 = vmatprep.subr.bf16.mxu0 %v3214_v50  ;;  %v701_v7 = vld [vmem:[%s4447_s29 + $0x158] sm:$0xff]  ;;  %v3220_v9 = vpack.c.bf16 %v694_v1, %v690_v0  ;;  %v3476_v10 = vpack.c.bf16 %v696_v4, %v692_v2  ;;  %v3222_v11 = vpack.c.bf16 %v703_v6, %v699_v5  ;;  %v698_v12 = vld [vmem:[%s4447_s29 + $0x140] sm:$0xff]  ;;  %v700_v14 = vld [vmem:[%s4447_s29 + $0x150] sm:$0xff] }
  0xb9   : > { %3471 = vmatprep.subr.bf16.mxu1 %v3470_v54  ;;  %v705_v8 = vld [vmem:[%s4447_s29 + $0x178] sm:$0xff]  ;;  %v702_v13 = vld [vmem:[%s4447_s29 + $0x160] sm:$0xff]  ;;  %v704_v16 = vld [vmem:[%s4447_s29 + $0x170] sm:$0xff] }
  0xba   : > { %v3478_v15 = vpack.c.bf16 %v705_v8, %v701_v7  ;;  %v707_v17 = vld [vmem:[%s4447_s29 + $0x188] sm:$0xff]  ;;  %v709_v19 = vld [vmem:[%s4447_s29 + $0x198] sm:$0xff]  ;;  %v3224_v21 = vpack.c.bf16 %v702_v13, %v698_v12  ;;  %v3480_v22 = vpack.c.bf16 %v704_v16, %v700_v14  ;;  %v706_v24 = vld [vmem:[%s4447_s29 + $0x180] sm:$0xff] }
  0xbb   : > { %3217 = vmatpush1.bf16.msra.mxu0 %v3216_v61  ;;  %v711_v18 = vld [vmem:[%s4447_s29 + $0x1a8] sm:$0xff]  ;;  %v713_v20 = vld [vmem:[%s4447_s29 + $0x1b8] sm:$0xff]  ;;  %v710_v25 = vld [vmem:[%s4447_s29 + $0x1a0] sm:$0xff] }
  0xbc   : > { %3473 = vmatpush1.bf16.msra.mxu1 %v3472_v62  ;;  %3219 = vmatprep.subr.bf16.mxu0 %v3218_v63  ;;  %v3226_v23 = vpack.c.bf16 %v711_v18, %v707_v17  ;;  %v708_v26 = vld [vmem:[%s4447_s29 + $0x190] sm:$0xff]  ;;  %v3482_v27 = vpack.c.bf16 %v713_v20, %v709_v19  ;;  %v715_v29 = vld [vmem:[%s4447_s29 + $0x1c8] sm:$0xff]  ;;  %v717_v31 = vld [vmem:[%s4447_s29 + $0x1d8] sm:$0xff]  ;;  %v3228_v33 = vpack.c.bf16 %v710_v25, %v706_v24 }
  0xbd   : > { %3475 = vmatprep.subr.bf16.mxu1 %v3474_v3  ;;  %v712_v28 = vld [vmem:[%s4447_s29 + $0x1b0] sm:$0xff]  ;;  %v719_v30 = vld [vmem:[%s4447_s29 + $0x1e8] sm:$0xff]  ;;  %v721_v32 = vld [vmem:[%s4447_s29 + $0x1f8] sm:$0xff] }
  0xbe   : > { %v3484_v34 = vpack.c.bf16 %v712_v28, %v708_v26  ;;  %v3230_v35 = vpack.c.bf16 %v719_v30, %v715_v29  ;;  %v714_v36 = vld [vmem:[%s4447_s29 + $0x1c0] sm:$0xff]  ;;  %v716_v38 = vld [vmem:[%s4447_s29 + $0x1d0] sm:$0xff]  ;;  %v3486_v39 = vpack.c.bf16 %v721_v32, %v717_v31  ;;  %v723_v41 = vld [vmem:[%s4447_s29 + $0x208] sm:$0xff] }
  0xbf   : > { %3221 = vmatpush1.bf16.msra.mxu0 %v3220_v9  ;;  %v718_v37 = vld [vmem:[%s4447_s29 + $0x1e0] sm:$0xff]  ;;  %v720_v40 = vld [vmem:[%s4447_s29 + $0x1f0] sm:$0xff]  ;;  %v727_v42 = vld [vmem:[%s4447_s29 + $0x228] sm:$0xff] }
  0xc0   : > { %3477 = vmatpush1.bf16.msra.mxu1 %v3476_v10  ;;  %3223 = vmatprep.subr.bf16.mxu0 %v3222_v11  ;;  %v725_v43 = vld [vmem:[%s4447_s29 + $0x218] sm:$0xff]  ;;  %v3232_v45 = vpack.c.bf16 %v718_v37, %v714_v36  ;;  %v3488_v46 = vpack.c.bf16 %v720_v40, %v716_v38  ;;  %v3234_v47 = vpack.c.bf16 %v727_v42, %v723_v41  ;;  %v722_v48 = vld [vmem:[%s4447_s29 + $0x200] sm:$0xff]  ;;  %v724_v50 = vld [vmem:[%s4447_s29 + $0x210] sm:$0xff] }
  0xc1   : > { %3479 = vmatprep.subr.bf16.mxu1 %v3478_v15  ;;  %v729_v44 = vld [vmem:[%s4447_s29 + $0x238] sm:$0xff]  ;;  %v726_v49 = vld [vmem:[%s4447_s29 + $0x220] sm:$0xff]  ;;  %v728_v52 = vld [vmem:[%s4447_s29 + $0x230] sm:$0xff] }
  0xc2   : > { %v3490_v51 = vpack.c.bf16 %v729_v44, %v725_v43  ;;  %v731_v53 = vld [vmem:[%s4447_s29 + $0x248] sm:$0xff]  ;;  %v733_v55 = vld [vmem:[%s4447_s29 + $0x258] sm:$0xff]  ;;  %v3236_v57 = vpack.c.bf16 %v726_v49, %v722_v48  ;;  %v3492_v58 = vpack.c.bf16 %v728_v52, %v724_v50  ;;  %v730_v60 = vld [vmem:[%s4447_s29 + $0x240] sm:$0xff] }
  0xc3   : > { %3225 = vmatpush1.bf16.msra.mxu0 %v3224_v21  ;;  %v735_v54 = vld [vmem:[%s4447_s29 + $0x268] sm:$0xff]  ;;  %v737_v56 = vld [vmem:[%s4447_s29 + $0x278] sm:$0xff]  ;;  %v734_v61 = vld [vmem:[%s4447_s29 + $0x260] sm:$0xff] }
  0xc4   : > { %3481 = vmatpush1.bf16.msra.mxu1 %v3480_v22  ;;  %3227 = vmatprep.subr.bf16.mxu0 %v3226_v23  ;;  %v3238_v59 = vpack.c.bf16 %v735_v54, %v731_v53  ;;  %v732_v62 = vld [vmem:[%s4447_s29 + $0x250] sm:$0xff]  ;;  %v3494_v63 = vpack.c.bf16 %v737_v56, %v733_v55  ;;  %v739_v1 = vld [vmem:[%s4447_s29 + $0x288] sm:$0xff]  ;;  %v741_v3 = vld [vmem:[%s4447_s29 + $0x298] sm:$0xff]  ;;  %v3240_v5 = vpack.c.bf16 %v734_v61, %v730_v60 }
  0xc5   : > { %3483 = vmatprep.subr.bf16.mxu1 %v3482_v27  ;;  %v736_v0 = vld [vmem:[%s4447_s29 + $0x270] sm:$0xff]  ;;  %v743_v2 = vld [vmem:[%s4447_s29 + $0x2a8] sm:$0xff]  ;;  %v745_v4 = vld [vmem:[%s4447_s29 + $0x2b8] sm:$0xff] }
  0xc6   : > { %v3496_v6 = vpack.c.bf16 %v736_v0, %v732_v62  ;;  %v3242_v7 = vpack.c.bf16 %v743_v2, %v739_v1  ;;  %v738_v8 = vld [vmem:[%s4447_s29 + $0x280] sm:$0xff]  ;;  %v740_v10 = vld [vmem:[%s4447_s29 + $0x290] sm:$0xff]  ;;  %v3498_v11 = vpack.c.bf16 %v745_v4, %v741_v3  ;;  %v747_v13 = vld [vmem:[%s4447_s29 + $0x2c8] sm:$0xff] }
  0xc7   : > { %3229 = vmatpush1.bf16.msra.mxu0 %v3228_v33  ;;  %v742_v9 = vld [vmem:[%s4447_s29 + $0x2a0] sm:$0xff]  ;;  %v744_v12 = vld [vmem:[%s4447_s29 + $0x2b0] sm:$0xff]  ;;  %v751_v14 = vld [vmem:[%s4447_s29 + $0x2e8] sm:$0xff] }
  0xc8   : > { %3485 = vmatpush1.bf16.msra.mxu1 %v3484_v34  ;;  %3231 = vmatprep.subr.bf16.mxu0 %v3230_v35  ;;  %v749_v15 = vld [vmem:[%s4447_s29 + $0x2d8] sm:$0xff]  ;;  %v3244_v17 = vpack.c.bf16 %v742_v9, %v738_v8  ;;  %v746_v18 = vld [vmem:[%s4447_s29 + $0x2c0] sm:$0xff]  ;;  %v3500_v19 = vpack.c.bf16 %v744_v12, %v740_v10  ;;  %v3246_v20 = vpack.c.bf16 %v751_v14, %v747_v13  ;;  %v748_v22 = vld [vmem:[%s4447_s29 + $0x2d0] sm:$0xff] }
  0xc9   : > { %3487 = vmatprep.subr.bf16.mxu1 %v3486_v39  ;;  %v753_v16 = vld [vmem:[%s4447_s29 + $0x2f8] sm:$0xff]  ;;  %v750_v21 = vld [vmem:[%s4447_s29 + $0x2e0] sm:$0xff]  ;;  %v752_v23 = vld [vmem:[%s4447_s29 + $0x2f0] sm:$0xff] }
  0xca   : > { %v3502_v24 = vpack.c.bf16 %v753_v16, %v749_v15  ;;  %v755_v25 = vld [vmem:[%s4447_s29 + $0x308] sm:$0xff]  ;;  %v757_v28 = vld [vmem:[%s4447_s29 + $0x318] sm:$0xff]  ;;  %v3248_v30 = vpack.c.bf16 %v750_v21, %v746_v18  ;;  %v3504_v31 = vpack.c.bf16 %v752_v23, %v748_v22  ;;  %v754_v33 = vld [vmem:[%s4447_s29 + $0x300] sm:$0xff] }
  0xcb   : > { %3233 = vmatpush1.bf16.msra.mxu0 %v3232_v45  ;;  %v759_v26 = vld [vmem:[%s4447_s29 + $0x328] sm:$0xff]  ;;  %v761_v29 = vld [vmem:[%s4447_s29 + $0x338] sm:$0xff]  ;;  %v758_v34 = vld [vmem:[%s4447_s29 + $0x320] sm:$0xff] }
  0xcc   : > { %3489 = vmatpush1.bf16.msra.mxu1 %v3488_v46  ;;  %3235 = vmatprep.subr.bf16.mxu0 %v3234_v47  ;;  %v459_v27 = vld [vmem:[%s4440_s9 + $0x8] sm:$0xff]  ;;  %v3250_v32 = vpack.c.bf16 %v759_v26, %v755_v25  ;;  %v756_v35 = vld [vmem:[%s4447_s29 + $0x310] sm:$0xff]  ;;  %v3506_v36 = vpack.c.bf16 %v761_v29, %v757_v28  ;;  %v765_v40 = vld [vmem:[%s4447_s29 + $0x358] sm:$0xff]  ;;  %v3252_v42 = vpack.c.bf16 %v758_v34, %v754_v33 }
  0xcd   : > { %3491 = vmatprep.subr.bf16.mxu1 %v3490_v51  ;;  %1234 = vmatprep.mubr.f32.mxu0 %v459_v27  ;;  %v760_v37 = vld [vmem:[%s4447_s29 + $0x330] sm:$0xff]  ;;  %v763_v38 = vld [vmem:[%s4447_s29 + $0x348] sm:$0xff]  ;;  %v769_v41 = vld [vmem:[%s4447_s29 + $0x378] sm:$0xff] }
  0xce   : > { %2094 = vmatprep.mubr.f32.mxu1 %v459_v27  ;;  %v767_v39 = vld [vmem:[%s4447_s29 + $0x368] sm:$0xff]  ;;  %v3508_v43 = vpack.c.bf16 %v760_v37, %v756_v35  ;;  %v762_v45 = vld [vmem:[%s4447_s29 + $0x340] sm:$0xff]  ;;  %v764_v47 = vld [vmem:[%s4447_s29 + $0x350] sm:$0xff]  ;;  %v3510_v48 = vpack.c.bf16 %v769_v41, %v765_v40 }
  0xcf   : > { %3237 = vmatpush1.bf16.msra.mxu0 %v3236_v57  ;;  %v3254_v44 = vpack.c.bf16 %v767_v39, %v763_v38  ;;  %v766_v46 = vld [vmem:[%s4447_s29 + $0x360] sm:$0xff]  ;;  %v768_v49 = vld [vmem:[%s4447_s29 + $0x370] sm:$0xff]  ;;  %v771_v50 = vld [vmem:[%s4447_s29 + $0x388] sm:$0xff] }
  0xd0   : > { %3493 = vmatpush1.bf16.msra.mxu1 %v3492_v58  ;;  %3239 = vmatprep.subr.bf16.mxu0 %v3238_v59  ;;  %v775_v51 = vld [vmem:[%s4447_s29 + $0x3a8] sm:$0xff]  ;;  %v773_v52 = vld [vmem:[%s4447_s29 + $0x398] sm:$0xff]  ;;  %v3256_v54 = vpack.c.bf16 %v766_v46, %v762_v45  ;;  %v3512_v55 = vpack.c.bf16 %v768_v49, %v764_v47  ;;  %v770_v57 = vld [vmem:[%s4447_s29 + $0x380] sm:$0xff] }
  0xd1   : > { %3495 = vmatprep.subr.bf16.mxu1 %v3494_v63  ;;  %v777_v53 = vld [vmem:[%s4447_s29 + $0x3b8] sm:$0xff]  ;;  %v3258_v56 = vpack.c.bf16 %v775_v51, %v771_v50  ;;  %v774_v58 = vld [vmem:[%s4447_s29 + $0x3a0] sm:$0xff]  ;;  %v772_v59 = vld [vmem:[%s4447_s29 + $0x390] sm:$0xff] }
  0xd2   : > { %v3514_v60 = vpack.c.bf16 %v777_v53, %v773_v52  ;;  %v776_v61 = vld [vmem:[%s4447_s29 + $0x3b0] sm:$0xff]  ;;  %v779_v62 = vld [vmem:[%s4447_s29 + $0x3c8] sm:$0xff]  ;;  %v781_v0 = vld [vmem:[%s4447_s29 + $0x3d8] sm:$0xff]  ;;  %v3260_v2 = vpack.c.bf16 %v774_v58, %v770_v57 }
  0xd3   : > { %3241 = vmatpush1.bf16.msra.mxu0 %v3240_v5  ;;  %v783_v63 = vld [vmem:[%s4447_s29 + $0x3e8] sm:$0xff]  ;;  %v785_v1 = vld [vmem:[%s4447_s29 + $0x3f8] sm:$0xff]  ;;  %v3516_v3 = vpack.c.bf16 %v776_v61, %v772_v59  ;;  %v778_v5 = vld [vmem:[%s4447_s29 + $0x3c0] sm:$0xff] }
  0xd4   : > { %3497 = vmatpush1.bf16.msra.mxu1 %v3496_v6  ;;  %3243 = vmatprep.subr.bf16.mxu0 %v3242_v7  ;;  %v3262_v4 = vpack.c.bf16 %v783_v63, %v779_v62  ;;  %v782_v6 = vld [vmem:[%s4447_s29 + $0x3e0] sm:$0xff]  ;;  %v780_v7 = vld [vmem:[%s4447_s29 + $0x3d0] sm:$0xff]  ;;  %v3518_v8 = vpack.c.bf16 %v785_v1, %v781_v0  ;;  %v787_v10 = vld [vmem:[%s4447_s29 + $0x408] sm:$0xff] }
  0xd5   : > { %3499 = vmatprep.subr.bf16.mxu1 %v3498_v11  ;;  %v784_v9 = vld [vmem:[%s4447_s29 + $0x3f0] sm:$0xff]  ;;  %v791_v11 = vld [vmem:[%s4447_s29 + $0x428] sm:$0xff]  ;;  %v789_v12 = vld [vmem:[%s4447_s29 + $0x418] sm:$0xff]  ;;  %v3264_v14 = vpack.c.bf16 %v782_v6, %v778_v5 }
  0xd6   : > { %v793_v13 = vld [vmem:[%s4447_s29 + $0x438] sm:$0xff]  ;;  %v3520_v15 = vpack.c.bf16 %v784_v9, %v780_v7  ;;  %v3266_v16 = vpack.c.bf16 %v791_v11, %v787_v10  ;;  %v790_v18 = vld [vmem:[%s4447_s29 + $0x420] sm:$0xff]  ;;  %v792_v21 = vld [vmem:[%s4447_s29 + $0x430] sm:$0xff] }
  0xd7   : > { %3245 = vmatpush1.bf16.msra.mxu0 %v3244_v17  ;;  %v786_v17 = vld [vmem:[%s4447_s29 + $0x400] sm:$0xff]  ;;  %v795_v22 = vld [vmem:[%s4447_s29 + $0x448] sm:$0xff]  ;;  %v797_v26 = vld [vmem:[%s4447_s29 + $0x458] sm:$0xff] }
  0xd8   : > { %3501 = vmatpush1.bf16.msra.mxu1 %v3500_v19  ;;  %3247 = vmatprep.subr.bf16.mxu0 %v3246_v20  ;;  %v3522_v19 = vpack.c.bf16 %v793_v13, %v789_v12  ;;  %v788_v20 = vld [vmem:[%s4447_s29 + $0x410] sm:$0xff]  ;;  %v799_v23 = vld [vmem:[%s4447_s29 + $0x468] sm:$0xff]  ;;  %v3268_v25 = vpack.c.bf16 %v790_v18, %v786_v17  ;;  %v801_v27 = vld [vmem:[%s4447_s29 + $0x478] sm:$0xff] }
  0xd9   : > { %3503 = vmatprep.subr.bf16.mxu1 %v3502_v24  ;;  %v458_v24 = vld [vmem:[%s4440_s9] sm:$0xff]  ;;  %v3524_v28 = vpack.c.bf16 %v792_v21, %v788_v20  ;;  %v467_v29 = vld [vmem:[%s4440_s9 + $0x48] sm:$0xff]  ;;  %v796_v33 = vld [vmem:[%s4447_s29 + $0x450] sm:$0xff]  ;;  %v3526_v34 = vpack.c.bf16 %v801_v27, %v797_v26 }
  0xda   : > { %v800_v35 = vld [vmem:[%s4447_s29 + $0x470] sm:$0xff]  ;;  %v807_v37 = vld [vmem:[%s4447_s29 + $0x4a8] sm:$0xff]  ;;  %v466_v38 = vld [vmem:[%s4440_s9 + $0x40] sm:$0xff] }
  0xdb   : > { %3249 = vmatpush1.bf16.msra.mxu0 %v3248_v30  ;;  %v3270_v30 = vpack.c.bf16 %v799_v23, %v795_v22  ;;  %v805_v39 = vld [vmem:[%s4447_s29 + $0x498] sm:$0xff]  ;;  %v475_v41 = vld [vmem:[%s4440_s9 + $0x88] sm:$0xff]  ;;  %v802_v45 = vld [vmem:[%s4447_s29 + $0x480] sm:$0xff] }
  0xdc   : > { %3505 = vmatpush1.bf16.msra.mxu1 %v3504_v31  ;;  %3251 = vmatprep.subr.bf16.mxu0 %v3250_v32  ;;  %v794_v31 = vld [vmem:[%s4447_s29 + $0x440] sm:$0xff]  ;;  %v809_v40 = vld [vmem:[%s4447_s29 + $0x4b8] sm:$0xff]  ;;  %v804_v47 = vld [vmem:[%s4447_s29 + $0x490] sm:$0xff] }
  0xdd   : > { %3507 = vmatprep.subr.bf16.mxu1 %v3506_v36  ;;  %v798_v32 = vld [vmem:[%s4447_s29 + $0x460] sm:$0xff]  ;;  %v803_v36 = vld [vmem:[%s4447_s29 + $0x488] sm:$0xff]  ;;  %v808_v49 = vld [vmem:[%s4447_s29 + $0x4b0] sm:$0xff] }
  0xde   : > { %v806_v46 = vld [vmem:[%s4447_s29 + $0x4a0] sm:$0xff]  ;;  %v811_v50 = vld [vmem:[%s4447_s29 + $0x4c8] sm:$0xff]  ;;  %v813_v53 = vld [vmem:[%s4447_s29 + $0x4d8] sm:$0xff]  ;;  %v3532_v57 = vpack.c.bf16 %v808_v49, %v804_v47 }
  0xdf   : > { %3253 = vmatpush1.bf16.msra.mxu0 %v3252_v42  ;;  %v3272_v42 = vpack.c.bf16 %v798_v32, %v794_v31  ;;  %v815_v51 = vld [vmem:[%s4447_s29 + $0x4e8] sm:$0xff]  ;;  %v474_v52 = vld [vmem:[%s4440_s9 + $0x80] sm:$0xff]  ;;  %v812_v61 = vld [vmem:[%s4447_s29 + $0x4d0] sm:$0xff] }
  0xe0   : > { %3509 = vmatpush1.bf16.msra.mxu1 %v3508_v43  ;;  %3255 = vmatprep.subr.bf16.mxu0 %v3254_v44  ;;  %v3528_v43 = vpack.c.bf16 %v800_v35, %v796_v33  ;;  %v3274_v44 = vpack.c.bf16 %v807_v37, %v803_v36  ;;  %v3278_v58 = vpack.c.bf16 %v815_v51, %v811_v50  ;;  %v810_v59 = vld [vmem:[%s4447_s29 + $0x4c0] sm:$0xff]  ;;  %v816_v63 = vld [vmem:[%s4447_s29 + $0x4f0] sm:$0xff]  ;;  %v819_v0 = vld [vmem:[%s4447_s29 + $0x508] sm:$0xff] }
  0xe1   : > { %3511 = vmatprep.subr.bf16.mxu1 %v3510_v48  ;;  %v3530_v48 = vpack.c.bf16 %v809_v40, %v805_v39  ;;  %v823_v1 = vld [vmem:[%s4447_s29 + $0x528] sm:$0xff]  ;;  %v3536_v7 = vpack.c.bf16 %v816_v63, %v812_v61  ;;  %v818_v9 = vld [vmem:[%s4447_s29 + $0x500] sm:$0xff]  ;;  %v820_v11 = vld [vmem:[%s4447_s29 + $0x510] sm:$0xff] }
  0xe2   : > { %v491_v5 = vld [vmem:[%s4440_s9 + $0x108] sm:$0xff]  ;;  %v822_v10 = vld [vmem:[%s4447_s29 + $0x520] sm:$0xff]  ;;  %v824_v13 = vld [vmem:[%s4447_s29 + $0x530] sm:$0xff] }
  0xe3   : > { %3257 = vmatpush1.bf16.msra.mxu0 %v3256_v54  ;;  %v817_v54 = vld [vmem:[%s4447_s29 + $0x4f8] sm:$0xff]  ;;  %v3284_v20 = vpack.c.bf16 %v822_v10, %v818_v9  ;;  %v3540_v21 = vpack.c.bf16 %v824_v13, %v820_v11  ;;  %v826_v23 = vld [vmem:[%s4447_s29 + $0x540] sm:$0xff]  ;;  %v832_v27 = vld [vmem:[%s4447_s29 + $0x570] sm:$0xff] }
  0xe4   : > { %3513 = vmatpush1.bf16.msra.mxu1 %v3512_v55  ;;  %3259 = vmatprep.subr.bf16.mxu0 %v3258_v56  ;;  %v483_v55 = vld [vmem:[%s4440_s9 + $0xc8] sm:$0xff]  ;;  %v3276_v56 = vpack.c.bf16 %v806_v46, %v802_v45  ;;  %v3534_v62 = vpack.c.bf16 %v817_v54, %v813_v53  ;;  %v829_v17 = vld [vmem:[%s4447_s29 + $0x558] sm:$0xff]  ;;  %v834_v37 = vld [vmem:[%s4447_s29 + $0x580] sm:$0xff] }
  0xe5   : > { %3515 = vmatprep.subr.bf16.mxu1 %v3514_v60  ;;  %v814_v60 = vld [vmem:[%s4447_s29 + $0x4e0] sm:$0xff]  ;;  %v833_v18 = vld [vmem:[%s4447_s29 + $0x578] sm:$0xff]  ;;  %v507_v33 = vld [vmem:[%s4440_s9 + $0x188] sm:$0xff] }
  0xe6   : > { %v3280_v6 = vpack.c.bf16 %v814_v60, %v810_v59  ;;  %v3542_v26 = vpack.c.bf16 %v833_v18, %v829_v17  ;;  %v837_v31 = vld [vmem:[%s4447_s29 + $0x598] sm:$0xff]  ;;  %v836_v39 = vld [vmem:[%s4447_s29 + $0x590] sm:$0xff]  ;;  %v515_v47 = vld [vmem:[%s4440_s9 + $0x1c8] sm:$0xff] }
  0xe7   : > { %3261 = vmatpush1.bf16.msra.mxu0 %v3260_v2  ;;  %v482_v2 = vld [vmem:[%s4440_s9 + $0xc0] sm:$0xff]  ;;  %v841_v32 = vld [vmem:[%s4447_s29 + $0x5b8] sm:$0xff]  ;;  %v844_v53 = vld [vmem:[%s4447_s29 + $0x5d0] sm:$0xff] }
  0xe8   : > { %3517 = vmatpush1.bf16.msra.mxu1 %v3516_v3  ;;  %3263 = vmatprep.subr.bf16.mxu0 %v3262_v4  ;;  %v821_v3 = vld [vmem:[%s4447_s29 + $0x518] sm:$0xff]  ;;  %v3546_v40 = vpack.c.bf16 %v841_v32, %v837_v31  ;;  %v842_v51 = vld [vmem:[%s4447_s29 + $0x5c0] sm:$0xff]  ;;  %v523_v61 = vld [vmem:[%s4440_s9 + $0x208] sm:$0xff] }
  0xe9   : > { %3519 = vmatprep.subr.bf16.mxu1 %v3518_v8  ;;  %v825_v4 = vld [vmem:[%s4447_s29 + $0x538] sm:$0xff]  ;;  %v3282_v8 = vpack.c.bf16 %v823_v1, %v819_v0  ;;  %v850_v1 = vld [vmem:[%s4447_s29 + $0x600] sm:$0xff]  ;;  %v531_v11 = vld [vmem:[%s4440_s9 + $0x248] sm:$0xff] }
  0xea   : > { %v3538_v12 = vpack.c.bf16 %v825_v4, %v821_v3  ;;  %v845_v45 = vld [vmem:[%s4447_s29 + $0x5d8] sm:$0xff]  ;;  %v852_v3 = vld [vmem:[%s4447_s29 + $0x610] sm:$0xff] }
  0xeb   : > { %3265 = vmatpush1.bf16.msra.mxu0 %v3264_v14  ;;  %v827_v14 = vld [vmem:[%s4447_s29 + $0x548] sm:$0xff]  ;;  %v849_v46 = vld [vmem:[%s4447_s29 + $0x5f8] sm:$0xff]  ;;  %v860_v17 = vld [vmem:[%s4447_s29 + $0x650] sm:$0xff] }
  0xec   : > { %3521 = vmatpush1.bf16.msra.mxu1 %v3520_v15  ;;  %3267 = vmatprep.subr.bf16.mxu0 %v3266_v16  ;;  %v831_v15 = vld [vmem:[%s4447_s29 + $0x568] sm:$0xff]  ;;  %v490_v16 = vld [vmem:[%s4440_s9 + $0x100] sm:$0xff]  ;;  %v3550_v54 = vpack.c.bf16 %v849_v46, %v845_v45  ;;  %v853_v59 = vld [vmem:[%s4447_s29 + $0x618] sm:$0xff] }
  0xed   : > { %3523 = vmatprep.subr.bf16.mxu1 %v3522_v19  ;;  %v499_v19 = vld [vmem:[%s4440_s9 + $0x148] sm:$0xff]  ;;  %v3286_v22 = vpack.c.bf16 %v831_v15, %v827_v14  ;;  %v857_v60 = vld [vmem:[%s4447_s29 + $0x638] sm:$0xff]  ;;  %v858_v15 = vld [vmem:[%s4447_s29 + $0x640] sm:$0xff] }
  0xee   : > { %1235 = vmatmul.mubr.f32.vlgmr.msra.gmra.mrb[0].mxu0 %v458_v24  ;;  %v3554_v4 = vpack.c.bf16 %v857_v60, %v853_v59  ;;  %v861_v9 = vld [vmem:[%s4447_s29 + $0x658] sm:$0xff]  ;;  %v868_v31 = vld [vmem:[%s4447_s29 + $0x690] sm:$0xff] }
  0xef   : > { %2095 = vmatmul.mubr.f32.vlgmr.msra.gmra.mrb[0].mxu1 %v458_v24  ;;  %3269 = vmatpush1.bf16.msra.mxu0 %v3268_v25  ;;  %v830_v24 = vld [vmem:[%s4447_s29 + $0x560] sm:$0xff]  ;;  %v828_v25 = vld [vmem:[%s4447_s29 + $0x550] sm:$0xff]  ;;  %v865_v10 = vld [vmem:[%s4447_s29 + $0x678] sm:$0xff] }
  0xf0   : > { %3525 = vmatpush1.bf16.msra.mxu1 %v3524_v28  ;;  %1240 = vmatprep.mubr.f32.mxu0 %v467_v29  ;;  %v835_v28 = vld [vmem:[%s4447_s29 + $0x588] sm:$0xff]  ;;  %v3544_v35 = vpack.c.bf16 %v832_v27, %v828_v25  ;;  %v3558_v18 = vpack.c.bf16 %v865_v10, %v861_v9  ;;  %v876_v45 = vld [vmem:[%s4447_s29 + $0x6d0] sm:$0xff] }
  0xf1   : > { %2100 = vmatprep.mubr.f32.mxu1 %v467_v29  ;;  %3271 = vmatprep.subr.bf16.mxu0 %v3270_v30  ;;  %v839_v29 = vld [vmem:[%s4447_s29 + $0x5a8] sm:$0xff]  ;;  %v498_v30 = vld [vmem:[%s4440_s9 + $0x140] sm:$0xff]  ;;  %v884_v59 = vld [vmem:[%s4447_s29 + $0x710] sm:$0xff] }
  0xf2   : > { %1241 = vmatmul.mubr.f32.gmra.mrb[2].mxu0 %v466_v38  ;;  %3527 = vmatprep.subr.bf16.mxu1 %v3526_v34  ;;  %v3288_v34 = vpack.c.bf16 %v830_v24, %v826_v23  ;;  %v3290_v36 = vpack.c.bf16 %v839_v29, %v835_v28  ;;  %v869_v23 = vld [vmem:[%s4447_s29 + $0x698] sm:$0xff]  ;;  %v539_v25 = vld [vmem:[%s4440_s9 + $0x288] sm:$0xff]  ;;  %v866_v29 = vld [vmem:[%s4447_s29 + $0x680] sm:$0xff] }
  0xf3   : > { %2101 = vmatmul.mubr.f32.gmra.mrb[2].mxu1 %v466_v38  ;;  %1246 = vmatprep.mubr.f32.mxu0 %v475_v41  ;;  %v838_v38 = vld [vmem:[%s4447_s29 + $0x5a0] sm:$0xff]  ;;  %v873_v24 = vld [vmem:[%s4447_s29 + $0x6b8] sm:$0xff]  ;;  %v892_v9 = vld [vmem:[%s4447_s29 + $0x750] sm:$0xff] }
  0xf4   : > { %2106 = vmatprep.mubr.f32.mxu1 %v475_v41  ;;  %3273 = vmatpush1.bf16.msra.mxu0 %v3272_v42  ;;  %v840_v41 = vld [vmem:[%s4447_s29 + $0x5b0] sm:$0xff]  ;;  %v843_v42 = vld [vmem:[%s4447_s29 + $0x5c8] sm:$0xff]  ;;  %v3562_v32 = vpack.c.bf16 %v873_v24, %v869_v23 }
  0xf5   : > { %3529 = vmatpush1.bf16.msra.mxu1 %v3528_v43  ;;  %3275 = vmatprep.subr.bf16.mxu0 %v3274_v44  ;;  %v847_v43 = vld [vmem:[%s4447_s29 + $0x5e8] sm:$0xff]  ;;  %v506_v44 = vld [vmem:[%s4440_s9 + $0x180] sm:$0xff]  ;;  %v3548_v49 = vpack.c.bf16 %v840_v41, %v836_v39  ;;  %v900_v23 = vld [vmem:[%s4447_s29 + $0x790] sm:$0xff] }
  0xf6   : > { %1247 = vmatmul.mubr.f32.gmra.mrb[4].mxu0 %v474_v52  ;;  %3531 = vmatprep.subr.bf16.mxu1 %v3530_v48  ;;  %v3292_v48 = vpack.c.bf16 %v838_v38, %v834_v37  ;;  %v3294_v50 = vpack.c.bf16 %v847_v43, %v843_v42  ;;  %v877_v37 = vld [vmem:[%s4447_s29 + $0x6d8] sm:$0xff]  ;;  %v547_v39 = vld [vmem:[%s4440_s9 + $0x2c8] sm:$0xff]  ;;  %v874_v43 = vld [vmem:[%s4447_s29 + $0x6c0] sm:$0xff] }
  0xf7   : > { %2107 = vmatmul.mubr.f32.gmra.mrb[4].mxu1 %v474_v52  ;;  %1252 = vmatprep.mubr.f32.mxu0 %v483_v55  ;;  %v846_v52 = vld [vmem:[%s4447_s29 + $0x5e0] sm:$0xff]  ;;  %v881_v38 = vld [vmem:[%s4447_s29 + $0x6f8] sm:$0xff] }
  0xf8   : > { %2112 = vmatprep.mubr.f32.mxu1 %v483_v55  ;;  %3277 = vmatpush1.bf16.msra.mxu0 %v3276_v56  ;;  %v848_v55 = vld [vmem:[%s4447_s29 + $0x5f0] sm:$0xff]  ;;  %v851_v56 = vld [vmem:[%s4447_s29 + $0x608] sm:$0xff]  ;;  %v3566_v46 = vpack.c.bf16 %v881_v38, %v877_v37 }
  0xf9   : > { %3533 = vmatpush1.bf16.msra.mxu1 %v3532_v57  ;;  %3279 = vmatprep.subr.bf16.mxu0 %v3278_v58  ;;  %v855_v57 = vld [vmem:[%s4447_s29 + $0x628] sm:$0xff]  ;;  %v514_v58 = vld [vmem:[%s4440_s9 + $0x1c0] sm:$0xff]  ;;  %v3552_v63 = vpack.c.bf16 %v848_v55, %v844_v53  ;;  %v908_v37 = vld [vmem:[%s4447_s29 + $0x7d0] sm:$0xff] }
  0xfa   : > { %1253 = vmatmul.mubr.f32.gmra.mrb[6].mxu0 %v482_v2  ;;  %3535 = vmatprep.subr.bf16.mxu1 %v3534_v62  ;;  %v3296_v62 = vpack.c.bf16 %v846_v52, %v842_v51  ;;  %v3298_v0 = vpack.c.bf16 %v855_v57, %v851_v56  ;;  %v885_v51 = vld [vmem:[%s4447_s29 + $0x718] sm:$0xff]  ;;  %v555_v53 = vld [vmem:[%s4440_s9 + $0x308] sm:$0xff]  ;;  %v882_v57 = vld [vmem:[%s4447_s29 + $0x700] sm:$0xff] }
  0xfb   : > { %2113 = vmatmul.mubr.f32.gmra.mrb[6].mxu1 %v482_v2  ;;  %1258 = vmatprep.mubr.f32.mxu0 %v491_v5  ;;  %v854_v2 = vld [vmem:[%s4447_s29 + $0x620] sm:$0xff]  ;;  %v889_v52 = vld [vmem:[%s4447_s29 + $0x738] sm:$0xff] }
  0xfc   : > { %2118 = vmatprep.mubr.f32.mxu1 %v491_v5  ;;  %3281 = vmatpush1.bf16.msra.mxu0 %v3280_v6  ;;  %v856_v5 = vld [vmem:[%s4447_s29 + $0x630] sm:$0xff]  ;;  %v859_v6 = vld [vmem:[%s4447_s29 + $0x648] sm:$0xff]  ;;  %v3570_v60 = vpack.c.bf16 %v889_v52, %v885_v51  ;;  %v594_v52 = vld [vmem:[%s4440_s9 + $0x440] sm:$0xff] }
  0xfd   : > { %3537 = vmatpush1.bf16.msra.mxu1 %v3536_v7  ;;  %3283 = vmatprep.subr.bf16.mxu0 %v3282_v8  ;;  %v863_v7 = vld [vmem:[%s4447_s29 + $0x668] sm:$0xff]  ;;  %v522_v8 = vld [vmem:[%s4440_s9 + $0x200] sm:$0xff]  ;;  %v3556_v13 = vpack.c.bf16 %v856_v5, %v852_v3 }
  0xfe   : > { %1259 = vmatmul.mubr.f32.gmra.mrb[8].mxu0 %v490_v16  ;;  %3539 = vmatprep.subr.bf16.mxu1 %v3538_v12  ;;  %v3300_v12 = vpack.c.bf16 %v854_v2, %v850_v1  ;;  %v3302_v14 = vpack.c.bf16 %v863_v7, %v859_v6  ;;  %v893_v1 = vld [vmem:[%s4447_s29 + $0x758] sm:$0xff]  ;;  %v563_v3 = vld [vmem:[%s4440_s9 + $0x348] sm:$0xff]  ;;  %v890_v7 = vld [vmem:[%s4447_s29 + $0x740] sm:$0xff] }
  0xff   : > { %2119 = vmatmul.mubr.f32.gmra.mrb[8].mxu1 %v490_v16  ;;  %1264 = vmatprep.mubr.f32.mxu0 %v499_v19  ;;  %v862_v16 = vld [vmem:[%s4447_s29 + $0x660] sm:$0xff]  ;;  %v897_v2 = vld [vmem:[%s4447_s29 + $0x778] sm:$0xff]  ;;  %v595_v51 = vld [vmem:[%s4440_s9 + $0x448] sm:$0xff] }
 0x100   : > { %2124 = vmatprep.mubr.f32.mxu1 %v499_v19  ;;  %3285 = vmatpush1.bf16.msra.mxu0 %v3284_v20  ;;  %v864_v19 = vld [vmem:[%s4447_s29 + $0x670] sm:$0xff]  ;;  %v867_v20 = vld [vmem:[%s4447_s29 + $0x688] sm:$0xff]  ;;  %v3574_v10 = vpack.c.bf16 %v897_v2, %v893_v1  ;;  %v650_v2 = vld [vmem:[%s4440_s9 + $0x600] sm:$0xf] }
 0x101   : > { %3541 = vmatpush1.bf16.msra.mxu1 %v3540_v21  ;;  %3287 = vmatprep.subr.bf16.mxu0 %v3286_v22  ;;  %v871_v21 = vld [vmem:[%s4447_s29 + $0x6a8] sm:$0xff]  ;;  %v530_v22 = vld [vmem:[%s4440_s9 + $0x240] sm:$0xff]  ;;  %v3560_v27 = vpack.c.bf16 %v864_v19, %v860_v17 }
 0x102   : > { %1265 = vmatmul.mubr.f32.gmra.mrb[10].mxu0 %v498_v30  ;;  %3543 = vmatprep.subr.bf16.mxu1 %v3542_v26  ;;  %v3304_v26 = vpack.c.bf16 %v862_v16, %v858_v15  ;;  %v3306_v28 = vpack.c.bf16 %v871_v21, %v867_v20  ;;  %v901_v15 = vld [vmem:[%s4447_s29 + $0x798] sm:$0xff]  ;;  %v571_v17 = vld [vmem:[%s4440_s9 + $0x388] sm:$0xff]  ;;  %v898_v21 = vld [vmem:[%s4447_s29 + $0x780] sm:$0xff] }
 0x103   : > { %2125 = vmatmul.mubr.f32.gmra.mrb[10].mxu1 %v498_v30  ;;  %1270 = vmatprep.mubr.f32.mxu0 %v507_v33  ;;  %v870_v30 = vld [vmem:[%s4447_s29 + $0x6a0] sm:$0xff]  ;;  %v905_v16 = vld [vmem:[%s4447_s29 + $0x7b8] sm:$0xff]  ;;  %v651_v1 = vld [vmem:[%s4440_s9 + $0x608] sm:$0xf] }
 0x104   : > { %2130 = vmatprep.mubr.f32.mxu1 %v507_v33  ;;  %3289 = vmatpush1.bf16.msra.mxu0 %v3288_v34  ;;  %v872_v33 = vld [vmem:[%s4447_s29 + $0x6b0] sm:$0xff]  ;;  %v875_v34 = vld [vmem:[%s4447_s29 + $0x6c8] sm:$0xff]  ;;  %v3578_v24 = vpack.c.bf16 %v905_v16, %v901_v15  ;;  %v469_v15 = vld [vmem:[%s4440_s9 + $0x58] sm:$0xff] }
 0x105   : > { %3545 = vmatpush1.bf16.msra.mxu1 %v3544_v35  ;;  %3291 = vmatprep.subr.bf16.mxu0 %v3290_v36  ;;  %v879_v35 = vld [vmem:[%s4447_s29 + $0x6e8] sm:$0xff]  ;;  %v538_v36 = vld [vmem:[%s4440_s9 + $0x280] sm:$0xff]  ;;  %v3564_v41 = vpack.c.bf16 %v872_v33, %v868_v31 }
 0x106   : > { %1271 = vmatmul.mubr.f32.gmra.mrb[12].mxu0 %v506_v44  ;;  %3547 = vmatprep.subr.bf16.mxu1 %v3546_v40  ;;  %v3308_v40 = vpack.c.bf16 %v870_v30, %v866_v29  ;;  %v3310_v42 = vpack.c.bf16 %v879_v35, %v875_v34  ;;  %v909_v29 = vld [vmem:[%s4447_s29 + $0x7d8] sm:$0xff]  ;;  %v579_v31 = vld [vmem:[%s4440_s9 + $0x3c8] sm:$0xff]  ;;  %v906_v35 = vld [vmem:[%s4447_s29 + $0x7c0] sm:$0xff] }
 0x107   : > { %2131 = vmatmul.mubr.f32.gmra.mrb[12].mxu1 %v506_v44  ;;  %1276 = vmatprep.mubr.f32.mxu0 %v515_v47  ;;  %v878_v44 = vld [vmem:[%s4447_s29 + $0x6e0] sm:$0xff]  ;;  %v913_v30 = vld [vmem:[%s4447_s29 + $0x7f8] sm:$0xff] }
 0x108   : > { %2136 = vmatprep.mubr.f32.mxu1 %v515_v47  ;;  %3293 = vmatpush1.bf16.msra.mxu0 %v3292_v48  ;;  %v880_v47 = vld [vmem:[%s4447_s29 + $0x6f0] sm:$0xff]  ;;  %v883_v48 = vld [vmem:[%s4447_s29 + $0x708] sm:$0xff]  ;;  %v3582_v38 = vpack.c.bf16 %v913_v30, %v909_v29 }
 0x109   : > { %3549 = vmatpush1.bf16.msra.mxu1 %v3548_v49  ;;  %3295 = vmatprep.subr.bf16.mxu0 %v3294_v50  ;;  %v887_v49 = vld [vmem:[%s4447_s29 + $0x728] sm:$0xff]  ;;  %v546_v50 = vld [vmem:[%s4440_s9 + $0x2c0] sm:$0xff]  ;;  %v3568_v55 = vpack.c.bf16 %v880_v47, %v876_v45 }
 0x10a   : > { %1277 = vmatmul.mubr.f32.gmra.mrb[14].mxu0 %v514_v58  ;;  %3551 = vmatprep.subr.bf16.mxu1 %v3550_v54  ;;  %v3312_v54 = vpack.c.bf16 %v878_v44, %v874_v43  ;;  %v3314_v56 = vpack.c.bf16 %v887_v49, %v883_v48  ;;  %v917_v43 = vld [vmem:[%s4447_s29 + $0x818] sm:$0xff]  ;;  %v587_v45 = vld [vmem:[%s4440_s9 + $0x408] sm:$0xff] }
 0x10b   : > { %2137 = vmatmul.mubr.f32.gmra.mrb[14].mxu1 %v514_v58  ;;  %1282 = vmatprep.mubr.f32.mxu0 %v523_v61  ;;  %v886_v58 = vld [vmem:[%s4447_s29 + $0x720] sm:$0xff]  ;;  %v921_v44 = vld [vmem:[%s4447_s29 + $0x838] sm:$0xff] }
 0x10c   : > { %2142 = vmatprep.mubr.f32.mxu1 %v523_v61  ;;  %3297 = vmatpush1.bf16.msra.mxu0 %v3296_v62  ;;  %v888_v61 = vld [vmem:[%s4447_s29 + $0x730] sm:$0xff]  ;;  %v891_v62 = vld [vmem:[%s4447_s29 + $0x748] sm:$0xff]  ;;  %v3586_v49 = vpack.c.bf16 %v921_v44, %v917_v43 }
 0x10d   : > { %3553 = vmatpush1.bf16.msra.mxu1 %v3552_v63  ;;  %3299 = vmatprep.subr.bf16.mxu0 %v3298_v0  ;;  %v895_v63 = vld [vmem:[%s4447_s29 + $0x768] sm:$0xff]  ;;  %v554_v0 = vld [vmem:[%s4440_s9 + $0x300] sm:$0xff]  ;;  %v3572_v5 = vpack.c.bf16 %v888_v61, %v884_v59 }
 0x10e   : > { %1283 = vmatmul.mubr.f32.gmra.mrb[16].mxu0 %v522_v8  ;;  %3555 = vmatprep.subr.bf16.mxu1 %v3554_v4  ;;  %v3316_v4 = vpack.c.bf16 %v886_v58, %v882_v57  ;;  %v3318_v6 = vpack.c.bf16 %v895_v63, %v891_v62  ;;  %v619_v57 = vld [vmem:[%s4440_s9 + $0x508] sm:$0xff]  ;;  %v618_v58 = vld [vmem:[%s4440_s9 + $0x500] sm:$0xff] }
 0x10f   : > { %2143 = vmatmul.mubr.f32.gmra.mrb[16].mxu1 %v522_v8  ;;  %1288 = vmatprep.mubr.f32.mxu0 %v531_v11  ;;  %v894_v8 = vld [vmem:[%s4447_s29 + $0x760] sm:$0xff]  ;;  %v627_v59 = vld [vmem:[%s4440_s9 + $0x548] sm:$0xff] }
 0x110   : > { %2148 = vmatprep.mubr.f32.mxu1 %v531_v11  ;;  %3301 = vmatpush1.bf16.msra.mxu0 %v3300_v12  ;;  %v896_v11 = vld [vmem:[%s4447_s29 + $0x770] sm:$0xff]  ;;  %v899_v12 = vld [vmem:[%s4447_s29 + $0x788] sm:$0xff]  ;;  %v634_v62 = vld [vmem:[%s4440_s9 + $0x580] sm:$0xff] }
 0x111   : > { %3557 = vmatpush1.bf16.msra.mxu1 %v3556_v13  ;;  %3303 = vmatprep.subr.bf16.mxu0 %v3302_v14  ;;  %v903_v13 = vld [vmem:[%s4447_s29 + $0x7a8] sm:$0xff]  ;;  %v562_v14 = vld [vmem:[%s4440_s9 + $0x340] sm:$0xff]  ;;  %v3576_v19 = vpack.c.bf16 %v896_v11, %v892_v9 }
 0x112   : > { %1289 = vmatmul.mubr.f32.gmra.mrb[18].mxu0 %v530_v22  ;;  %3559 = vmatprep.subr.bf16.mxu1 %v3558_v18  ;;  %v3320_v18 = vpack.c.bf16 %v894_v8, %v890_v7  ;;  %v3322_v20 = vpack.c.bf16 %v903_v13, %v899_v12  ;;  %v635_v61 = vld [vmem:[%s4440_s9 + $0x588] sm:$0xff]  ;;  %v920_v7 = vld [vmem:[%s4447_s29 + $0x830] sm:$0xff]  ;;  %v925_v12 = vld [vmem:[%s4447_s29 + $0x858] sm:$0xff] }
 0x113   : > { %2149 = vmatmul.mubr.f32.gmra.mrb[18].mxu1 %v530_v22  ;;  %1294 = vmatprep.mubr.f32.mxu0 %v539_v25  ;;  %v902_v22 = vld [vmem:[%s4447_s29 + $0x7a0] sm:$0xff]  ;;  %v643_v63 = vld [vmem:[%s4440_s9 + $0x5c8] sm:$0xff]  ;;  %v929_v13 = vld [vmem:[%s4447_s29 + $0x878] sm:$0xff] }
 0x114   : > { %2154 = vmatprep.mubr.f32.mxu1 %v539_v25  ;;  %3305 = vmatpush1.bf16.msra.mxu0 %v3304_v26  ;;  %v904_v25 = vld [vmem:[%s4447_s29 + $0x7b0] sm:$0xff]  ;;  %v907_v26 = vld [vmem:[%s4447_s29 + $0x7c8] sm:$0xff] }
 0x115   : > { %3561 = vmatpush1.bf16.msra.mxu1 %v3560_v27  ;;  %3307 = vmatprep.subr.bf16.mxu0 %v3306_v28  ;;  %v911_v27 = vld [vmem:[%s4447_s29 + $0x7e8] sm:$0xff]  ;;  %v570_v28 = vld [vmem:[%s4440_s9 + $0x380] sm:$0xff]  ;;  %v3580_v33 = vpack.c.bf16 %v904_v25, %v900_v23  ;;  %v933_v25 = vld [vmem:[%s4447_s29 + $0x898] sm:$0xff] }
 0x116   : > { %1295 = vmatmul.mubr.f32.gmra.mrb[20].mxu0 %v538_v36  ;;  %3563 = vmatprep.subr.bf16.mxu1 %v3562_v32  ;;  %v3324_v32 = vpack.c.bf16 %v902_v22, %v898_v21  ;;  %v3326_v34 = vpack.c.bf16 %v911_v27, %v907_v26  ;;  %v923_v8 = vld [vmem:[%s4447_s29 + $0x848] sm:$0xff]  ;;  %v928_v21 = vld [vmem:[%s4447_s29 + $0x870] sm:$0xff]  ;;  %v937_v26 = vld [vmem:[%s4447_s29 + $0x8b8] sm:$0xff] }
 0x117   : > { %2155 = vmatmul.mubr.f32.gmra.mrb[20].mxu1 %v538_v36  ;;  %1300 = vmatprep.mubr.f32.mxu0 %v547_v39  ;;  %v910_v36 = vld [vmem:[%s4447_s29 + $0x7e0] sm:$0xff]  ;;  %v927_v9 = vld [vmem:[%s4447_s29 + $0x868] sm:$0xff]  ;;  %v477_v27 = vld [vmem:[%s4440_s9 + $0x98] sm:$0xff] }
 0x118   : > { %2160 = vmatprep.mubr.f32.mxu1 %v547_v39  ;;  %3309 = vmatpush1.bf16.msra.mxu0 %v3308_v40  ;;  %v912_v39 = vld [vmem:[%s4447_s29 + $0x7f0] sm:$0xff]  ;;  %v915_v40 = vld [vmem:[%s4447_s29 + $0x808] sm:$0xff]  ;;  %v3334_v16 = vpack.c.bf16 %v927_v9, %v923_v8  ;;  %v954_v9 = vld [vmem:[%s4447_s29 + $0x940] sm:$0xff] }
 0x119   : > { %3565 = vmatpush1.bf16.msra.mxu1 %v3564_v41  ;;  %3311 = vmatprep.subr.bf16.mxu0 %v3310_v42  ;;  %v919_v41 = vld [vmem:[%s4447_s29 + $0x828] sm:$0xff]  ;;  %v578_v42 = vld [vmem:[%s4440_s9 + $0x3c0] sm:$0xff]  ;;  %v3584_v47 = vpack.c.bf16 %v912_v39, %v908_v37  ;;  %v941_v39 = vld [vmem:[%s4447_s29 + $0x8d8] sm:$0xff] }
 0x11a   : > { %1301 = vmatmul.mubr.f32.gmra.mrb[22].mxu0 %v546_v50  ;;  %3567 = vmatprep.subr.bf16.mxu1 %v3566_v46  ;;  %v3328_v46 = vpack.c.bf16 %v910_v36, %v906_v35  ;;  %v3330_v48 = vpack.c.bf16 %v919_v41, %v915_v40  ;;  %v931_v22 = vld [vmem:[%s4447_s29 + $0x888] sm:$0xff]  ;;  %v936_v35 = vld [vmem:[%s4447_s29 + $0x8b0] sm:$0xff]  ;;  %v945_v40 = vld [vmem:[%s4447_s29 + $0x8f8] sm:$0xff] }
 0x11b   : > { %2161 = vmatmul.mubr.f32.gmra.mrb[22].mxu1 %v546_v50  ;;  %1306 = vmatprep.mubr.f32.mxu0 %v555_v53  ;;  %v586_v50 = vld [vmem:[%s4440_s9 + $0x400] sm:$0xff]  ;;  %v935_v23 = vld [vmem:[%s4447_s29 + $0x8a8] sm:$0xff]  ;;  %v485_v41 = vld [vmem:[%s4440_s9 + $0xd8] sm:$0xff] }
 0x11c   : > { %2166 = vmatprep.mubr.f32.mxu1 %v555_v53  ;;  %3313 = vmatpush1.bf16.msra.mxu0 %v3312_v54  ;;  %v603_v53 = vld [vmem:[%s4440_s9 + $0x488] sm:$0xff]  ;;  %v602_v54 = vld [vmem:[%s4440_s9 + $0x480] sm:$0xff]  ;;  %v3338_v30 = vpack.c.bf16 %v935_v23, %v931_v22 }
 0x11d   : > { %3569 = vmatpush1.bf16.msra.mxu1 %v3568_v55  ;;  %3315 = vmatprep.subr.bf16.mxu0 %v3314_v56  ;;  %v611_v55 = vld [vmem:[%s4440_s9 + $0x4c8] sm:$0xff]  ;;  %v610_v56 = vld [vmem:[%s4440_s9 + $0x4c0] sm:$0xff] }
 0x11e   : > { %1307 = vmatmul.mubr.f32.gmra.mrb[24].mxu0 %v554_v0  ;;  %3571 = vmatprep.subr.bf16.mxu1 %v3570_v60  ;;  %v626_v60 = vld [vmem:[%s4440_s9 + $0x540] sm:$0xff]  ;;  %v939_v36 = vld [vmem:[%s4447_s29 + $0x8c8] sm:$0xff] }
 0x11f   : > { %2167 = vmatmul.mubr.f32.gmra.mrb[24].mxu1 %v554_v0  ;;  %1312 = vmatprep.mubr.f32.mxu0 %v563_v3  ;;  %v642_v0 = vld [vmem:[%s4440_s9 + $0x5c0] sm:$0xff]  ;;  %v943_v37 = vld [vmem:[%s4447_s29 + $0x8e8] sm:$0xff] }
 0x120   : > { %2172 = vmatprep.mubr.f32.mxu1 %v563_v3  ;;  %3317 = vmatpush1.bf16.msra.mxu0 %v3316_v4  ;;  %v461_v3 = vld [vmem:[%s4440_s9 + $0x18] sm:$0xff]  ;;  %v914_v4 = vld [vmem:[%s4447_s29 + $0x800] sm:$0xff]  ;;  %v3342_v44 = vpack.c.bf16 %v943_v37, %v939_v36 }
 0x121   : > { %3573 = vmatpush1.bf16.msra.mxu1 %v3572_v5  ;;  %3319 = vmatprep.subr.bf16.mxu0 %v3318_v6  ;;  %v918_v5 = vld [vmem:[%s4447_s29 + $0x820] sm:$0xff]  ;;  %v916_v6 = vld [vmem:[%s4447_s29 + $0x810] sm:$0xff] }
 0x122   : > { %1313 = vmatmul.mubr.f32.gmra.mrb[26].mxu0 %v562_v14  ;;  %3575 = vmatprep.subr.bf16.mxu1 %v3574_v10  ;;  %v460_v10 = vld [vmem:[%s4440_s9 + $0x10] sm:$0xff]  ;;  %v3332_v11 = vpack.c.bf16 %v918_v5, %v914_v4  ;;  %v961_v4 = vld [vmem:[%s4447_s29 + $0x978] sm:$0xff]  ;;  %v962_v23 = vld [vmem:[%s4447_s29 + $0x980] sm:$0xff] }
 0x123   : > { %2173 = vmatmul.mubr.f32.gmra.mrb[26].mxu1 %v562_v14  ;;  %1318 = vmatprep.mubr.f32.mxu0 %v571_v17  ;;  %v3588_v14 = vpack.c.bf16 %v920_v7, %v916_v6  ;;  %v501_v5 = vld [vmem:[%s4440_s9 + $0x158] sm:$0xff]  ;;  %v970_v37 = vld [vmem:[%s4447_s29 + $0x9c0] sm:$0xff] }
 0x124   : > { %2178 = vmatprep.mubr.f32.mxu1 %v571_v17  ;;  %3321 = vmatpush1.bf16.msra.mxu0 %v3320_v18  ;;  %v922_v17 = vld [vmem:[%s4447_s29 + $0x840] sm:$0xff] }
 0x125   : > { %3577 = vmatpush1.bf16.msra.mxu1 %v3576_v19  ;;  %3323 = vmatprep.subr.bf16.mxu0 %v3322_v20  ;;  %v926_v18 = vld [vmem:[%s4447_s29 + $0x860] sm:$0xff]  ;;  %v924_v19 = vld [vmem:[%s4447_s29 + $0x850] sm:$0xff]  ;;  %v3590_v20 = vpack.c.bf16 %v929_v13, %v925_v12 }
 0x126   : > { %1319 = vmatmul.mubr.f32.gmra.mrb[28].mxu0 %v570_v28  ;;  %3579 = vmatprep.subr.bf16.mxu1 %v3578_v24  ;;  %v468_v24 = vld [vmem:[%s4440_s9 + $0x50] sm:$0xff]  ;;  %v3592_v29 = vpack.c.bf16 %v928_v21, %v924_v19  ;;  %v509_v19 = vld [vmem:[%s4440_s9 + $0x198] sm:$0xff] }
 0x127   : > { %2179 = vmatmul.mubr.f32.gmra.mrb[28].mxu1 %v570_v28  ;;  %1324 = vmatprep.mubr.f32.mxu0 %v579_v31  ;;  %v3336_v28 = vpack.c.bf16 %v926_v18, %v922_v17  ;;  %v960_v13 = vld [vmem:[%s4447_s29 + $0x970] sm:$0xff]  ;;  %v965_v17 = vld [vmem:[%s4447_s29 + $0x998] sm:$0xff] }
 0x128   : > { %2184 = vmatprep.mubr.f32.mxu1 %v579_v31  ;;  %3325 = vmatpush1.bf16.msra.mxu0 %v3324_v32  ;;  %v930_v31 = vld [vmem:[%s4447_s29 + $0x880] sm:$0xff]  ;;  %v969_v18 = vld [vmem:[%s4447_s29 + $0x9b8] sm:$0xff] }
 0x129   : > { %3581 = vmatpush1.bf16.msra.mxu1 %v3580_v33  ;;  %3327 = vmatprep.subr.bf16.mxu0 %v3326_v34  ;;  %v934_v32 = vld [vmem:[%s4447_s29 + $0x8a0] sm:$0xff]  ;;  %v932_v33 = vld [vmem:[%s4447_s29 + $0x890] sm:$0xff]  ;;  %v3594_v34 = vpack.c.bf16 %v937_v26, %v933_v25  ;;  %v3610_v26 = vpack.c.bf16 %v969_v18, %v965_v17 }
 0x12a   : > { %1325 = vmatmul.mubr.f32.gmra.mrb[30].mxu0 %v578_v42  ;;  %3583 = vmatprep.subr.bf16.mxu1 %v3582_v38  ;;  %v476_v38 = vld [vmem:[%s4440_s9 + $0x90] sm:$0xff]  ;;  %v3596_v43 = vpack.c.bf16 %v936_v35, %v932_v33  ;;  %v517_v33 = vld [vmem:[%s4440_s9 + $0x1d8] sm:$0xff] }
 0x12b   : > { %2185 = vmatmul.mubr.f32.gmra.mrb[30].mxu1 %v578_v42  ;;  %1330 = vmatprep.mubr.f32.mxu0 %v587_v45  ;;  %v3340_v42 = vpack.c.bf16 %v934_v32, %v930_v31  ;;  %v964_v25 = vld [vmem:[%s4447_s29 + $0x990] sm:$0xff]  ;;  %v973_v31 = vld [vmem:[%s4447_s29 + $0x9d8] sm:$0xff] }
 0x12c   : > { %2190 = vmatprep.mubr.f32.mxu1 %v587_v45  ;;  %3329 = vmatpush1.bf16.msra.mxu0 %v3328_v46  ;;  %v938_v45 = vld [vmem:[%s4447_s29 + $0x8c0] sm:$0xff]  ;;  %v977_v32 = vld [vmem:[%s4447_s29 + $0x9f8] sm:$0xff]  ;;  %v996_v17 = vld [vmem:[%s4447_s29 + $0xa90] sm:$0xff] }
 0x12d   : > { %3585 = vmatpush1.bf16.msra.mxu1 %v3584_v47  ;;  %3331 = vmatprep.subr.bf16.mxu0 %v3330_v48  ;;  %v942_v46 = vld [vmem:[%s4447_s29 + $0x8e0] sm:$0xff]  ;;  %v940_v47 = vld [vmem:[%s4447_s29 + $0x8d0] sm:$0xff]  ;;  %v3598_v48 = vpack.c.bf16 %v945_v40, %v941_v39  ;;  %v3614_v40 = vpack.c.bf16 %v977_v32, %v973_v31 }
 0x12e   : > { %1331 = vmatmul.mubr.f32.gmra.mrb[32].mxu0 %v586_v50  ;;  %3587 = vmatprep.subr.bf16.mxu1 %v3586_v49  ;;  %v944_v49 = vld [vmem:[%s4447_s29 + $0x8f0] sm:$0xff] }
 0x12f   : > { %2191 = vmatmul.mubr.f32.gmra.mrb[32].mxu1 %v586_v50  ;;  %1336 = vmatprep.mubr.f32.mxu0 %v595_v51  ;;  %v947_v50 = vld [vmem:[%s4447_s29 + $0x908] sm:$0xff]  ;;  %v972_v39 = vld [vmem:[%s4447_s29 + $0x9d0] sm:$0xff] }
 0x130   : > { %2196 = vmatprep.mubr.f32.mxu1 %v595_v51  ;;  %v951_v51 = vld [vmem:[%s4447_s29 + $0x928] sm:$0xff]  ;;  %v1004_v31 = vld [vmem:[%s4447_s29 + $0xad0] sm:$0xff] }
 0x132   : > { %1337 = vmatmul.mubr.f32.gmra.mrb[34].mxu0 %v594_v52 }
 0x133   : > { %2197 = vmatmul.mubr.f32.gmra.mrb[34].mxu1 %v594_v52  ;;  %1342 = vmatprep.mubr.f32.mxu0 %v603_v53  ;;  %v484_v52 = vld [vmem:[%s4440_s9 + $0xd0] sm:$0xff] }
 0x134   : > { %2202 = vmatprep.mubr.f32.mxu1 %v603_v53  ;;  %v949_v53 = vld [vmem:[%s4447_s29 + $0x918] sm:$0xff] }
 0x136   : > { %1343 = vmatmul.mubr.f32.gmra.mrb[36].mxu0 %v602_v54 }
 0x137   : > { %2203 = vmatmul.mubr.f32.gmra.mrb[36].mxu1 %v602_v54  ;;  %1348 = vmatprep.mubr.f32.mxu0 %v611_v55  ;;  %v953_v54 = vld [vmem:[%s4447_s29 + $0x938] sm:$0xff] }
 0x138   : > { %2208 = vmatprep.mubr.f32.mxu1 %v611_v55  ;;  %v493_v55 = vld [vmem:[%s4440_s9 + $0x118] sm:$0xff] }
 0x13a   : > { %1349 = vmatmul.mubr.f32.gmra.mrb[38].mxu0 %v610_v56 }
 0x13b   : > { %2209 = vmatmul.mubr.f32.gmra.mrb[38].mxu1 %v610_v56  ;;  %1354 = vmatprep.mubr.f32.mxu0 %v619_v57  ;;  %v3344_v56 = vpack.c.bf16 %v942_v46, %v938_v45  ;;  %v981_v45 = vld [vmem:[%s4447_s29 + $0xa18] sm:$0xff] }
 0x13c   : > { %2214 = vmatprep.mubr.f32.mxu1 %v619_v57  ;;  %v3600_v57 = vpack.c.bf16 %v944_v49, %v940_v47  ;;  %v985_v46 = vld [vmem:[%s4447_s29 + $0xa38] sm:$0xff] }
 0x13d   : > { %v525_v47 = vld [vmem:[%s4440_s9 + $0x218] sm:$0xff] }
 0x13e   : > { %1355 = vmatmul.mubr.f32.gmra.mrb[40].mxu0 %v618_v58 }
 0x13f   : > { %2215 = vmatmul.mubr.f32.gmra.mrb[40].mxu1 %v618_v58  ;;  %1360 = vmatprep.mubr.f32.mxu0 %v627_v59  ;;  %v3346_v58 = vpack.c.bf16 %v951_v51, %v947_v50  ;;  %v978_v51 = vld [vmem:[%s4447_s29 + $0xa00] sm:$0xff] }
 0x140   : > { %2220 = vmatprep.mubr.f32.mxu1 %v627_v59  ;;  %v946_v59 = vld [vmem:[%s4447_s29 + $0x900] sm:$0xff] }
 0x142   : > { %1361 = vmatmul.mubr.f32.gmra.mrb[42].mxu0 %v626_v60 }
 0x143   : > { %2221 = vmatmul.mubr.f32.gmra.mrb[42].mxu1 %v626_v60  ;;  %1366 = vmatprep.mubr.f32.mxu0 %v635_v61  ;;  %v950_v60 = vld [vmem:[%s4447_s29 + $0x920] sm:$0xff] }
 0x144   : > { %2226 = vmatprep.mubr.f32.mxu1 %v635_v61  ;;  %v948_v61 = vld [vmem:[%s4447_s29 + $0x910] sm:$0xff]  ;;  %v3348_v6 = vpack.c.bf16 %v950_v60, %v946_v59  ;;  %v989_v59 = vld [vmem:[%s4447_s29 + $0xa58] sm:$0xff] }
 0x145   : > { %v993_v60 = vld [vmem:[%s4447_s29 + $0xa78] sm:$0xff] }
 0x146   : > { %1367 = vmatmul.mubr.f32.gmra.mrb[44].mxu0 %v634_v62 }
 0x147   : > { %2227 = vmatmul.mubr.f32.gmra.mrb[44].mxu1 %v634_v62  ;;  %1372 = vmatprep.mubr.f32.mxu0 %v643_v63  ;;  %v3602_v62 = vpack.c.bf16 %v953_v54, %v949_v53  ;;  %v980_v53 = vld [vmem:[%s4447_s29 + $0xa10] sm:$0xff]  ;;  %v3618_v54 = vpack.c.bf16 %v985_v46, %v981_v45 }
 0x148   : > { %2232 = vmatprep.mubr.f32.mxu1 %v643_v63  ;;  %v952_v63 = vld [vmem:[%s4447_s29 + $0x930] sm:$0xff] }
 0x149   : > { %v3604_v7 = vpack.c.bf16 %v952_v63, %v948_v61  ;;  %v533_v61 = vld [vmem:[%s4440_s9 + $0x258] sm:$0xff]  ;;  %v1012_v45 = vld [vmem:[%s4447_s29 + $0xb10] sm:$0xff] }
 0x14a   : > { %1373 = vmatmul.mubr.f32.gmra.mrb[46].mxu0 %v642_v0 }
 0x14b   : > { %2233 = vmatmul.mubr.f32.gmra.mrb[46].mxu1 %v642_v0  ;;  %1378 = vmatprep.mubr.f32.mxu0 %v651_v1  ;;  %v955_v0 = vld [vmem:[%s4447_s29 + $0x948] sm:$0xff] }
 0x14c   : > { %2238 = vmatprep.mubr.f32.mxu1 %v651_v1  ;;  %v959_v1 = vld [vmem:[%s4447_s29 + $0x968] sm:$0xff] }
 0x14d   : > { %v3350_v8 = vpack.c.bf16 %v959_v1, %v955_v0  ;;  %v986_v1 = vld [vmem:[%s4447_s29 + $0xa40] sm:$0xff] }
 0x14e   : > { %1379 = vmatmul.mubr.f32.gmra.mrb[48].mxu0 %v650_v2 }
 0x14f   : > { %2239 = vmatmul.mubr.f32.gmra.mrb[48].mxu1 %v650_v2  ;;  %1449 = vmatprep.mubr.f32.mxu0 %v461_v3  ;;  %v492_v2 = vld [vmem:[%s4440_s9 + $0x110] sm:$0xff] }
 0x150   : > { %2309 = vmatprep.mubr.f32.mxu1 %v461_v3  ;;  %v957_v3 = vld [vmem:[%s4447_s29 + $0x958] sm:$0xff] }
 0x151   : > { %v3606_v12 = vpack.c.bf16 %v961_v4, %v957_v3  ;;  %v988_v3 = vld [vmem:[%s4447_s29 + $0xa50] sm:$0xff]  ;;  %v3622_v4 = vpack.c.bf16 %v993_v60, %v989_v59 }
 0x152   : > { %1450 = vmatmul.mubr.f32.vlgmr.msra.gmra.mrb[0].mxu0 %v460_v10  ;;  %v1020_v59 = vld [vmem:[%s4447_s29 + $0xb50] sm:$0xff] }
 0x153   : > { %2310 = vmatmul.mubr.f32.vlgmr.msra.gmra.mrb[0].mxu1 %v460_v10  ;;  %3333 = vmatpush1.bf16.msra.mxu0 %v3332_v11  ;;  %v958_v10 = vld [vmem:[%s4447_s29 + $0x960] sm:$0xff]  ;;  %v956_v11 = vld [vmem:[%s4447_s29 + $0x950] sm:$0xff] }
 0x154   : > { %3589 = vmatpush1.bf16.msra.mxu1 %v3588_v14  ;;  %1455 = vmatprep.mubr.f32.mxu0 %v469_v15  ;;  %v963_v14 = vld [vmem:[%s4447_s29 + $0x988] sm:$0xff]  ;;  %v3608_v21 = vpack.c.bf16 %v960_v13, %v956_v11  ;;  %v541_v11 = vld [vmem:[%s4440_s9 + $0x298] sm:$0xff] }
 0x155   : > { %2315 = vmatprep.mubr.f32.mxu1 %v469_v15  ;;  %3335 = vmatprep.subr.bf16.mxu0 %v3334_v16  ;;  %v967_v15 = vld [vmem:[%s4447_s29 + $0x9a8] sm:$0xff]  ;;  %v500_v16 = vld [vmem:[%s4440_s9 + $0x150] sm:$0xff] }
 0x156   : > { %1456 = vmatmul.mubr.f32.gmra.mrb[2].mxu0 %v468_v24  ;;  %3591 = vmatprep.subr.bf16.mxu1 %v3590_v20  ;;  %v3352_v20 = vpack.c.bf16 %v958_v10, %v954_v9  ;;  %v3354_v22 = vpack.c.bf16 %v967_v15, %v963_v14  ;;  %v997_v9 = vld [vmem:[%s4447_s29 + $0xa98] sm:$0xff]  ;;  %v994_v15 = vld [vmem:[%s4447_s29 + $0xa80] sm:$0xff] }
 0x157   : > { %2316 = vmatmul.mubr.f32.gmra.mrb[2].mxu1 %v468_v24  ;;  %1461 = vmatprep.mubr.f32.mxu0 %v477_v27  ;;  %v966_v24 = vld [vmem:[%s4447_s29 + $0x9a0] sm:$0xff]  ;;  %v1001_v10 = vld [vmem:[%s4447_s29 + $0xab8] sm:$0xff] }
 0x158   : > { %2321 = vmatprep.mubr.f32.mxu1 %v477_v27  ;;  %3337 = vmatpush1.bf16.msra.mxu0 %v3336_v28  ;;  %v968_v27 = vld [vmem:[%s4447_s29 + $0x9b0] sm:$0xff]  ;;  %v971_v28 = vld [vmem:[%s4447_s29 + $0x9c8] sm:$0xff]  ;;  %v3626_v18 = vpack.c.bf16 %v1001_v10, %v997_v9 }
 0x159   : > { %3593 = vmatpush1.bf16.msra.mxu1 %v3592_v29  ;;  %3339 = vmatprep.subr.bf16.mxu0 %v3338_v30  ;;  %v975_v29 = vld [vmem:[%s4447_s29 + $0x9e8] sm:$0xff]  ;;  %v508_v30 = vld [vmem:[%s4440_s9 + $0x190] sm:$0xff]  ;;  %v3612_v35 = vpack.c.bf16 %v968_v27, %v964_v25  ;;  %v549_v25 = vld [vmem:[%s4440_s9 + $0x2d8] sm:$0xff] }
 0x15a   : > { %1462 = vmatmul.mubr.f32.gmra.mrb[4].mxu0 %v476_v38  ;;  %3595 = vmatprep.subr.bf16.mxu1 %v3594_v34  ;;  %v3356_v34 = vpack.c.bf16 %v966_v24, %v962_v23  ;;  %v3358_v36 = vpack.c.bf16 %v975_v29, %v971_v28  ;;  %v1005_v23 = vld [vmem:[%s4447_s29 + $0xad8] sm:$0xff]  ;;  %v1002_v29 = vld [vmem:[%s4447_s29 + $0xac0] sm:$0xff]  ;;  %v1028_v9 = vld [vmem:[%s4447_s29 + $0xb90] sm:$0xff] }
 0x15b   : > { %2322 = vmatmul.mubr.f32.gmra.mrb[4].mxu1 %v476_v38  ;;  %1467 = vmatprep.mubr.f32.mxu0 %v485_v41  ;;  %v974_v38 = vld [vmem:[%s4447_s29 + $0x9e0] sm:$0xff]  ;;  %v1009_v24 = vld [vmem:[%s4447_s29 + $0xaf8] sm:$0xff] }
 0x15c   : > { %2327 = vmatprep.mubr.f32.mxu1 %v485_v41  ;;  %3341 = vmatpush1.bf16.msra.mxu0 %v3340_v42  ;;  %v976_v41 = vld [vmem:[%s4447_s29 + $0x9f0] sm:$0xff]  ;;  %v979_v42 = vld [vmem:[%s4447_s29 + $0xa08] sm:$0xff]  ;;  %v3630_v32 = vpack.c.bf16 %v1009_v24, %v1005_v23 }
 0x15d   : > { %3597 = vmatpush1.bf16.msra.mxu1 %v3596_v43  ;;  %3343 = vmatprep.subr.bf16.mxu0 %v3342_v44  ;;  %v983_v43 = vld [vmem:[%s4447_s29 + $0xa28] sm:$0xff]  ;;  %v516_v44 = vld [vmem:[%s4440_s9 + $0x1d0] sm:$0xff]  ;;  %v3616_v49 = vpack.c.bf16 %v976_v41, %v972_v39  ;;  %v557_v39 = vld [vmem:[%s4440_s9 + $0x318] sm:$0xff] }
 0x15e   : > { %1468 = vmatmul.mubr.f32.gmra.mrb[6].mxu0 %v484_v52  ;;  %3599 = vmatprep.subr.bf16.mxu1 %v3598_v48  ;;  %v3360_v48 = vpack.c.bf16 %v974_v38, %v970_v37  ;;  %v3362_v50 = vpack.c.bf16 %v983_v43, %v979_v42  ;;  %v1013_v37 = vld [vmem:[%s4447_s29 + $0xb18] sm:$0xff]  ;;  %v1010_v43 = vld [vmem:[%s4447_s29 + $0xb00] sm:$0xff]  ;;  %v1036_v23 = vld [vmem:[%s4447_s29 + $0xbd0] sm:$0xff] }
 0x15f   : > { %2328 = vmatmul.mubr.f32.gmra.mrb[6].mxu1 %v484_v52  ;;  %1473 = vmatprep.mubr.f32.mxu0 %v493_v55  ;;  %v982_v52 = vld [vmem:[%s4447_s29 + $0xa20] sm:$0xff]  ;;  %v1017_v38 = vld [vmem:[%s4447_s29 + $0xb38] sm:$0xff] }
 0x160   : > { %2333 = vmatprep.mubr.f32.mxu1 %v493_v55  ;;  %3345 = vmatpush1.bf16.msra.mxu0 %v3344_v56  ;;  %v984_v55 = vld [vmem:[%s4447_s29 + $0xa30] sm:$0xff]  ;;  %v987_v56 = vld [vmem:[%s4447_s29 + $0xa48] sm:$0xff]  ;;  %v3634_v46 = vpack.c.bf16 %v1017_v38, %v1013_v37  ;;  %v597_v37 = vld [vmem:[%s4440_s9 + $0x458] sm:$0xff] }
 0x161   : > { %3601 = vmatpush1.bf16.msra.mxu1 %v3600_v57  ;;  %3347 = vmatprep.subr.bf16.mxu0 %v3346_v58  ;;  %v991_v57 = vld [vmem:[%s4447_s29 + $0xa68] sm:$0xff]  ;;  %v524_v58 = vld [vmem:[%s4440_s9 + $0x210] sm:$0xff]  ;;  %v3620_v63 = vpack.c.bf16 %v984_v55, %v980_v53  ;;  %v565_v53 = vld [vmem:[%s4440_s9 + $0x358] sm:$0xff] }
 0x162   : > { %1474 = vmatmul.mubr.f32.gmra.mrb[8].mxu0 %v492_v2  ;;  %3603 = vmatprep.subr.bf16.mxu1 %v3602_v62  ;;  %v3364_v62 = vpack.c.bf16 %v982_v52, %v978_v51  ;;  %v3366_v0 = vpack.c.bf16 %v991_v57, %v987_v56  ;;  %v1021_v51 = vld [vmem:[%s4447_s29 + $0xb58] sm:$0xff]  ;;  %v1018_v57 = vld [vmem:[%s4447_s29 + $0xb40] sm:$0xff]  ;;  %v596_v38 = vld [vmem:[%s4440_s9 + $0x450] sm:$0xff] }
 0x163   : > { %2334 = vmatmul.mubr.f32.gmra.mrb[8].mxu1 %v492_v2  ;;  %1479 = vmatprep.mubr.f32.mxu0 %v501_v5  ;;  %v990_v2 = vld [vmem:[%s4447_s29 + $0xa60] sm:$0xff]  ;;  %v1025_v52 = vld [vmem:[%s4447_s29 + $0xb78] sm:$0xff] }
 0x164   : > { %2339 = vmatprep.mubr.f32.mxu1 %v501_v5  ;;  %3349 = vmatpush1.bf16.msra.mxu0 %v3348_v6  ;;  %v992_v5 = vld [vmem:[%s4447_s29 + $0xa70] sm:$0xff]  ;;  %v995_v6 = vld [vmem:[%s4447_s29 + $0xa88] sm:$0xff]  ;;  %v3638_v60 = vpack.c.bf16 %v1025_v52, %v1021_v51  ;;  %v653_v51 = vld [vmem:[%s4440_s9 + $0x618] sm:$0xf] }
 0x165   : > { %3605 = vmatpush1.bf16.msra.mxu1 %v3604_v7  ;;  %3351 = vmatprep.subr.bf16.mxu0 %v3350_v8  ;;  %v999_v7 = vld [vmem:[%s4447_s29 + $0xaa8] sm:$0xff]  ;;  %v532_v8 = vld [vmem:[%s4440_s9 + $0x250] sm:$0xff]  ;;  %v3624_v13 = vpack.c.bf16 %v992_v5, %v988_v3  ;;  %v573_v3 = vld [vmem:[%s4440_s9 + $0x398] sm:$0xff] }
 0x166   : > { %1480 = vmatmul.mubr.f32.gmra.mrb[10].mxu0 %v500_v16  ;;  %3607 = vmatprep.subr.bf16.mxu1 %v3606_v12  ;;  %v3368_v12 = vpack.c.bf16 %v990_v2, %v986_v1  ;;  %v3370_v14 = vpack.c.bf16 %v999_v7, %v995_v6  ;;  %v1029_v1 = vld [vmem:[%s4447_s29 + $0xb98] sm:$0xff]  ;;  %v1026_v7 = vld [vmem:[%s4447_s29 + $0xb80] sm:$0xff]  ;;  %v652_v52 = vld [vmem:[%s4440_s9 + $0x610] sm:$0xf] }
 0x167   : > { %2340 = vmatmul.mubr.f32.gmra.mrb[10].mxu1 %v500_v16  ;;  %1485 = vmatprep.mubr.f32.mxu0 %v509_v19  ;;  %v998_v16 = vld [vmem:[%s4447_s29 + $0xaa0] sm:$0xff]  ;;  %v1033_v2 = vld [vmem:[%s4447_s29 + $0xbb8] sm:$0xff] }
 0x168   : > { %2345 = vmatprep.mubr.f32.mxu1 %v509_v19  ;;  %3353 = vmatpush1.bf16.msra.mxu0 %v3352_v20  ;;  %v1000_v19 = vld [vmem:[%s4447_s29 + $0xab0] sm:$0xff]  ;;  %v1003_v20 = vld [vmem:[%s4447_s29 + $0xac8] sm:$0xff]  ;;  %v3642_v10 = vpack.c.bf16 %v1033_v2, %v1029_v1 }
 0x169   : > { %3609 = vmatpush1.bf16.msra.mxu1 %v3608_v21  ;;  %3355 = vmatprep.subr.bf16.mxu0 %v3354_v22  ;;  %v1007_v21 = vld [vmem:[%s4447_s29 + $0xae8] sm:$0xff]  ;;  %v540_v22 = vld [vmem:[%s4440_s9 + $0x290] sm:$0xff]  ;;  %v3628_v27 = vpack.c.bf16 %v1000_v19, %v996_v17  ;;  %v581_v17 = vld [vmem:[%s4440_s9 + $0x3d8] sm:$0xff] }
 0x16a   : > { %1486 = vmatmul.mubr.f32.gmra.mrb[12].mxu0 %v508_v30  ;;  %3611 = vmatprep.subr.bf16.mxu1 %v3610_v26  ;;  %v3372_v26 = vpack.c.bf16 %v998_v16, %v994_v15  ;;  %v3374_v28 = vpack.c.bf16 %v1007_v21, %v1003_v20  ;;  %v1037_v15 = vld [vmem:[%s4447_s29 + $0xbd8] sm:$0xff]  ;;  %v1034_v21 = vld [vmem:[%s4447_s29 + $0xbc0] sm:$0xff]  ;;  %v471_v1 = vld [vmem:[%s4440_s9 + $0x68] sm:$0xff] }
 0x16b   : > { %2346 = vmatmul.mubr.f32.gmra.mrb[12].mxu1 %v508_v30  ;;  %1491 = vmatprep.mubr.f32.mxu0 %v517_v33  ;;  %v1006_v30 = vld [vmem:[%s4447_s29 + $0xae0] sm:$0xff]  ;;  %v1041_v16 = vld [vmem:[%s4447_s29 + $0xbf8] sm:$0xff] }
 0x16c   : > { %2351 = vmatprep.mubr.f32.mxu1 %v517_v33  ;;  %3357 = vmatpush1.bf16.msra.mxu0 %v3356_v34  ;;  %v1008_v33 = vld [vmem:[%s4447_s29 + $0xaf0] sm:$0xff]  ;;  %v1011_v34 = vld [vmem:[%s4447_s29 + $0xb08] sm:$0xff]  ;;  %v3646_v24 = vpack.c.bf16 %v1041_v16, %v1037_v15 }
 0x16d   : > { %3613 = vmatpush1.bf16.msra.mxu1 %v3612_v35  ;;  %3359 = vmatprep.subr.bf16.mxu0 %v3358_v36  ;;  %v1015_v35 = vld [vmem:[%s4447_s29 + $0xb28] sm:$0xff]  ;;  %v548_v36 = vld [vmem:[%s4440_s9 + $0x2d0] sm:$0xff]  ;;  %v3632_v41 = vpack.c.bf16 %v1008_v33, %v1004_v31  ;;  %v589_v31 = vld [vmem:[%s4440_s9 + $0x418] sm:$0xff] }
 0x16e   : > { %1492 = vmatmul.mubr.f32.gmra.mrb[14].mxu0 %v516_v44  ;;  %3615 = vmatprep.subr.bf16.mxu1 %v3614_v40  ;;  %v3376_v40 = vpack.c.bf16 %v1006_v30, %v1002_v29  ;;  %v3378_v42 = vpack.c.bf16 %v1015_v35, %v1011_v34  ;;  %v1045_v29 = vld [vmem:[%s4447_s29 + $0xc18] sm:$0xff] }
 0x16f   : > { %2352 = vmatmul.mubr.f32.gmra.mrb[14].mxu1 %v516_v44  ;;  %1497 = vmatprep.mubr.f32.mxu0 %v525_v47  ;;  %v1014_v44 = vld [vmem:[%s4447_s29 + $0xb20] sm:$0xff]  ;;  %v1049_v30 = vld [vmem:[%s4447_s29 + $0xc38] sm:$0xff] }
 0x170   : > { %2357 = vmatprep.mubr.f32.mxu1 %v525_v47  ;;  %3361 = vmatpush1.bf16.msra.mxu0 %v3360_v48  ;;  %v1016_v47 = vld [vmem:[%s4447_s29 + $0xb30] sm:$0xff]  ;;  %v1019_v48 = vld [vmem:[%s4447_s29 + $0xb48] sm:$0xff]  ;;  %v3650_v35 = vpack.c.bf16 %v1049_v30, %v1045_v29 }
 0x171   : > { %3617 = vmatpush1.bf16.msra.mxu1 %v3616_v49  ;;  %3363 = vmatprep.subr.bf16.mxu0 %v3362_v50  ;;  %v1023_v49 = vld [vmem:[%s4447_s29 + $0xb68] sm:$0xff]  ;;  %v556_v50 = vld [vmem:[%s4440_s9 + $0x310] sm:$0xff]  ;;  %v3636_v55 = vpack.c.bf16 %v1016_v47, %v1012_v45  ;;  %v629_v45 = vld [vmem:[%s4440_s9 + $0x558] sm:$0xff] }
 0x172   : > { %1498 = vmatmul.mubr.f32.gmra.mrb[16].mxu0 %v524_v58  ;;  %3619 = vmatprep.subr.bf16.mxu1 %v3618_v54  ;;  %v3380_v54 = vpack.c.bf16 %v1014_v44, %v1010_v43  ;;  %v3382_v56 = vpack.c.bf16 %v1023_v49, %v1019_v48  ;;  %v621_v43 = vld [vmem:[%s4440_s9 + $0x518] sm:$0xff]  ;;  %v620_v44 = vld [vmem:[%s4440_s9 + $0x510] sm:$0xff] }
 0x173   : > { %2358 = vmatmul.mubr.f32.gmra.mrb[16].mxu1 %v524_v58  ;;  %1503 = vmatprep.mubr.f32.mxu0 %v533_v61  ;;  %v1022_v58 = vld [vmem:[%s4447_s29 + $0xb60] sm:$0xff]  ;;  %v637_v47 = vld [vmem:[%s4440_s9 + $0x598] sm:$0xff]  ;;  %v636_v48 = vld [vmem:[%s4440_s9 + $0x590] sm:$0xff] }
 0x174   : > { %2363 = vmatprep.mubr.f32.mxu1 %v533_v61  ;;  %3365 = vmatpush1.bf16.msra.mxu0 %v3364_v62  ;;  %v1024_v61 = vld [vmem:[%s4447_s29 + $0xb70] sm:$0xff]  ;;  %v1027_v62 = vld [vmem:[%s4447_s29 + $0xb88] sm:$0xff]  ;;  %v645_v49 = vld [vmem:[%s4440_s9 + $0x5d8] sm:$0xff] }
 0x175   : > { %3621 = vmatpush1.bf16.msra.mxu1 %v3620_v63  ;;  %3367 = vmatprep.subr.bf16.mxu0 %v3366_v0  ;;  %v1031_v63 = vld [vmem:[%s4447_s29 + $0xba8] sm:$0xff]  ;;  %v564_v0 = vld [vmem:[%s4440_s9 + $0x350] sm:$0xff]  ;;  %v3640_v5 = vpack.c.bf16 %v1024_v61, %v1020_v59 }
 0x176   : > { %1504 = vmatmul.mubr.f32.gmra.mrb[18].mxu0 %v532_v8  ;;  %3623 = vmatprep.subr.bf16.mxu1 %v3622_v4  ;;  %v3384_v4 = vpack.c.bf16 %v1022_v58, %v1018_v57  ;;  %v3386_v6 = vpack.c.bf16 %v1031_v63, %v1027_v62  ;;  %v1048_v57 = vld [vmem:[%s4447_s29 + $0xc30] sm:$0xff]  ;;  %v1051_v58 = vld [vmem:[%s4447_s29 + $0xc48] sm:$0xff]  ;;  %v1053_v62 = vld [vmem:[%s4447_s29 + $0xc58] sm:$0xff] }
 0x177   : > { %2364 = vmatmul.mubr.f32.gmra.mrb[18].mxu1 %v532_v8  ;;  %1509 = vmatprep.mubr.f32.mxu0 %v541_v11  ;;  %v1030_v8 = vld [vmem:[%s4447_s29 + $0xba0] sm:$0xff]  ;;  %v1055_v59 = vld [vmem:[%s4447_s29 + $0xc68] sm:$0xff]  ;;  %v1057_v63 = vld [vmem:[%s4447_s29 + $0xc78] sm:$0xff] }
 0x178   : > { %2369 = vmatprep.mubr.f32.mxu1 %v541_v11  ;;  %3369 = vmatpush1.bf16.msra.mxu0 %v3368_v12  ;;  %v1032_v11 = vld [vmem:[%s4447_s29 + $0xbb0] sm:$0xff]  ;;  %v1035_v12 = vld [vmem:[%s4447_s29 + $0xbc8] sm:$0xff]  ;;  %v3398_v2 = vpack.c.bf16 %v1055_v59, %v1051_v58  ;;  %v1082_v59 = vld [vmem:[%s4447_s29 + $0xd40] sm:$0xff] }
 0x179   : > { %3625 = vmatpush1.bf16.msra.mxu1 %v3624_v13  ;;  %3371 = vmatprep.subr.bf16.mxu0 %v3370_v14  ;;  %v1039_v13 = vld [vmem:[%s4447_s29 + $0xbe8] sm:$0xff]  ;;  %v572_v14 = vld [vmem:[%s4440_s9 + $0x390] sm:$0xff]  ;;  %v3644_v19 = vpack.c.bf16 %v1032_v11, %v1028_v9  ;;  %v1061_v11 = vld [vmem:[%s4447_s29 + $0xc98] sm:$0xff] }
 0x17a   : > { %1510 = vmatmul.mubr.f32.gmra.mrb[20].mxu0 %v540_v22  ;;  %3627 = vmatprep.subr.bf16.mxu1 %v3626_v18  ;;  %v3388_v18 = vpack.c.bf16 %v1030_v8, %v1026_v7  ;;  %v3390_v20 = vpack.c.bf16 %v1039_v13, %v1035_v12  ;;  %v1056_v7 = vld [vmem:[%s4447_s29 + $0xc70] sm:$0xff]  ;;  %v1059_v8 = vld [vmem:[%s4447_s29 + $0xc88] sm:$0xff]  ;;  %v1065_v12 = vld [vmem:[%s4447_s29 + $0xcb8] sm:$0xff] }
 0x17b   : > { %2370 = vmatmul.mubr.f32.gmra.mrb[20].mxu1 %v540_v22  ;;  %1515 = vmatprep.mubr.f32.mxu0 %v549_v25  ;;  %v1038_v22 = vld [vmem:[%s4447_s29 + $0xbe0] sm:$0xff]  ;;  %v1063_v9 = vld [vmem:[%s4447_s29 + $0xca8] sm:$0xff] }
 0x17c   : > { %2375 = vmatprep.mubr.f32.mxu1 %v549_v25  ;;  %3373 = vmatpush1.bf16.msra.mxu0 %v3372_v26  ;;  %v1040_v25 = vld [vmem:[%s4447_s29 + $0xbf0] sm:$0xff]  ;;  %v1043_v26 = vld [vmem:[%s4447_s29 + $0xc08] sm:$0xff]  ;;  %v3402_v16 = vpack.c.bf16 %v1063_v9, %v1059_v8  ;;  %v1090_v9 = vld [vmem:[%s4447_s29 + $0xd80] sm:$0xff] }
 0x17d   : > { %3629 = vmatpush1.bf16.msra.mxu1 %v3628_v27  ;;  %3375 = vmatprep.subr.bf16.mxu0 %v3374_v28  ;;  %v1047_v27 = vld [vmem:[%s4447_s29 + $0xc28] sm:$0xff]  ;;  %v580_v28 = vld [vmem:[%s4440_s9 + $0x3d0] sm:$0xff]  ;;  %v3648_v33 = vpack.c.bf16 %v1040_v25, %v1036_v23  ;;  %v1069_v25 = vld [vmem:[%s4447_s29 + $0xcd8] sm:$0xff] }
 0x17e   : > { %1516 = vmatmul.mubr.f32.gmra.mrb[22].mxu0 %v548_v36  ;;  %3631 = vmatprep.subr.bf16.mxu1 %v3630_v32  ;;  %v3392_v32 = vpack.c.bf16 %v1038_v22, %v1034_v21  ;;  %v3394_v34 = vpack.c.bf16 %v1047_v27, %v1043_v26  ;;  %v479_v13 = vld [vmem:[%s4440_s9 + $0xa8] sm:$0xff]  ;;  %v1064_v21 = vld [vmem:[%s4447_s29 + $0xcb0] sm:$0xff]  ;;  %v1073_v26 = vld [vmem:[%s4447_s29 + $0xcf8] sm:$0xff] }
 0x17f   : > { %2376 = vmatmul.mubr.f32.gmra.mrb[22].mxu1 %v548_v36  ;;  %1521 = vmatprep.mubr.f32.mxu0 %v557_v39  ;;  %v588_v36 = vld [vmem:[%s4440_s9 + $0x410] sm:$0xff]  ;;  %v1067_v22 = vld [vmem:[%s4447_s29 + $0xcc8] sm:$0xff] }
 0x180   : > { %2381 = vmatprep.mubr.f32.mxu1 %v557_v39  ;;  %3377 = vmatpush1.bf16.msra.mxu0 %v3376_v40  ;;  %v605_v39 = vld [vmem:[%s4440_s9 + $0x498] sm:$0xff]  ;;  %v604_v40 = vld [vmem:[%s4440_s9 + $0x490] sm:$0xff]  ;;  %v1071_v23 = vld [vmem:[%s4447_s29 + $0xce8] sm:$0xff] }
 0x181   : > { %3633 = vmatpush1.bf16.msra.mxu1 %v3632_v41  ;;  %3379 = vmatprep.subr.bf16.mxu0 %v3378_v42  ;;  %v613_v41 = vld [vmem:[%s4440_s9 + $0x4d8] sm:$0xff]  ;;  %v612_v42 = vld [vmem:[%s4440_s9 + $0x4d0] sm:$0xff]  ;;  %v487_v27 = vld [vmem:[%s4440_s9 + $0xe8] sm:$0xff]  ;;  %v3406_v30 = vpack.c.bf16 %v1071_v23, %v1067_v22 }
 0x182   : > { %1522 = vmatmul.mubr.f32.gmra.mrb[24].mxu0 %v556_v50  ;;  %3635 = vmatprep.subr.bf16.mxu1 %v3634_v46  ;;  %v628_v46 = vld [vmem:[%s4440_s9 + $0x550] sm:$0xff]  ;;  %v1098_v23 = vld [vmem:[%s4447_s29 + $0xdc0] sm:$0xff] }
 0x183   : > { %2382 = vmatmul.mubr.f32.gmra.mrb[24].mxu1 %v556_v50  ;;  %1527 = vmatprep.mubr.f32.mxu0 %v565_v53  ;;  %v644_v50 = vld [vmem:[%s4440_s9 + $0x5d0] sm:$0xff] }
 0x184   : > { %2387 = vmatprep.mubr.f32.mxu1 %v565_v53  ;;  %3381 = vmatpush1.bf16.msra.mxu0 %v3380_v54  ;;  %v463_v53 = vld [vmem:[%s4440_s9 + $0x28] sm:$0xff]  ;;  %v1042_v54 = vld [vmem:[%s4447_s29 + $0xc00] sm:$0xff] }
 0x185   : > { %3637 = vmatpush1.bf16.msra.mxu1 %v3636_v55  ;;  %3383 = vmatprep.subr.bf16.mxu0 %v3382_v56  ;;  %v1046_v55 = vld [vmem:[%s4447_s29 + $0xc20] sm:$0xff]  ;;  %v1044_v56 = vld [vmem:[%s4447_s29 + $0xc10] sm:$0xff] }
 0x186   : > { %1528 = vmatmul.mubr.f32.gmra.mrb[26].mxu0 %v564_v0  ;;  %3639 = vmatprep.subr.bf16.mxu1 %v3638_v60  ;;  %v462_v60 = vld [vmem:[%s4440_s9 + $0x20] sm:$0xff]  ;;  %v3396_v61 = vpack.c.bf16 %v1046_v55, %v1042_v54  ;;  %v1089_v54 = vld [vmem:[%s4447_s29 + $0xd78] sm:$0xff]  ;;  %v503_v55 = vld [vmem:[%s4440_s9 + $0x168] sm:$0xff] }
 0x187   : > { %2388 = vmatmul.mubr.f32.gmra.mrb[26].mxu1 %v564_v0  ;;  %1533 = vmatprep.mubr.f32.mxu0 %v573_v3  ;;  %v3652_v0 = vpack.c.bf16 %v1048_v57, %v1044_v56 }
 0x188   : > { %2393 = vmatprep.mubr.f32.mxu1 %v573_v3  ;;  %3385 = vmatpush1.bf16.msra.mxu0 %v3384_v4  ;;  %v1050_v3 = vld [vmem:[%s4447_s29 + $0xc40] sm:$0xff] }
 0x189   : > { %3641 = vmatpush1.bf16.msra.mxu1 %v3640_v5  ;;  %3387 = vmatprep.subr.bf16.mxu0 %v3386_v6  ;;  %v1054_v4 = vld [vmem:[%s4447_s29 + $0xc60] sm:$0xff]  ;;  %v1052_v5 = vld [vmem:[%s4447_s29 + $0xc50] sm:$0xff]  ;;  %v3654_v6 = vpack.c.bf16 %v1057_v63, %v1053_v62 }
 0x18a   : > { %1534 = vmatmul.mubr.f32.gmra.mrb[28].mxu0 %v572_v14  ;;  %3643 = vmatprep.subr.bf16.mxu1 %v3642_v10  ;;  %v470_v10 = vld [vmem:[%s4440_s9 + $0x60] sm:$0xff]  ;;  %v3656_v15 = vpack.c.bf16 %v1056_v7, %v1052_v5  ;;  %v1088_v63 = vld [vmem:[%s4447_s29 + $0xd70] sm:$0xff]  ;;  %v511_v5 = vld [vmem:[%s4440_s9 + $0x1a8] sm:$0xff] }
 0x18b   : > { %2394 = vmatmul.mubr.f32.gmra.mrb[28].mxu1 %v572_v14  ;;  %1539 = vmatprep.mubr.f32.mxu0 %v581_v17  ;;  %v3400_v14 = vpack.c.bf16 %v1054_v4, %v1050_v3  ;;  %v1093_v3 = vld [vmem:[%s4447_s29 + $0xd98] sm:$0xff] }
 0x18c   : > { %2399 = vmatprep.mubr.f32.mxu1 %v581_v17  ;;  %3389 = vmatpush1.bf16.msra.mxu0 %v3388_v18  ;;  %v1058_v17 = vld [vmem:[%s4447_s29 + $0xc80] sm:$0xff]  ;;  %v1097_v4 = vld [vmem:[%s4447_s29 + $0xdb8] sm:$0xff] }
 0x18d   : > { %3645 = vmatpush1.bf16.msra.mxu1 %v3644_v19  ;;  %3391 = vmatprep.subr.bf16.mxu0 %v3390_v20  ;;  %v1062_v18 = vld [vmem:[%s4447_s29 + $0xca0] sm:$0xff]  ;;  %v1060_v19 = vld [vmem:[%s4447_s29 + $0xc90] sm:$0xff]  ;;  %v3658_v20 = vpack.c.bf16 %v1065_v12, %v1061_v11  ;;  %v3674_v12 = vpack.c.bf16 %v1097_v4, %v1093_v3 }
 0x18e   : > { %1540 = vmatmul.mubr.f32.gmra.mrb[30].mxu0 %v580_v28  ;;  %3647 = vmatprep.subr.bf16.mxu1 %v3646_v24  ;;  %v478_v24 = vld [vmem:[%s4440_s9 + $0xa0] sm:$0xff]  ;;  %v3660_v29 = vpack.c.bf16 %v1064_v21, %v1060_v19  ;;  %v1092_v11 = vld [vmem:[%s4447_s29 + $0xd90] sm:$0xff]  ;;  %v519_v19 = vld [vmem:[%s4440_s9 + $0x1e8] sm:$0xff] }
 0x18f   : > { %2400 = vmatmul.mubr.f32.gmra.mrb[30].mxu1 %v580_v28  ;;  %1545 = vmatprep.mubr.f32.mxu0 %v589_v31  ;;  %v3404_v28 = vpack.c.bf16 %v1062_v18, %v1058_v17  ;;  %v1101_v17 = vld [vmem:[%s4447_s29 + $0xdd8] sm:$0xff]  ;;  %v1124_v3 = vld [vmem:[%s4447_s29 + $0xe90] sm:$0xff] }
 0x190   : > { %2405 = vmatprep.mubr.f32.mxu1 %v589_v31  ;;  %3393 = vmatpush1.bf16.msra.mxu0 %v3392_v32  ;;  %v1066_v31 = vld [vmem:[%s4447_s29 + $0xcc0] sm:$0xff]  ;;  %v1105_v18 = vld [vmem:[%s4447_s29 + $0xdf8] sm:$0xff] }
 0x191   : > { %3649 = vmatpush1.bf16.msra.mxu1 %v3648_v33  ;;  %3395 = vmatprep.subr.bf16.mxu0 %v3394_v34  ;;  %v1070_v32 = vld [vmem:[%s4447_s29 + $0xce0] sm:$0xff]  ;;  %v1068_v33 = vld [vmem:[%s4447_s29 + $0xcd0] sm:$0xff]  ;;  %v3662_v34 = vpack.c.bf16 %v1073_v26, %v1069_v25  ;;  %v3678_v26 = vpack.c.bf16 %v1105_v18, %v1101_v17 }
 0x192   : > { %1546 = vmatmul.mubr.f32.gmra.mrb[32].mxu0 %v588_v36  ;;  %3651 = vmatprep.subr.bf16.mxu1 %v3650_v35  ;;  %v1072_v35 = vld [vmem:[%s4447_s29 + $0xcf0] sm:$0xff] }
 0x193   : > { %2406 = vmatmul.mubr.f32.gmra.mrb[32].mxu1 %v588_v36  ;;  %1551 = vmatprep.mubr.f32.mxu0 %v597_v37  ;;  %v1075_v36 = vld [vmem:[%s4447_s29 + $0xd08] sm:$0xff]  ;;  %v1100_v25 = vld [vmem:[%s4447_s29 + $0xdd0] sm:$0xff] }
 0x194   : > { %2411 = vmatprep.mubr.f32.mxu1 %v597_v37  ;;  %v1079_v37 = vld [vmem:[%s4447_s29 + $0xd28] sm:$0xff]  ;;  %v1132_v17 = vld [vmem:[%s4447_s29 + $0xed0] sm:$0xff] }
 0x196   : > { %1552 = vmatmul.mubr.f32.gmra.mrb[34].mxu0 %v596_v38 }
 0x197   : > { %2412 = vmatmul.mubr.f32.gmra.mrb[34].mxu1 %v596_v38  ;;  %1557 = vmatprep.mubr.f32.mxu0 %v605_v39  ;;  %v486_v38 = vld [vmem:[%s4440_s9 + $0xe0] sm:$0xff] }
 0x198   : > { %2417 = vmatprep.mubr.f32.mxu1 %v605_v39  ;;  %v1077_v39 = vld [vmem:[%s4447_s29 + $0xd18] sm:$0xff] }
 0x19a   : > { %1558 = vmatmul.mubr.f32.gmra.mrb[36].mxu0 %v604_v40 }
 0x19b   : > { %2418 = vmatmul.mubr.f32.gmra.mrb[36].mxu1 %v604_v40  ;;  %1563 = vmatprep.mubr.f32.mxu0 %v613_v41  ;;  %v1081_v40 = vld [vmem:[%s4447_s29 + $0xd38] sm:$0xff] }
 0x19c   : > { %2423 = vmatprep.mubr.f32.mxu1 %v613_v41  ;;  %v495_v41 = vld [vmem:[%s4440_s9 + $0x128] sm:$0xff] }
 0x19e   : > { %1564 = vmatmul.mubr.f32.gmra.mrb[38].mxu0 %v612_v42 }
 0x19f   : > { %2424 = vmatmul.mubr.f32.gmra.mrb[38].mxu1 %v612_v42  ;;  %1569 = vmatprep.mubr.f32.mxu0 %v621_v43  ;;  %v3408_v42 = vpack.c.bf16 %v1070_v32, %v1066_v31  ;;  %v1109_v31 = vld [vmem:[%s4447_s29 + $0xe18] sm:$0xff] }
 0x1a0   : > { %2429 = vmatprep.mubr.f32.mxu1 %v621_v43  ;;  %v3664_v43 = vpack.c.bf16 %v1072_v35, %v1068_v33  ;;  %v1113_v32 = vld [vmem:[%s4447_s29 + $0xe38] sm:$0xff]  ;;  %v527_v33 = vld [vmem:[%s4440_s9 + $0x228] sm:$0xff] }
 0x1a2   : > { %1570 = vmatmul.mubr.f32.gmra.mrb[40].mxu0 %v620_v44 }
 0x1a3   : > { %2430 = vmatmul.mubr.f32.gmra.mrb[40].mxu1 %v620_v44  ;;  %1575 = vmatprep.mubr.f32.mxu0 %v629_v45  ;;  %v3410_v44 = vpack.c.bf16 %v1079_v37, %v1075_v36  ;;  %v1106_v37 = vld [vmem:[%s4447_s29 + $0xe00] sm:$0xff] }
 0x1a4   : > { %2435 = vmatprep.mubr.f32.mxu1 %v629_v45  ;;  %v1074_v45 = vld [vmem:[%s4447_s29 + $0xd00] sm:$0xff] }
 0x1a6   : > { %1576 = vmatmul.mubr.f32.gmra.mrb[42].mxu0 %v628_v46 }
 0x1a7   : > { %2436 = vmatmul.mubr.f32.gmra.mrb[42].mxu1 %v628_v46  ;;  %1581 = vmatprep.mubr.f32.mxu0 %v637_v47  ;;  %v1078_v46 = vld [vmem:[%s4447_s29 + $0xd20] sm:$0xff] }
 0x1a8   : > { %2441 = vmatprep.mubr.f32.mxu1 %v637_v47  ;;  %v1076_v47 = vld [vmem:[%s4447_s29 + $0xd10] sm:$0xff]  ;;  %v3412_v56 = vpack.c.bf16 %v1078_v46, %v1074_v45  ;;  %v1117_v45 = vld [vmem:[%s4447_s29 + $0xe58] sm:$0xff] }
 0x1a9   : > { %v1121_v46 = vld [vmem:[%s4447_s29 + $0xe78] sm:$0xff] }
 0x1aa   : > { %1582 = vmatmul.mubr.f32.gmra.mrb[44].mxu0 %v636_v48 }
 0x1ab   : > { %2442 = vmatmul.mubr.f32.gmra.mrb[44].mxu1 %v636_v48  ;;  %1587 = vmatprep.mubr.f32.mxu0 %v645_v49  ;;  %v3666_v48 = vpack.c.bf16 %v1081_v40, %v1077_v39  ;;  %v1108_v39 = vld [vmem:[%s4447_s29 + $0xe10] sm:$0xff]  ;;  %v3682_v40 = vpack.c.bf16 %v1113_v32, %v1109_v31 }
 0x1ac   : > { %2447 = vmatprep.mubr.f32.mxu1 %v645_v49  ;;  %v1080_v49 = vld [vmem:[%s4447_s29 + $0xd30] sm:$0xff] }
 0x1ad   : > { %v3668_v57 = vpack.c.bf16 %v1080_v49, %v1076_v47  ;;  %v535_v47 = vld [vmem:[%s4440_s9 + $0x268] sm:$0xff]  ;;  %v1140_v31 = vld [vmem:[%s4447_s29 + $0xf10] sm:$0xff] }
 0x1ae   : > { %1588 = vmatmul.mubr.f32.gmra.mrb[46].mxu0 %v644_v50 }
 0x1af   : > { %2448 = vmatmul.mubr.f32.gmra.mrb[46].mxu1 %v644_v50  ;;  %1593 = vmatprep.mubr.f32.mxu0 %v653_v51  ;;  %v1083_v50 = vld [vmem:[%s4447_s29 + $0xd48] sm:$0xff] }
 0x1b0   : > { %2453 = vmatprep.mubr.f32.mxu1 %v653_v51  ;;  %v1087_v51 = vld [vmem:[%s4447_s29 + $0xd68] sm:$0xff] }
 0x1b1   : > { %v3414_v58 = vpack.c.bf16 %v1087_v51, %v1083_v50  ;;  %v1114_v51 = vld [vmem:[%s4447_s29 + $0xe40] sm:$0xff] }
 0x1b2   : > { %1594 = vmatmul.mubr.f32.gmra.mrb[48].mxu0 %v652_v52 }
 0x1b3   : > { %2454 = vmatmul.mubr.f32.gmra.mrb[48].mxu1 %v652_v52  ;;  %1664 = vmatprep.mubr.f32.mxu0 %v463_v53  ;;  %v494_v52 = vld [vmem:[%s4440_s9 + $0x120] sm:$0xff] }
 0x1b4   : > { %2524 = vmatprep.mubr.f32.mxu1 %v463_v53  ;;  %v1085_v53 = vld [vmem:[%s4447_s29 + $0xd58] sm:$0xff] }
 0x1b5   : > { %v3670_v62 = vpack.c.bf16 %v1089_v54, %v1085_v53  ;;  %v1116_v53 = vld [vmem:[%s4447_s29 + $0xe50] sm:$0xff]  ;;  %v3686_v54 = vpack.c.bf16 %v1121_v46, %v1117_v45 }
 0x1b6   : > { %1665 = vmatmul.mubr.f32.vlgmr.msra.gmra.mrb[0].mxu0 %v462_v60  ;;  %v1148_v45 = vld [vmem:[%s4447_s29 + $0xf50] sm:$0xff] }
 0x1b7   : > { %2525 = vmatmul.mubr.f32.vlgmr.msra.gmra.mrb[0].mxu1 %v462_v60  ;;  %3397 = vmatpush1.bf16.msra.mxu0 %v3396_v61  ;;  %v1086_v60 = vld [vmem:[%s4447_s29 + $0xd60] sm:$0xff]  ;;  %v1084_v61 = vld [vmem:[%s4447_s29 + $0xd50] sm:$0xff] }
 0x1b8   : > { %3653 = vmatpush1.bf16.msra.mxu1 %v3652_v0  ;;  %1670 = vmatprep.mubr.f32.mxu0 %v471_v1  ;;  %v1091_v0 = vld [vmem:[%s4447_s29 + $0xd88] sm:$0xff]  ;;  %v3672_v7 = vpack.c.bf16 %v1088_v63, %v1084_v61 }
 0x1b9   : > { %2530 = vmatprep.mubr.f32.mxu1 %v471_v1  ;;  %3399 = vmatprep.subr.bf16.mxu0 %v3398_v2  ;;  %v1095_v1 = vld [vmem:[%s4447_s29 + $0xda8] sm:$0xff]  ;;  %v502_v2 = vld [vmem:[%s4440_s9 + $0x160] sm:$0xff] }
 0x1ba   : > { %1671 = vmatmul.mubr.f32.gmra.mrb[2].mxu0 %v470_v10  ;;  %3655 = vmatprep.subr.bf16.mxu1 %v3654_v6  ;;  %v3416_v6 = vpack.c.bf16 %v1086_v60, %v1082_v59  ;;  %v3418_v8 = vpack.c.bf16 %v1095_v1, %v1091_v0  ;;  %v1125_v59 = vld [vmem:[%s4447_s29 + $0xe98] sm:$0xff]  ;;  %v543_v61 = vld [vmem:[%s4440_s9 + $0x2a8] sm:$0xff]  ;;  %v1122_v1 = vld [vmem:[%s4447_s29 + $0xe80] sm:$0xff] }
 0x1bb   : > { %2531 = vmatmul.mubr.f32.gmra.mrb[2].mxu1 %v470_v10  ;;  %1676 = vmatprep.mubr.f32.mxu0 %v479_v13  ;;  %v1094_v10 = vld [vmem:[%s4447_s29 + $0xda0] sm:$0xff]  ;;  %v1129_v60 = vld [vmem:[%s4447_s29 + $0xeb8] sm:$0xff] }
 0x1bc   : > { %2536 = vmatprep.mubr.f32.mxu1 %v479_v13  ;;  %3401 = vmatpush1.bf16.msra.mxu0 %v3400_v14  ;;  %v1096_v13 = vld [vmem:[%s4447_s29 + $0xdb0] sm:$0xff]  ;;  %v1099_v14 = vld [vmem:[%s4447_s29 + $0xdc8] sm:$0xff]  ;;  %v3690_v4 = vpack.c.bf16 %v1129_v60, %v1125_v59 }
 0x1bd   : > { %3657 = vmatpush1.bf16.msra.mxu1 %v3656_v15  ;;  %3403 = vmatprep.subr.bf16.mxu0 %v3402_v16  ;;  %v1103_v15 = vld [vmem:[%s4447_s29 + $0xde8] sm:$0xff]  ;;  %v510_v16 = vld [vmem:[%s4440_s9 + $0x1a0] sm:$0xff]  ;;  %v3676_v21 = vpack.c.bf16 %v1096_v13, %v1092_v11  ;;  %v1156_v59 = vld [vmem:[%s4447_s29 + $0xf90] sm:$0xff] }
 0x1be   : > { %1677 = vmatmul.mubr.f32.gmra.mrb[4].mxu0 %v478_v24  ;;  %3659 = vmatprep.subr.bf16.mxu1 %v3658_v20  ;;  %v3420_v20 = vpack.c.bf16 %v1094_v10, %v1090_v9  ;;  %v3422_v22 = vpack.c.bf16 %v1103_v15, %v1099_v14  ;;  %v1133_v9 = vld [vmem:[%s4447_s29 + $0xed8] sm:$0xff]  ;;  %v551_v11 = vld [vmem:[%s4440_s9 + $0x2e8] sm:$0xff]  ;;  %v1130_v15 = vld [vmem:[%s4447_s29 + $0xec0] sm:$0xff] }
 0x1bf   : > { %2537 = vmatmul.mubr.f32.gmra.mrb[4].mxu1 %v478_v24  ;;  %1682 = vmatprep.mubr.f32.mxu0 %v487_v27  ;;  %v1102_v24 = vld [vmem:[%s4447_s29 + $0xde0] sm:$0xff]  ;;  %v1137_v10 = vld [vmem:[%s4447_s29 + $0xef8] sm:$0xff] }
 0x1c0   : > { %2542 = vmatprep.mubr.f32.mxu1 %v487_v27  ;;  %3405 = vmatpush1.bf16.msra.mxu0 %v3404_v28  ;;  %v1104_v27 = vld [vmem:[%s4447_s29 + $0xdf0] sm:$0xff]  ;;  %v1107_v28 = vld [vmem:[%s4447_s29 + $0xe08] sm:$0xff]  ;;  %v3694_v18 = vpack.c.bf16 %v1137_v10, %v1133_v9 }
 0x1c1   : > { %3661 = vmatpush1.bf16.msra.mxu1 %v3660_v29  ;;  %3407 = vmatprep.subr.bf16.mxu0 %v3406_v30  ;;  %v1111_v29 = vld [vmem:[%s4447_s29 + $0xe28] sm:$0xff]  ;;  %v518_v30 = vld [vmem:[%s4440_s9 + $0x1e0] sm:$0xff]  ;;  %v3680_v35 = vpack.c.bf16 %v1104_v27, %v1100_v25  ;;  %v1164_v10 = vld [vmem:[%s4447_s29 + $0xfd0] sm:$0xff] }
 0x1c2   : > { %1683 = vmatmul.mubr.f32.gmra.mrb[6].mxu0 %v486_v38  ;;  %3663 = vmatprep.subr.bf16.mxu1 %v3662_v34  ;;  %v3424_v34 = vpack.c.bf16 %v1102_v24, %v1098_v23  ;;  %v3426_v36 = vpack.c.bf16 %v1111_v29, %v1107_v28  ;;  %v1141_v23 = vld [vmem:[%s4447_s29 + $0xf18] sm:$0xff]  ;;  %v559_v25 = vld [vmem:[%s4440_s9 + $0x328] sm:$0xff]  ;;  %v1138_v29 = vld [vmem:[%s4447_s29 + $0xf00] sm:$0xff] }
 0x1c3   : > { %2543 = vmatmul.mubr.f32.gmra.mrb[6].mxu1 %v486_v38  ;;  %1688 = vmatprep.mubr.f32.mxu0 %v495_v41  ;;  %v1110_v38 = vld [vmem:[%s4447_s29 + $0xe20] sm:$0xff]  ;;  %v1145_v24 = vld [vmem:[%s4447_s29 + $0xf38] sm:$0xff] }
 0x1c4   : > { %2548 = vmatprep.mubr.f32.mxu1 %v495_v41  ;;  %3409 = vmatpush1.bf16.msra.mxu0 %v3408_v42  ;;  %v1112_v41 = vld [vmem:[%s4447_s29 + $0xe30] sm:$0xff]  ;;  %v1115_v42 = vld [vmem:[%s4447_s29 + $0xe48] sm:$0xff]  ;;  %v3698_v32 = vpack.c.bf16 %v1145_v24, %v1141_v23  ;;  %v622_v24 = vld [vmem:[%s4440_s9 + $0x520] sm:$0xff] }
 0x1c5   : > { %3665 = vmatpush1.bf16.msra.mxu1 %v3664_v43  ;;  %3411 = vmatprep.subr.bf16.mxu0 %v3410_v44  ;;  %v1119_v43 = vld [vmem:[%s4447_s29 + $0xe68] sm:$0xff]  ;;  %v526_v44 = vld [vmem:[%s4440_s9 + $0x220] sm:$0xff]  ;;  %v3684_v49 = vpack.c.bf16 %v1112_v41, %v1108_v39 }
 0x1c6   : > { %1689 = vmatmul.mubr.f32.gmra.mrb[8].mxu0 %v494_v52  ;;  %3667 = vmatprep.subr.bf16.mxu1 %v3666_v48  ;;  %v3428_v48 = vpack.c.bf16 %v1110_v38, %v1106_v37  ;;  %v3430_v50 = vpack.c.bf16 %v1119_v43, %v1115_v42  ;;  %v1149_v37 = vld [vmem:[%s4447_s29 + $0xf58] sm:$0xff]  ;;  %v567_v39 = vld [vmem:[%s4440_s9 + $0x368] sm:$0xff]  ;;  %v1146_v43 = vld [vmem:[%s4447_s29 + $0xf40] sm:$0xff] }
 0x1c7   : > { %2549 = vmatmul.mubr.f32.gmra.mrb[8].mxu1 %v494_v52  ;;  %1694 = vmatprep.mubr.f32.mxu0 %v503_v55  ;;  %v1118_v52 = vld [vmem:[%s4447_s29 + $0xe60] sm:$0xff]  ;;  %v1153_v38 = vld [vmem:[%s4447_s29 + $0xf78] sm:$0xff]  ;;  %v623_v23 = vld [vmem:[%s4440_s9 + $0x528] sm:$0xff] }
 0x1c8   : > { %2554 = vmatprep.mubr.f32.mxu1 %v503_v55  ;;  %3413 = vmatpush1.bf16.msra.mxu0 %v3412_v56  ;;  %v1120_v55 = vld [vmem:[%s4447_s29 + $0xe70] sm:$0xff]  ;;  %v1123_v56 = vld [vmem:[%s4447_s29 + $0xe88] sm:$0xff]  ;;  %v3702_v46 = vpack.c.bf16 %v1153_v38, %v1149_v37  ;;  %v481_v37 = vld [vmem:[%s4440_s9 + $0xb8] sm:$0xff] }
 0x1c9   : > { %3669 = vmatpush1.bf16.msra.mxu1 %v3668_v57  ;;  %3415 = vmatprep.subr.bf16.mxu0 %v3414_v58  ;;  %v1127_v57 = vld [vmem:[%s4447_s29 + $0xea8] sm:$0xff]  ;;  %v534_v58 = vld [vmem:[%s4440_s9 + $0x260] sm:$0xff]  ;;  %v3688_v63 = vpack.c.bf16 %v1120_v55, %v1116_v53  ;;  %v480_v38 = vld [vmem:[%s4440_s9 + $0xb0] sm:$0xff] }
 0x1ca   : > { %1695 = vmatmul.mubr.f32.gmra.mrb[10].mxu0 %v502_v2  ;;  %3671 = vmatprep.subr.bf16.mxu1 %v3670_v62  ;;  %v3432_v62 = vpack.c.bf16 %v1118_v52, %v1114_v51  ;;  %v3434_v0 = vpack.c.bf16 %v1127_v57, %v1123_v56  ;;  %v1157_v51 = vld [vmem:[%s4447_s29 + $0xf98] sm:$0xff]  ;;  %v575_v53 = vld [vmem:[%s4440_s9 + $0x3a8] sm:$0xff]  ;;  %v1154_v57 = vld [vmem:[%s4447_s29 + $0xf80] sm:$0xff] }
 0x1cb   : > { %2555 = vmatmul.mubr.f32.gmra.mrb[10].mxu1 %v502_v2  ;;  %1700 = vmatprep.mubr.f32.mxu0 %v511_v5  ;;  %v1126_v2 = vld [vmem:[%s4447_s29 + $0xea0] sm:$0xff]  ;;  %v1161_v52 = vld [vmem:[%s4447_s29 + $0xfb8] sm:$0xff] }
 0x1cc   : > { %2560 = vmatprep.mubr.f32.mxu1 %v511_v5  ;;  %3417 = vmatpush1.bf16.msra.mxu0 %v3416_v6  ;;  %v1128_v5 = vld [vmem:[%s4447_s29 + $0xeb0] sm:$0xff]  ;;  %v1131_v6 = vld [vmem:[%s4447_s29 + $0xec8] sm:$0xff]  ;;  %v3706_v60 = vpack.c.bf16 %v1161_v52, %v1157_v51  ;;  %v537_v51 = vld [vmem:[%s4440_s9 + $0x278] sm:$0xff] }
 0x1cd   : > { %3673 = vmatpush1.bf16.msra.mxu1 %v3672_v7  ;;  %3419 = vmatprep.subr.bf16.mxu0 %v3418_v8  ;;  %v1135_v7 = vld [vmem:[%s4447_s29 + $0xee8] sm:$0xff]  ;;  %v542_v8 = vld [vmem:[%s4440_s9 + $0x2a0] sm:$0xff]  ;;  %v3692_v13 = vpack.c.bf16 %v1128_v5, %v1124_v3  ;;  %v536_v52 = vld [vmem:[%s4440_s9 + $0x270] sm:$0xff] }
 0x1ce   : > { %1701 = vmatmul.mubr.f32.gmra.mrb[12].mxu0 %v510_v16  ;;  %3675 = vmatprep.subr.bf16.mxu1 %v3674_v12  ;;  %v3436_v12 = vpack.c.bf16 %v1126_v2, %v1122_v1  ;;  %v3438_v14 = vpack.c.bf16 %v1135_v7, %v1131_v6  ;;  %v1165_v1 = vld [vmem:[%s4447_s29 + $0xfd8] sm:$0xff]  ;;  %v583_v3 = vld [vmem:[%s4440_s9 + $0x3e8] sm:$0xff]  ;;  %v1162_v7 = vld [vmem:[%s4447_s29 + $0xfc0] sm:$0xff] }
 0x1cf   : > { %2561 = vmatmul.mubr.f32.gmra.mrb[12].mxu1 %v510_v16  ;;  %1706 = vmatprep.mubr.f32.mxu0 %v519_v19  ;;  %v1134_v16 = vld [vmem:[%s4447_s29 + $0xee0] sm:$0xff]  ;;  %v1169_v2 = vld [vmem:[%s4447_s29 + $0xff8] sm:$0xff] }
 0x1d0   : > { %2566 = vmatprep.mubr.f32.mxu1 %v519_v19  ;;  %3421 = vmatpush1.bf16.msra.mxu0 %v3420_v20  ;;  %v1136_v19 = vld [vmem:[%s4447_s29 + $0xef0] sm:$0xff]  ;;  %v1139_v20 = vld [vmem:[%s4447_s29 + $0xf08] sm:$0xff]  ;;  %v3710_v9 = vpack.c.bf16 %v1169_v2, %v1165_v1  ;;  %v593_v1 = vld [vmem:[%s4440_s9 + $0x438] sm:$0xff] }
 0x1d1   : > { %3677 = vmatpush1.bf16.msra.mxu1 %v3676_v21  ;;  %3423 = vmatprep.subr.bf16.mxu0 %v3422_v22  ;;  %v1143_v21 = vld [vmem:[%s4447_s29 + $0xf28] sm:$0xff]  ;;  %v550_v22 = vld [vmem:[%s4440_s9 + $0x2e0] sm:$0xff]  ;;  %v3696_v27 = vpack.c.bf16 %v1136_v19, %v1132_v17  ;;  %v592_v2 = vld [vmem:[%s4440_s9 + $0x430] sm:$0xff] }
 0x1d2   : > { %1707 = vmatmul.mubr.f32.gmra.mrb[14].mxu0 %v518_v30  ;;  %3679 = vmatprep.subr.bf16.mxu1 %v3678_v26  ;;  %v3440_v26 = vpack.c.bf16 %v1134_v16, %v1130_v15  ;;  %v3442_v28 = vpack.c.bf16 %v1143_v21, %v1139_v20  ;;  %v590_v16 = vld [vmem:[%s4440_s9 + $0x420] sm:$0xff]  ;;  %v599_v17 = vld [vmem:[%s4440_s9 + $0x468] sm:$0xff] }
 0x1d3   : > { %2567 = vmatmul.mubr.f32.gmra.mrb[14].mxu1 %v518_v30  ;;  %1712 = vmatprep.mubr.f32.mxu0 %v527_v33  ;;  %v1142_v30 = vld [vmem:[%s4447_s29 + $0xf20] sm:$0xff]  ;;  %v607_v19 = vld [vmem:[%s4440_s9 + $0x4a8] sm:$0xff] }
 0x1d4   : > { %2572 = vmatprep.mubr.f32.mxu1 %v527_v33  ;;  %3425 = vmatpush1.bf16.msra.mxu0 %v3424_v34  ;;  %v1144_v33 = vld [vmem:[%s4447_s29 + $0xf30] sm:$0xff]  ;;  %v1147_v34 = vld [vmem:[%s4447_s29 + $0xf48] sm:$0xff]  ;;  %v606_v20 = vld [vmem:[%s4440_s9 + $0x4a0] sm:$0xff] }
 0x1d5   : > { %3681 = vmatpush1.bf16.msra.mxu1 %v3680_v35  ;;  %3427 = vmatprep.subr.bf16.mxu0 %v3426_v36  ;;  %v1151_v35 = vld [vmem:[%s4447_s29 + $0xf68] sm:$0xff]  ;;  %v558_v36 = vld [vmem:[%s4440_s9 + $0x320] sm:$0xff]  ;;  %v3700_v41 = vpack.c.bf16 %v1144_v33, %v1140_v31  ;;  %v465_v33 = vld [vmem:[%s4440_s9 + $0x38] sm:$0xff] }
 0x1d6   : > { %1713 = vmatmul.mubr.f32.gmra.mrb[16].mxu0 %v526_v44  ;;  %3683 = vmatprep.subr.bf16.mxu1 %v3682_v40  ;;  %v3444_v40 = vpack.c.bf16 %v1142_v30, %v1138_v29  ;;  %v3446_v42 = vpack.c.bf16 %v1151_v35, %v1147_v34  ;;  %v615_v21 = vld [vmem:[%s4440_s9 + $0x4e8] sm:$0xff]  ;;  %v646_v30 = vld [vmem:[%s4440_s9 + $0x5e0] sm:$0xff]  ;;  %v464_v34 = vld [vmem:[%s4440_s9 + $0x30] sm:$0xff] }
 0x1d7   : > { %2573 = vmatmul.mubr.f32.gmra.mrb[16].mxu1 %v526_v44  ;;  %1718 = vmatprep.mubr.f32.mxu0 %v535_v47  ;;  %v1150_v44 = vld [vmem:[%s4447_s29 + $0xf60] sm:$0xff]  ;;  %v647_v29 = vld [vmem:[%s4440_s9 + $0x5e8] sm:$0xff]  ;;  %v473_v35 = vld [vmem:[%s4440_s9 + $0x78] sm:$0xff] }
 0x1d8   : > { %2578 = vmatprep.mubr.f32.mxu1 %v535_v47  ;;  %3429 = vmatpush1.bf16.msra.mxu0 %v3428_v48  ;;  %v1152_v47 = vld [vmem:[%s4447_s29 + $0xf70] sm:$0xff]  ;;  %v1155_v48 = vld [vmem:[%s4447_s29 + $0xf88] sm:$0xff] }
 0x1d9   : > { %3685 = vmatpush1.bf16.msra.mxu1 %v3684_v49  ;;  %3431 = vmatprep.subr.bf16.mxu0 %v3430_v50  ;;  %v1159_v49 = vld [vmem:[%s4447_s29 + $0xfa8] sm:$0xff]  ;;  %v566_v50 = vld [vmem:[%s4440_s9 + $0x360] sm:$0xff]  ;;  %v3704_v55 = vpack.c.bf16 %v1152_v47, %v1148_v45  ;;  %v513_v45 = vld [vmem:[%s4440_s9 + $0x1b8] sm:$0xff] }
 0x1da   : > { %1719 = vmatmul.mubr.f32.gmra.mrb[18].mxu0 %v534_v58  ;;  %3687 = vmatprep.subr.bf16.mxu1 %v3686_v54  ;;  %v3448_v54 = vpack.c.bf16 %v1150_v44, %v1146_v43  ;;  %v3450_v56 = vpack.c.bf16 %v1159_v49, %v1155_v48  ;;  %v655_v31 = vld [vmem:[%s4440_s9 + $0x628] sm:$0xf]  ;;  %v505_v43 = vld [vmem:[%s4440_s9 + $0x178] sm:$0xff]  ;;  %v504_v44 = vld [vmem:[%s4440_s9 + $0x170] sm:$0xff] }
 0x1db   : > { %2579 = vmatmul.mubr.f32.gmra.mrb[18].mxu1 %v534_v58  ;;  %1724 = vmatprep.mubr.f32.mxu0 %v543_v61  ;;  %v1158_v58 = vld [vmem:[%s4447_s29 + $0xfa0] sm:$0xff]  ;;  %v521_v47 = vld [vmem:[%s4440_s9 + $0x1f8] sm:$0xff]  ;;  %v520_v48 = vld [vmem:[%s4440_s9 + $0x1f0] sm:$0xff] }
 0x1dc   : > { %2584 = vmatprep.mubr.f32.mxu1 %v543_v61  ;;  %3433 = vmatpush1.bf16.msra.mxu0 %v3432_v62  ;;  %v1160_v61 = vld [vmem:[%s4447_s29 + $0xfb0] sm:$0xff]  ;;  %v1163_v62 = vld [vmem:[%s4447_s29 + $0xfc8] sm:$0xff]  ;;  %v529_v49 = vld [vmem:[%s4440_s9 + $0x238] sm:$0xff] }
 0x1dd   : > { %3689 = vmatpush1.bf16.msra.mxu1 %v3688_v63  ;;  %3435 = vmatprep.subr.bf16.mxu0 %v3434_v0  ;;  %v1167_v63 = vld [vmem:[%s4447_s29 + $0xfe8] sm:$0xff]  ;;  %v574_v0 = vld [vmem:[%s4440_s9 + $0x3a0] sm:$0xff]  ;;  %v3708_v5 = vpack.c.bf16 %v1160_v61, %v1156_v59  ;;  %v569_v59 = vld [vmem:[%s4440_s9 + $0x378] sm:$0xff] }
 0x1de   : > { %1725 = vmatmul.mubr.f32.gmra.mrb[20].mxu0 %v542_v8  ;;  %3691 = vmatprep.subr.bf16.mxu1 %v3690_v4  ;;  %v3452_v4 = vpack.c.bf16 %v1158_v58, %v1154_v57  ;;  %v3454_v6 = vpack.c.bf16 %v1167_v63, %v1163_v62  ;;  %v561_v57 = vld [vmem:[%s4440_s9 + $0x338] sm:$0xff]  ;;  %v560_v58 = vld [vmem:[%s4440_s9 + $0x330] sm:$0xff] }
 0x1df   : > { %2585 = vmatmul.mubr.f32.gmra.mrb[20].mxu1 %v542_v8  ;;  %1730 = vmatprep.mubr.f32.mxu0 %v551_v11  ;;  %v1166_v8 = vld [vmem:[%s4447_s29 + $0xfe0] sm:$0xff]  ;;  %v577_v61 = vld [vmem:[%s4440_s9 + $0x3b8] sm:$0xff]  ;;  %v576_v62 = vld [vmem:[%s4440_s9 + $0x3b0] sm:$0xff] }
 0x1e0   : > { %2590 = vmatprep.mubr.f32.mxu1 %v551_v11  ;;  %3437 = vmatpush1.bf16.msra.mxu0 %v3436_v12  ;;  %v1168_v11 = vld [vmem:[%s4447_s29 + $0xff0] sm:$0xff]  ;;  %v582_v12 = vld [vmem:[%s4440_s9 + $0x3e0] sm:$0xff]  ;;  %v585_v63 = vld [vmem:[%s4440_s9 + $0x3f8] sm:$0xff] }
 0x1e1   : > { %3693 = vmatpush1.bf16.msra.mxu1 %v3692_v13  ;;  %3439 = vmatprep.subr.bf16.mxu0 %v3438_v14  ;;  %v591_v13 = vld [vmem:[%s4440_s9 + $0x428] sm:$0xff]  ;;  %v3456_v14 = vpack.c.bf16 %v1166_v8, %v1162_v7  ;;  %v3712_v15 = vpack.c.bf16 %v1168_v11, %v1164_v10  ;;  %v617_v7 = vld [vmem:[%s4440_s9 + $0x4f8] sm:$0xff]  ;;  %v616_v8 = vld [vmem:[%s4440_s9 + $0x4f0] sm:$0xff] }
 0x1e2   : > { %1731 = vmatmul.mubr.f32.gmra.mrb[22].mxu0 %v550_v22  ;;  %3695 = vmatprep.subr.bf16.mxu1 %v3694_v18  ;;  %v598_v18 = vld [vmem:[%s4440_s9 + $0x460] sm:$0xff]  ;;  %v624_v10 = vld [vmem:[%s4440_s9 + $0x530] sm:$0xff]  ;;  %v633_v11 = vld [vmem:[%s4440_s9 + $0x578] sm:$0xff] }
 0x1e3   : > { %2591 = vmatmul.mubr.f32.gmra.mrb[22].mxu1 %v550_v22  ;;  %1736 = vmatprep.mubr.f32.mxu0 %v559_v25  ;;  %v614_v22 = vld [vmem:[%s4440_s9 + $0x4e0] sm:$0xff] }
 0x1e4   : > { %2596 = vmatprep.mubr.f32.mxu1 %v559_v25  ;;  %3441 = vmatpush1.bf16.msra.mxu0 %v3440_v26  ;;  %v631_v25 = vld [vmem:[%s4440_s9 + $0x568] sm:$0xff]  ;;  %v630_v26 = vld [vmem:[%s4440_s9 + $0x560] sm:$0xff] }
 0x1e5   : > { %3697 = vmatpush1.bf16.msra.mxu1 %v3696_v27  ;;  %3443 = vmatprep.subr.bf16.mxu0 %v3442_v28  ;;  %v639_v27 = vld [vmem:[%s4440_s9 + $0x5a8] sm:$0xff]  ;;  %v638_v28 = vld [vmem:[%s4440_s9 + $0x5a0] sm:$0xff] }
 0x1e6   : > { %1737 = vmatmul.mubr.f32.gmra.mrb[24].mxu0 %v558_v36  ;;  %3699 = vmatprep.subr.bf16.mxu1 %v3698_v32  ;;  %v654_v32 = vld [vmem:[%s4440_s9 + $0x620] sm:$0xf] }
 0x1e7   : > { %2597 = vmatmul.mubr.f32.gmra.mrb[24].mxu1 %v558_v36  ;;  %1742 = vmatprep.mubr.f32.mxu0 %v567_v39  ;;  %v472_v36 = vld [vmem:[%s4440_s9 + $0x70] sm:$0xff] }
 0x1e8   : > { %2602 = vmatprep.mubr.f32.mxu1 %v567_v39  ;;  %3445 = vmatpush1.bf16.msra.mxu0 %v3444_v40  ;;  %v489_v39 = vld [vmem:[%s4440_s9 + $0xf8] sm:$0xff]  ;;  %v488_v40 = vld [vmem:[%s4440_s9 + $0xf0] sm:$0xff] }
 0x1e9   : > { %3701 = vmatpush1.bf16.msra.mxu1 %v3700_v41  ;;  %3447 = vmatprep.subr.bf16.mxu0 %v3446_v42  ;;  %v497_v41 = vld [vmem:[%s4440_s9 + $0x138] sm:$0xff]  ;;  %v496_v42 = vld [vmem:[%s4440_s9 + $0x130] sm:$0xff] }
 0x1ea   : > { %1743 = vmatmul.mubr.f32.gmra.mrb[26].mxu0 %v566_v50  ;;  %3703 = vmatprep.subr.bf16.mxu1 %v3702_v46  ;;  %v512_v46 = vld [vmem:[%s4440_s9 + $0x1b0] sm:$0xff] }
 0x1eb   : > { %2603 = vmatmul.mubr.f32.gmra.mrb[26].mxu1 %v566_v50  ;;  %1748 = vmatprep.mubr.f32.mxu0 %v575_v53  ;;  %v528_v50 = vld [vmem:[%s4440_s9 + $0x230] sm:$0xff] }
 0x1ec   : > { %2608 = vmatprep.mubr.f32.mxu1 %v575_v53  ;;  %3449 = vmatpush1.bf16.msra.mxu0 %v3448_v54  ;;  %v545_v53 = vld [vmem:[%s4440_s9 + $0x2b8] sm:$0xff]  ;;  %v544_v54 = vld [vmem:[%s4440_s9 + $0x2b0] sm:$0xff] }
 0x1ed   : > { %3705 = vmatpush1.bf16.msra.mxu1 %v3704_v55  ;;  %3451 = vmatprep.subr.bf16.mxu0 %v3450_v56  ;;  %v553_v55 = vld [vmem:[%s4440_s9 + $0x2f8] sm:$0xff]  ;;  %v552_v56 = vld [vmem:[%s4440_s9 + $0x2f0] sm:$0xff] }
 0x1ee   : > { %1749 = vmatmul.mubr.f32.gmra.mrb[28].mxu0 %v574_v0  ;;  %3707 = vmatprep.subr.bf16.mxu1 %v3706_v60  ;;  %v568_v60 = vld [vmem:[%s4440_s9 + $0x370] sm:$0xff] }
 0x1ef   : > { %2609 = vmatmul.mubr.f32.gmra.mrb[28].mxu1 %v574_v0  ;;  %1754 = vmatprep.mubr.f32.mxu0 %v583_v3  ;;  %v584_v0 = vld [vmem:[%s4440_s9 + $0x3f0] sm:$0xff] }
 0x1f0   : > { %2614 = vmatprep.mubr.f32.mxu1 %v583_v3  ;;  %3453 = vmatpush1.bf16.msra.mxu0 %v3452_v4  ;;  %v601_v3 = vld [vmem:[%s4440_s9 + $0x478] sm:$0xff]  ;;  %v600_v4 = vld [vmem:[%s4440_s9 + $0x470] sm:$0xff] }
 0x1f1   : > { %3709 = vmatpush1.bf16.msra.mxu1 %v3708_v5  ;;  %3455 = vmatprep.subr.bf16.mxu0 %v3454_v6  ;;  %v609_v5 = vld [vmem:[%s4440_s9 + $0x4b8] sm:$0xff]  ;;  %v608_v6 = vld [vmem:[%s4440_s9 + $0x4b0] sm:$0xff] }
 0x1f2   : > { %1755 = vmatmul.mubr.f32.gmra.mrb[30].mxu0 %v582_v12  ;;  %3711 = vmatprep.subr.bf16.mxu1 %v3710_v9  ;;  %v625_v9 = vld [vmem:[%s4440_s9 + $0x538] sm:$0xff] }
 0x1f3   : > { %2615 = vmatmul.mubr.f32.gmra.mrb[30].mxu1 %v582_v12  ;;  %1760 = vmatprep.mubr.f32.mxu0 %v591_v13  ;;  %v632_v12 = vld [vmem:[%s4440_s9 + $0x570] sm:$0xff] }
 0x1f4   : > { %2620 = vmatprep.mubr.f32.mxu1 %v591_v13  ;;  %3457 = vmatpush1.bf16.msra.mxu0 %v3456_v14  ;;  %v641_v13 = vld [vmem:[%s4440_s9 + $0x5b8] sm:$0xff]  ;;  %v640_v14 = vld [vmem:[%s4440_s9 + $0x5b0] sm:$0xff] }
 0x1f5   : > { %3713 = vmatpush1.bf16.msra.mxu1 %v3712_v15  ;;  %v649_v15 = vld [vmem:[%s4440_s9 + $0x5f8] sm:$0xff] }
 0x1f6   : > { %1761 = vmatmul.mubr.f32.gmra.mrb[32].mxu0 %v590_v16 }
 0x1f7   : > { %2621 = vmatmul.mubr.f32.gmra.mrb[32].mxu1 %v590_v16  ;;  %1766 = vmatprep.mubr.f32.mxu0 %v599_v17  ;;  %v648_v16 = vld [vmem:[%s4440_s9 + $0x5f0] sm:$0xff] }
 0x1f8   : > { %2626 = vmatprep.mubr.f32.mxu1 %v599_v17  ;;  %v657_v17 = vld [vmem:[%s4440_s9 + $0x638] sm:$0xf] }
 0x1fa   : > { %1767 = vmatmul.mubr.f32.gmra.mrb[34].mxu0 %v598_v18 }
 0x1fb   : > { %2627 = vmatmul.mubr.f32.gmra.mrb[34].mxu1 %v598_v18  ;;  %1772 = vmatprep.mubr.f32.mxu0 %v607_v19  ;;  %v656_v18 = vld [vmem:[%s4440_s9 + $0x630] sm:$0xf] }
 0x1fc   : > { %2632 = vmatprep.mubr.f32.mxu1 %v607_v19  ;;  %v358_v19 = vld [vmem:[#allocation8] sm:$0xff] }
 0x1fe   : > { %1773 = vmatmul.mubr.f32.gmra.mrb[36].mxu0 %v606_v20 }
 0x1ff   : > { %2633 = vmatmul.mubr.f32.gmra.mrb[36].mxu1 %v606_v20  ;;  %1778 = vmatprep.mubr.f32.mxu0 %v615_v21  ;;  %v360_v20 = vld [vmem:[#allocation8 + $0x10] sm:$0xff] }
 0x200   : > { %2638 = vmatprep.mubr.f32.mxu1 %v615_v21  ;;  %v359_v21 = vld [vmem:[#allocation8 + $0x8] sm:$0xff] }
 0x202   : > { %1779 = vmatmul.mubr.f32.gmra.mrb[38].mxu0 %v614_v22 }
 0x203   : > { %2639 = vmatmul.mubr.f32.gmra.mrb[38].mxu1 %v614_v22  ;;  %1784 = vmatprep.mubr.f32.mxu0 %v623_v23 }
 0x204   : > { %2644 = vmatprep.mubr.f32.mxu1 %v623_v23  ;;  %v361_v23 = vld [vmem:[#allocation8 + $0x18] sm:$0xff] }
 0x206   : > { %1785 = vmatmul.mubr.f32.gmra.mrb[40].mxu0 %v622_v24 }
 0x207   : > { %2645 = vmatmul.mubr.f32.gmra.mrb[40].mxu1 %v622_v24  ;;  %1790 = vmatprep.mubr.f32.mxu0 %v631_v25 }
 0x208   : > { %2650 = vmatprep.mubr.f32.mxu1 %v631_v25 }
 0x20a   : > { %1791 = vmatmul.mubr.f32.gmra.mrb[42].mxu0 %v630_v26 }
 0x20b   : > { %2651 = vmatmul.mubr.f32.gmra.mrb[42].mxu1 %v630_v26  ;;  %1796 = vmatprep.mubr.f32.mxu0 %v639_v27 }
 0x20c   : > { %2656 = vmatprep.mubr.f32.mxu1 %v639_v27 }
 0x20e   : > { %1797 = vmatmul.mubr.f32.gmra.mrb[44].mxu0 %v638_v28 }
 0x20f   : > { %2657 = vmatmul.mubr.f32.gmra.mrb[44].mxu1 %v638_v28  ;;  %1802 = vmatprep.mubr.f32.mxu0 %v647_v29 }
 0x210   : > { %2662 = vmatprep.mubr.f32.mxu1 %v647_v29 }
 0x212   : > { %1803 = vmatmul.mubr.f32.gmra.mrb[46].mxu0 %v646_v30 }
 0x213   : > { %2663 = vmatmul.mubr.f32.gmra.mrb[46].mxu1 %v646_v30  ;;  %1808 = vmatprep.mubr.f32.mxu0 %v655_v31  ;;  %v362_v30 = vld [vmem:[#allocation8 + $0x20] sm:$0xff] }
 0x214   : > { %2668 = vmatprep.mubr.f32.mxu1 %v655_v31 }
 0x216   : > { %1809 = vmatmul.mubr.f32.gmra.mrb[48].mxu0 %v654_v32 }
 0x217   : > { %2669 = vmatmul.mubr.f32.gmra.mrb[48].mxu1 %v654_v32  ;;  %1879 = vmatprep.mubr.f32.mxu0 %v465_v33  ;;  %v364_v32 = vld [vmem:[#allocation8 + $0x30] sm:$0xff] }
 0x218   : > { %2739 = vmatprep.mubr.f32.mxu1 %v465_v33  ;;  %v363_v33 = vld [vmem:[#allocation8 + $0x28] sm:$0xff] }
 0x21a   : > { %1880 = vmatmul.mubr.f32.vlgmr.msra.gmra.mrb[0].mxu0 %v464_v34 }
 0x21b   : > { %2740 = vmatmul.mubr.f32.vlgmr.msra.gmra.mrb[0].mxu1 %v464_v34  ;;  %1885 = vmatprep.mubr.f32.mxu0 %v473_v35 }
 0x21c   : > { %2745 = vmatprep.mubr.f32.mxu1 %v473_v35  ;;  %v365_v35 = vld [vmem:[#allocation8 + $0x38] sm:$0xff] }
 0x21e   : > { %1886 = vmatmul.mubr.f32.gmra.mrb[2].mxu0 %v472_v36 }
 0x21f   : > { %2746 = vmatmul.mubr.f32.gmra.mrb[2].mxu1 %v472_v36  ;;  %1891 = vmatprep.mubr.f32.mxu0 %v481_v37 }
 0x220   : > { %2751 = vmatprep.mubr.f32.mxu1 %v481_v37 }
 0x222   : > { %1892 = vmatmul.mubr.f32.gmra.mrb[4].mxu0 %v480_v38 }
 0x223   : > { %2752 = vmatmul.mubr.f32.gmra.mrb[4].mxu1 %v480_v38  ;;  %1897 = vmatprep.mubr.f32.mxu0 %v489_v39 }
 0x224   : > { %2757 = vmatprep.mubr.f32.mxu1 %v489_v39 }
 0x226   : > { %1898 = vmatmul.mubr.f32.gmra.mrb[6].mxu0 %v488_v40 }
 0x227   : > { %2758 = vmatmul.mubr.f32.gmra.mrb[6].mxu1 %v488_v40  ;;  %1903 = vmatprep.mubr.f32.mxu0 %v497_v41 }
 0x228   : > { %2763 = vmatprep.mubr.f32.mxu1 %v497_v41 }
 0x22a   : > { %1904 = vmatmul.mubr.f32.gmra.mrb[8].mxu0 %v496_v42 }
 0x22b   : > { %2764 = vmatmul.mubr.f32.gmra.mrb[8].mxu1 %v496_v42  ;;  %1909 = vmatprep.mubr.f32.mxu0 %v505_v43  ;;  %v366_v42 = vld [vmem:[#allocation8 + $0x40] sm:$0xff] }
 0x22c   : > { %2769 = vmatprep.mubr.f32.mxu1 %v505_v43 }
 0x22e   : > { %1910 = vmatmul.mubr.f32.gmra.mrb[10].mxu0 %v504_v44 }
 0x22f   : > { %2770 = vmatmul.mubr.f32.gmra.mrb[10].mxu1 %v504_v44  ;;  %1915 = vmatprep.mubr.f32.mxu0 %v513_v45  ;;  %v368_v44 = vld [vmem:[#allocation8 + $0x50] sm:$0xff] }
 0x230   : > { %2775 = vmatprep.mubr.f32.mxu1 %v513_v45  ;;  %v367_v45 = vld [vmem:[#allocation8 + $0x48] sm:$0xff] }
 0x232   : > { %1916 = vmatmul.mubr.f32.gmra.mrb[12].mxu0 %v512_v46 }
 0x233   : > { %2776 = vmatmul.mubr.f32.gmra.mrb[12].mxu1 %v512_v46  ;;  %1921 = vmatprep.mubr.f32.mxu0 %v521_v47 }
 0x234   : > { %2781 = vmatprep.mubr.f32.mxu1 %v521_v47  ;;  %v369_v47 = vld [vmem:[#allocation8 + $0x58] sm:$0xff] }
 0x236   : > { %1922 = vmatmul.mubr.f32.gmra.mrb[14].mxu0 %v520_v48 }
 0x237   : > { %2782 = vmatmul.mubr.f32.gmra.mrb[14].mxu1 %v520_v48  ;;  %1927 = vmatprep.mubr.f32.mxu0 %v529_v49 }
 0x238   : > { %2787 = vmatprep.mubr.f32.mxu1 %v529_v49 }
 0x23a   : > { %1928 = vmatmul.mubr.f32.gmra.mrb[16].mxu0 %v528_v50 }
 0x23b   : > { %2788 = vmatmul.mubr.f32.gmra.mrb[16].mxu1 %v528_v50  ;;  %1933 = vmatprep.mubr.f32.mxu0 %v537_v51 }
 0x23c   : > { %2793 = vmatprep.mubr.f32.mxu1 %v537_v51 }
 0x23e   : > { %1934 = vmatmul.mubr.f32.gmra.mrb[18].mxu0 %v536_v52 }
 0x23f   : > { %2794 = vmatmul.mubr.f32.gmra.mrb[18].mxu1 %v536_v52  ;;  %1939 = vmatprep.mubr.f32.mxu0 %v545_v53 }
 0x240   : > { %2799 = vmatprep.mubr.f32.mxu1 %v545_v53 }
 0x242   : > { %1940 = vmatmul.mubr.f32.gmra.mrb[20].mxu0 %v544_v54 }
 0x243   : > { %2800 = vmatmul.mubr.f32.gmra.mrb[20].mxu1 %v544_v54  ;;  %1945 = vmatprep.mubr.f32.mxu0 %v553_v55  ;;  %v370_v54 = vld [vmem:[#allocation8 + $0x60] sm:$0xff] }
 0x244   : > { %2805 = vmatprep.mubr.f32.mxu1 %v553_v55 }
 0x246   : > { %1946 = vmatmul.mubr.f32.gmra.mrb[22].mxu0 %v552_v56 }
 0x247   : > { %2806 = vmatmul.mubr.f32.gmra.mrb[22].mxu1 %v552_v56  ;;  %1951 = vmatprep.mubr.f32.mxu0 %v561_v57  ;;  %v372_v56 = vld [vmem:[#allocation8 + $0x70] sm:$0xff] }
 0x248   : > { %2811 = vmatprep.mubr.f32.mxu1 %v561_v57  ;;  %v371_v57 = vld [vmem:[#allocation8 + $0x68] sm:$0xff] }
 0x24a   : > { %1952 = vmatmul.mubr.f32.gmra.mrb[24].mxu0 %v560_v58 }
 0x24b   : > { %2812 = vmatmul.mubr.f32.gmra.mrb[24].mxu1 %v560_v58  ;;  %1957 = vmatprep.mubr.f32.mxu0 %v569_v59 }
 0x24c   : > { %2817 = vmatprep.mubr.f32.mxu1 %v569_v59  ;;  %v373_v59 = vld [vmem:[#allocation8 + $0x78] sm:$0xff] }
 0x24e   : > { %1958 = vmatmul.mubr.f32.gmra.mrb[26].mxu0 %v568_v60 }
 0x24f   : > { %2818 = vmatmul.mubr.f32.gmra.mrb[26].mxu1 %v568_v60  ;;  %1963 = vmatprep.mubr.f32.mxu0 %v577_v61 }
 0x250   : > { %2823 = vmatprep.mubr.f32.mxu1 %v577_v61 }
 0x252   : > { %1964 = vmatmul.mubr.f32.gmra.mrb[28].mxu0 %v576_v62 }
 0x253   : > { %2824 = vmatmul.mubr.f32.gmra.mrb[28].mxu1 %v576_v62  ;;  %1969 = vmatprep.mubr.f32.mxu0 %v585_v63 }
 0x254   : > { %2829 = vmatprep.mubr.f32.mxu1 %v585_v63 }
 0x256   : > { %1970 = vmatmul.mubr.f32.gmra.mrb[30].mxu0 %v584_v0 }
 0x257   : > { %2830 = vmatmul.mubr.f32.gmra.mrb[30].mxu1 %v584_v0  ;;  %1975 = vmatprep.mubr.f32.mxu0 %v593_v1 }
 0x258   : > { %2835 = vmatprep.mubr.f32.mxu1 %v593_v1 }
 0x25a   : > { %1976 = vmatmul.mubr.f32.gmra.mrb[32].mxu0 %v592_v2 }
 0x25b   : > { %2836 = vmatmul.mubr.f32.gmra.mrb[32].mxu1 %v592_v2  ;;  %1981 = vmatprep.mubr.f32.mxu0 %v601_v3  ;;  %v374_v2 = vld [vmem:[#allocation8 + $0x80] sm:$0xff] }
 0x25c   : > { %2841 = vmatprep.mubr.f32.mxu1 %v601_v3 }
 0x25e   : > { %1982 = vmatmul.mubr.f32.gmra.mrb[34].mxu0 %v600_v4 }
 0x25f   : > { %2842 = vmatmul.mubr.f32.gmra.mrb[34].mxu1 %v600_v4  ;;  %1987 = vmatprep.mubr.f32.mxu0 %v609_v5  ;;  %v376_v4 = vld [vmem:[#allocation8 + $0x90] sm:$0xff] }
 0x260   : > { %2847 = vmatprep.mubr.f32.mxu1 %v609_v5  ;;  %v375_v5 = vld [vmem:[#allocation8 + $0x88] sm:$0xff] }
 0x262   : > { %1988 = vmatmul.mubr.f32.gmra.mrb[36].mxu0 %v608_v6 }
 0x263   : > { %2848 = vmatmul.mubr.f32.gmra.mrb[36].mxu1 %v608_v6  ;;  %1993 = vmatprep.mubr.f32.mxu0 %v617_v7 }
 0x264   : > { %2853 = vmatprep.mubr.f32.mxu1 %v617_v7  ;;  %v377_v7 = vld [vmem:[#allocation8 + $0x98] sm:$0xff] }
 0x266   : > { %1994 = vmatmul.mubr.f32.gmra.mrb[38].mxu0 %v616_v8 }
 0x267   : > { %2854 = vmatmul.mubr.f32.gmra.mrb[38].mxu1 %v616_v8  ;;  %1999 = vmatprep.mubr.f32.mxu0 %v625_v9 }
 0x268   : > { %2859 = vmatprep.mubr.f32.mxu1 %v625_v9 }
 0x26a   : > { %2000 = vmatmul.mubr.f32.gmra.mrb[40].mxu0 %v624_v10 }
 0x26b   : > { %2860 = vmatmul.mubr.f32.gmra.mrb[40].mxu1 %v624_v10  ;;  %2005 = vmatprep.mubr.f32.mxu0 %v633_v11 }
 0x26c   : > { %2865 = vmatprep.mubr.f32.mxu1 %v633_v11 }
 0x26e   : > { %2006 = vmatmul.mubr.f32.gmra.mrb[42].mxu0 %v632_v12 }
 0x26f   : > { %2866 = vmatmul.mubr.f32.gmra.mrb[42].mxu1 %v632_v12  ;;  %2011 = vmatprep.mubr.f32.mxu0 %v641_v13 }
 0x270   : > { %2871 = vmatprep.mubr.f32.mxu1 %v641_v13 }
 0x272   : > { %2012 = vmatmul.mubr.f32.gmra.mrb[44].mxu0 %v640_v14 }
 0x273   : > { %2872 = vmatmul.mubr.f32.gmra.mrb[44].mxu1 %v640_v14  ;;  %2017 = vmatprep.mubr.f32.mxu0 %v649_v15  ;;  %v378_v14 = vld [vmem:[#allocation8 + $0xa0] sm:$0xff] }
 0x274   : > { %2877 = vmatprep.mubr.f32.mxu1 %v649_v15 }
 0x276   : > { %2018 = vmatmul.mubr.f32.gmra.mrb[46].mxu0 %v648_v16 }
 0x277   : > { %2878 = vmatmul.mubr.f32.gmra.mrb[46].mxu1 %v648_v16  ;;  %2023 = vmatprep.mubr.f32.mxu0 %v657_v17  ;;  %v380_v16 = vld [vmem:[#allocation8 + $0xb0] sm:$0xff] }
 0x278   : > { %2883 = vmatprep.mubr.f32.mxu1 %v657_v17  ;;  %v379_v17 = vld [vmem:[#allocation8 + $0xa8] sm:$0xff] }
 0x27a   : > { %2024 = vmatmul.mubr.f32.gmra.mrb[48].mxu0 %v656_v18 }
 0x27b   : > { %2884 = vmatmul.mubr.f32.gmra.mrb[48].mxu1 %v656_v18 }
 0x2ed   : > { %v1881_v22 = vpop.f32.mrb[0].mxu0 }
 0x2ee   : > { %v2890_v24 = vadd.f32 %v1881_v22, %v358_v19  ;;  %v2741_v25 = vpop.f32.mrb[0].mxu1  ;;  %v1883_v26 = vpop.f32.mrb[1].mxu0  ;;  %v381_v19 = vld [vmem:[#allocation8 + $0xb8] sm:$0xff] }
 0x2ef   : > { %v2892_v27 = vadd.f32 %v2741_v25, %v360_v20  ;;  %v2891_v28 = vadd.f32 %v1883_v26, %v359_v21  ;;  %v2743_v29 = vpop.f32.mrb[1].mxu1  ;;  %v382_v26 = vld [vmem:[#allocation8 + $0xc0] sm:$0xff] }
 0x2f0   : > { %2990 = vst [vmem:[#allocation8] sm:$0xff] %v2890_v24  ;;  %v2893_v31 = vadd.f32 %v2743_v29, %v361_v23  ;;  %v383_v29 = vld [vmem:[#allocation8 + $0xc8] sm:$0xff] }
 0x2f1   : > { %2992 = vst [vmem:[#allocation8 + $0x10] sm:$0xff] %v2892_v27  ;;  %2991 = vst [vmem:[#allocation8 + $0x8] sm:$0xff] %v2891_v28  ;;  %v1887_v34 = vpop.f32.mrb[2].mxu0  ;;  %v384_v28 = vld [vmem:[#allocation8 + $0xd0] sm:$0xff] }
 0x2f2   : > { %2993 = vst [vmem:[#allocation8 + $0x18] sm:$0xff] %v2893_v31  ;;  %v2894_v36 = vadd.f32 %v1887_v34, %v362_v30  ;;  %v2747_v37 = vpop.f32.mrb[2].mxu1  ;;  %v1889_v38 = vpop.f32.mrb[3].mxu0  ;;  %v385_v31 = vld [vmem:[#allocation8 + $0xd8] sm:$0xff] }
 0x2f3   : > { %v2896_v39 = vadd.f32 %v2747_v37, %v364_v32  ;;  %v2895_v40 = vadd.f32 %v1889_v38, %v363_v33  ;;  %v2749_v41 = vpop.f32.mrb[3].mxu1  ;;  %v386_v38 = vld [vmem:[#allocation8 + $0xe0] sm:$0xff] }
 0x2f4   : > { %2994 = vst [vmem:[#allocation8 + $0x20] sm:$0xff] %v2894_v36  ;;  %v2897_v43 = vadd.f32 %v2749_v41, %v365_v35  ;;  %v387_v41 = vld [vmem:[#allocation8 + $0xe8] sm:$0xff] }
 0x2f5   : > { %2996 = vst [vmem:[#allocation8 + $0x30] sm:$0xff] %v2896_v39  ;;  %2995 = vst [vmem:[#allocation8 + $0x28] sm:$0xff] %v2895_v40  ;;  %v1893_v46 = vpop.f32.mrb[4].mxu0  ;;  %v388_v40 = vld [vmem:[#allocation8 + $0xf0] sm:$0xff] }
 0x2f6   : > { %2997 = vst [vmem:[#allocation8 + $0x38] sm:$0xff] %v2897_v43  ;;  %v2898_v48 = vadd.f32 %v1893_v46, %v366_v42  ;;  %v2753_v49 = vpop.f32.mrb[4].mxu1  ;;  %v1895_v50 = vpop.f32.mrb[5].mxu0  ;;  %v389_v43 = vld [vmem:[#allocation8 + $0xf8] sm:$0xff] }
 0x2f7   : > { %v2900_v51 = vadd.f32 %v2753_v49, %v368_v44  ;;  %v2899_v52 = vadd.f32 %v1895_v50, %v367_v45  ;;  %v2755_v53 = vpop.f32.mrb[5].mxu1  ;;  %v390_v50 = vld [vmem:[#allocation8 + $0x100] sm:$0xff] }
 0x2f8   : > { %2998 = vst [vmem:[#allocation8 + $0x40] sm:$0xff] %v2898_v48  ;;  %v2901_v55 = vadd.f32 %v2755_v53, %v369_v47  ;;  %v391_v53 = vld [vmem:[#allocation8 + $0x108] sm:$0xff] }
 0x2f9   : > { %3000 = vst [vmem:[#allocation8 + $0x50] sm:$0xff] %v2900_v51  ;;  %2999 = vst [vmem:[#allocation8 + $0x48] sm:$0xff] %v2899_v52  ;;  %v1899_v58 = vpop.f32.mrb[6].mxu0  ;;  %v392_v52 = vld [vmem:[#allocation8 + $0x110] sm:$0xff] }
 0x2fa   : > { %3001 = vst [vmem:[#allocation8 + $0x58] sm:$0xff] %v2901_v55  ;;  %v2902_v60 = vadd.f32 %v1899_v58, %v370_v54  ;;  %v2759_v61 = vpop.f32.mrb[6].mxu1  ;;  %v1901_v62 = vpop.f32.mrb[7].mxu0  ;;  %v393_v55 = vld [vmem:[#allocation8 + $0x118] sm:$0xff] }
 0x2fb   : > { %v2904_v63 = vadd.f32 %v2759_v61, %v372_v56  ;;  %v2903_v0 = vadd.f32 %v1901_v62, %v371_v57  ;;  %v2761_v1 = vpop.f32.mrb[7].mxu1  ;;  %v394_v62 = vld [vmem:[#allocation8 + $0x120] sm:$0xff] }
 0x2fc   : > { %3002 = vst [vmem:[#allocation8 + $0x60] sm:$0xff] %v2902_v60  ;;  %v2905_v3 = vadd.f32 %v2761_v1, %v373_v59  ;;  %v395_v1 = vld [vmem:[#allocation8 + $0x128] sm:$0xff] }
 0x2fd   : > { %3004 = vst [vmem:[#allocation8 + $0x70] sm:$0xff] %v2904_v63  ;;  %3003 = vst [vmem:[#allocation8 + $0x68] sm:$0xff] %v2903_v0  ;;  %v1905_v6 = vpop.f32.mrb[8].mxu0  ;;  %v396_v0 = vld [vmem:[#allocation8 + $0x130] sm:$0xff] }
 0x2fe   : > { %3005 = vst [vmem:[#allocation8 + $0x78] sm:$0xff] %v2905_v3  ;;  %v2906_v8 = vadd.f32 %v1905_v6, %v374_v2  ;;  %v2765_v9 = vpop.f32.mrb[8].mxu1  ;;  %v1907_v10 = vpop.f32.mrb[9].mxu0  ;;  %v397_v3 = vld [vmem:[#allocation8 + $0x138] sm:$0xff] }
 0x2ff   : > { %v2908_v11 = vadd.f32 %v2765_v9, %v376_v4  ;;  %v2907_v12 = vadd.f32 %v1907_v10, %v375_v5  ;;  %v2767_v13 = vpop.f32.mrb[9].mxu1  ;;  %v398_v10 = vld [vmem:[#allocation8 + $0x140] sm:$0xff] }
 0x300   : > { %3006 = vst [vmem:[#allocation8 + $0x80] sm:$0xff] %v2906_v8  ;;  %v2909_v15 = vadd.f32 %v2767_v13, %v377_v7  ;;  %v399_v13 = vld [vmem:[#allocation8 + $0x148] sm:$0xff] }
 0x301   : > { %3008 = vst [vmem:[#allocation8 + $0x90] sm:$0xff] %v2908_v11  ;;  %3007 = vst [vmem:[#allocation8 + $0x88] sm:$0xff] %v2907_v12  ;;  %v1911_v18 = vpop.f32.mrb[10].mxu0  ;;  %v400_v12 = vld [vmem:[#allocation8 + $0x150] sm:$0xff] }
 0x302   : > { %3009 = vst [vmem:[#allocation8 + $0x98] sm:$0xff] %v2909_v15  ;;  %v2910_v20 = vadd.f32 %v1911_v18, %v378_v14  ;;  %v2771_v21 = vpop.f32.mrb[10].mxu1  ;;  %v1913_v22 = vpop.f32.mrb[11].mxu0  ;;  %v401_v15 = vld [vmem:[#allocation8 + $0x158] sm:$0xff] }
 0x303   : > { %v2912_v23 = vadd.f32 %v2771_v21, %v380_v16  ;;  %v2911_v24 = vadd.f32 %v1913_v22, %v379_v17  ;;  %v2773_v25 = vpop.f32.mrb[11].mxu1  ;;  %v402_v22 = vld [vmem:[#allocation8 + $0x160] sm:$0xff] }
 0x304   : > { %3010 = vst [vmem:[#allocation8 + $0xa0] sm:$0xff] %v2910_v20  ;;  %v2913_v27 = vadd.f32 %v2773_v25, %v381_v19  ;;  %v403_v25 = vld [vmem:[#allocation8 + $0x168] sm:$0xff] }
 0x305   : > { %3012 = vst [vmem:[#allocation8 + $0xb0] sm:$0xff] %v2912_v23  ;;  %3011 = vst [vmem:[#allocation8 + $0xa8] sm:$0xff] %v2911_v24  ;;  %v1917_v30 = vpop.f32.mrb[12].mxu0  ;;  %v404_v24 = vld [vmem:[#allocation8 + $0x170] sm:$0xff] }
 0x306   : > { %3013 = vst [vmem:[#allocation8 + $0xb8] sm:$0xff] %v2913_v27  ;;  %v2914_v32 = vadd.f32 %v1917_v30, %v382_v26  ;;  %v2777_v33 = vpop.f32.mrb[12].mxu1  ;;  %v1919_v34 = vpop.f32.mrb[13].mxu0  ;;  %v405_v27 = vld [vmem:[#allocation8 + $0x178] sm:$0xff] }
 0x307   : > { %v2916_v35 = vadd.f32 %v2777_v33, %v384_v28  ;;  %v2915_v36 = vadd.f32 %v1919_v34, %v383_v29  ;;  %v2779_v37 = vpop.f32.mrb[13].mxu1  ;;  %v406_v34 = vld [vmem:[#allocation8 + $0x180] sm:$0xff] }
 0x308   : > { %3014 = vst [vmem:[#allocation8 + $0xc0] sm:$0xff] %v2914_v32  ;;  %v2917_v39 = vadd.f32 %v2779_v37, %v385_v31  ;;  %v407_v37 = vld [vmem:[#allocation8 + $0x188] sm:$0xff] }
 0x309   : > { %3016 = vst [vmem:[#allocation8 + $0xd0] sm:$0xff] %v2916_v35  ;;  %3015 = vst [vmem:[#allocation8 + $0xc8] sm:$0xff] %v2915_v36  ;;  %v1923_v42 = vpop.f32.mrb[14].mxu0  ;;  %v408_v36 = vld [vmem:[#allocation8 + $0x190] sm:$0xff] }
 0x30a   : > { %3017 = vst [vmem:[#allocation8 + $0xd8] sm:$0xff] %v2917_v39  ;;  %v2918_v44 = vadd.f32 %v1923_v42, %v386_v38  ;;  %v2783_v45 = vpop.f32.mrb[14].mxu1  ;;  %v1925_v46 = vpop.f32.mrb[15].mxu0  ;;  %v409_v39 = vld [vmem:[#allocation8 + $0x198] sm:$0xff] }
 0x30b   : > { %v2920_v47 = vadd.f32 %v2783_v45, %v388_v40  ;;  %v2919_v48 = vadd.f32 %v1925_v46, %v387_v41  ;;  %v2785_v49 = vpop.f32.mrb[15].mxu1  ;;  %v410_v46 = vld [vmem:[#allocation8 + $0x1a0] sm:$0xff] }
 0x30c   : > { %3018 = vst [vmem:[#allocation8 + $0xe0] sm:$0xff] %v2918_v44  ;;  %v2921_v51 = vadd.f32 %v2785_v49, %v389_v43  ;;  %v411_v49 = vld [vmem:[#allocation8 + $0x1a8] sm:$0xff] }
 0x30d   : > { %3020 = vst [vmem:[#allocation8 + $0xf0] sm:$0xff] %v2920_v47  ;;  %3019 = vst [vmem:[#allocation8 + $0xe8] sm:$0xff] %v2919_v48  ;;  %v1929_v54 = vpop.f32.mrb[16].mxu0  ;;  %v412_v48 = vld [vmem:[#allocation8 + $0x1b0] sm:$0xff] }
 0x30e   : > { %3021 = vst [vmem:[#allocation8 + $0xf8] sm:$0xff] %v2921_v51  ;;  %v2922_v56 = vadd.f32 %v1929_v54, %v390_v50  ;;  %v2789_v57 = vpop.f32.mrb[16].mxu1  ;;  %v1931_v58 = vpop.f32.mrb[17].mxu0  ;;  %v413_v51 = vld [vmem:[#allocation8 + $0x1b8] sm:$0xff] }
 0x30f   : > { %v2924_v59 = vadd.f32 %v2789_v57, %v392_v52  ;;  %v2923_v60 = vadd.f32 %v1931_v58, %v391_v53  ;;  %v2791_v61 = vpop.f32.mrb[17].mxu1  ;;  %v414_v58 = vld [vmem:[#allocation8 + $0x1c0] sm:$0xff] }
 0x310   : > { %3022 = vst [vmem:[#allocation8 + $0x100] sm:$0xff] %v2922_v56  ;;  %v2925_v63 = vadd.f32 %v2791_v61, %v393_v55  ;;  %v415_v61 = vld [vmem:[#allocation8 + $0x1c8] sm:$0xff] }
 0x311   : > { %3024 = vst [vmem:[#allocation8 + $0x110] sm:$0xff] %v2924_v59  ;;  %3023 = vst [vmem:[#allocation8 + $0x108] sm:$0xff] %v2923_v60  ;;  %v1935_v2 = vpop.f32.mrb[18].mxu0  ;;  %v416_v60 = vld [vmem:[#allocation8 + $0x1d0] sm:$0xff] }
 0x312   : > { %3025 = vst [vmem:[#allocation8 + $0x118] sm:$0xff] %v2925_v63  ;;  %v2926_v4 = vadd.f32 %v1935_v2, %v394_v62  ;;  %v2795_v5 = vpop.f32.mrb[18].mxu1  ;;  %v1937_v6 = vpop.f32.mrb[19].mxu0  ;;  %v417_v63 = vld [vmem:[#allocation8 + $0x1d8] sm:$0xff] }
 0x313   : > { %v2928_v7 = vadd.f32 %v2795_v5, %v396_v0  ;;  %v2927_v8 = vadd.f32 %v1937_v6, %v395_v1  ;;  %v2797_v9 = vpop.f32.mrb[19].mxu1  ;;  %v418_v6 = vld [vmem:[#allocation8 + $0x1e0] sm:$0xff] }
 0x314   : > { %3026 = vst [vmem:[#allocation8 + $0x120] sm:$0xff] %v2926_v4  ;;  %v2929_v11 = vadd.f32 %v2797_v9, %v397_v3  ;;  %v419_v9 = vld [vmem:[#allocation8 + $0x1e8] sm:$0xff] }
 0x315   : > { %3028 = vst [vmem:[#allocation8 + $0x130] sm:$0xff] %v2928_v7  ;;  %3027 = vst [vmem:[#allocation8 + $0x128] sm:$0xff] %v2927_v8  ;;  %v1941_v14 = vpop.f32.mrb[20].mxu0  ;;  %v420_v8 = vld [vmem:[#allocation8 + $0x1f0] sm:$0xff] }
 0x316   : > { %3029 = vst [vmem:[#allocation8 + $0x138] sm:$0xff] %v2929_v11  ;;  %v2930_v16 = vadd.f32 %v1941_v14, %v398_v10  ;;  %v2801_v17 = vpop.f32.mrb[20].mxu1  ;;  %v1943_v18 = vpop.f32.mrb[21].mxu0  ;;  %v421_v11 = vld [vmem:[#allocation8 + $0x1f8] sm:$0xff] }
 0x317   : > { %v2932_v19 = vadd.f32 %v2801_v17, %v400_v12  ;;  %v2931_v20 = vadd.f32 %v1943_v18, %v399_v13  ;;  %v2803_v21 = vpop.f32.mrb[21].mxu1  ;;  %v422_v18 = vld [vmem:[#allocation8 + $0x200] sm:$0xff] }
 0x318   : > { %3030 = vst [vmem:[#allocation8 + $0x140] sm:$0xff] %v2930_v16  ;;  %v2933_v23 = vadd.f32 %v2803_v21, %v401_v15  ;;  %v423_v21 = vld [vmem:[#allocation8 + $0x208] sm:$0xff] }
 0x319   : > { %3032 = vst [vmem:[#allocation8 + $0x150] sm:$0xff] %v2932_v19  ;;  %3031 = vst [vmem:[#allocation8 + $0x148] sm:$0xff] %v2931_v20  ;;  %v1947_v26 = vpop.f32.mrb[22].mxu0  ;;  %v424_v20 = vld [vmem:[#allocation8 + $0x210] sm:$0xff] }
 0x31a   : > { %3033 = vst [vmem:[#allocation8 + $0x158] sm:$0xff] %v2933_v23  ;;  %v2934_v28 = vadd.f32 %v1947_v26, %v402_v22  ;;  %v2807_v29 = vpop.f32.mrb[22].mxu1  ;;  %v1949_v30 = vpop.f32.mrb[23].mxu0  ;;  %v425_v23 = vld [vmem:[#allocation8 + $0x218] sm:$0xff] }
 0x31b   : > { %v2936_v31 = vadd.f32 %v2807_v29, %v404_v24  ;;  %v2935_v32 = vadd.f32 %v1949_v30, %v403_v25  ;;  %v2809_v33 = vpop.f32.mrb[23].mxu1  ;;  %v426_v30 = vld [vmem:[#allocation8 + $0x220] sm:$0xff] }
 0x31c   : > { %3034 = vst [vmem:[#allocation8 + $0x160] sm:$0xff] %v2934_v28  ;;  %v2937_v35 = vadd.f32 %v2809_v33, %v405_v27  ;;  %v427_v33 = vld [vmem:[#allocation8 + $0x228] sm:$0xff] }
 0x31d   : > { %3036 = vst [vmem:[#allocation8 + $0x170] sm:$0xff] %v2936_v31  ;;  %3035 = vst [vmem:[#allocation8 + $0x168] sm:$0xff] %v2935_v32  ;;  %v1953_v38 = vpop.f32.mrb[24].mxu0  ;;  %v428_v32 = vld [vmem:[#allocation8 + $0x230] sm:$0xff] }
 0x31e   : > { %3037 = vst [vmem:[#allocation8 + $0x178] sm:$0xff] %v2937_v35  ;;  %v2938_v40 = vadd.f32 %v1953_v38, %v406_v34  ;;  %v2813_v41 = vpop.f32.mrb[24].mxu1  ;;  %v1955_v42 = vpop.f32.mrb[25].mxu0  ;;  %v429_v35 = vld [vmem:[#allocation8 + $0x238] sm:$0xff] }
 0x31f   : > { %v2940_v43 = vadd.f32 %v2813_v41, %v408_v36  ;;  %v2939_v44 = vadd.f32 %v1955_v42, %v407_v37  ;;  %v2815_v45 = vpop.f32.mrb[25].mxu1  ;;  %v430_v42 = vld [vmem:[#allocation8 + $0x240] sm:$0xff] }
 0x320   : > { %3038 = vst [vmem:[#allocation8 + $0x180] sm:$0xff] %v2938_v40  ;;  %v2941_v47 = vadd.f32 %v2815_v45, %v409_v39  ;;  %v431_v45 = vld [vmem:[#allocation8 + $0x248] sm:$0xff] }
 0x321   : > { %3040 = vst [vmem:[#allocation8 + $0x190] sm:$0xff] %v2940_v43  ;;  %3039 = vst [vmem:[#allocation8 + $0x188] sm:$0xff] %v2939_v44  ;;  %v1959_v50 = vpop.f32.mrb[26].mxu0  ;;  %v432_v44 = vld [vmem:[#allocation8 + $0x250] sm:$0xff] }
 0x322   : > { %3041 = vst [vmem:[#allocation8 + $0x198] sm:$0xff] %v2941_v47  ;;  %v2942_v52 = vadd.f32 %v1959_v50, %v410_v46  ;;  %v2819_v53 = vpop.f32.mrb[26].mxu1  ;;  %v1961_v54 = vpop.f32.mrb[27].mxu0  ;;  %v433_v47 = vld [vmem:[#allocation8 + $0x258] sm:$0xff] }
 0x323   : > { %v2944_v55 = vadd.f32 %v2819_v53, %v412_v48  ;;  %v2943_v56 = vadd.f32 %v1961_v54, %v411_v49  ;;  %v2821_v57 = vpop.f32.mrb[27].mxu1  ;;  %v434_v54 = vld [vmem:[#allocation8 + $0x260] sm:$0xff] }
 0x324   : > { %3042 = vst [vmem:[#allocation8 + $0x1a0] sm:$0xff] %v2942_v52  ;;  %v2945_v59 = vadd.f32 %v2821_v57, %v413_v51  ;;  %v435_v57 = vld [vmem:[#allocation8 + $0x268] sm:$0xff] }
 0x325   : > { %3044 = vst [vmem:[#allocation8 + $0x1b0] sm:$0xff] %v2944_v55  ;;  %3043 = vst [vmem:[#allocation8 + $0x1a8] sm:$0xff] %v2943_v56  ;;  %v1965_v62 = vpop.f32.mrb[28].mxu0  ;;  %v436_v56 = vld [vmem:[#allocation8 + $0x270] sm:$0xff] }
 0x326   : > { %3045 = vst [vmem:[#allocation8 + $0x1b8] sm:$0xff] %v2945_v59  ;;  %v2946_v0 = vadd.f32 %v1965_v62, %v414_v58  ;;  %v2825_v1 = vpop.f32.mrb[28].mxu1  ;;  %v1967_v2 = vpop.f32.mrb[29].mxu0  ;;  %v437_v59 = vld [vmem:[#allocation8 + $0x278] sm:$0xff] }
 0x327   : > { %v2948_v3 = vadd.f32 %v2825_v1, %v416_v60  ;;  %v2947_v4 = vadd.f32 %v1967_v2, %v415_v61  ;;  %v2827_v5 = vpop.f32.mrb[29].mxu1  ;;  %v438_v2 = vld [vmem:[#allocation8 + $0x280] sm:$0xff] }
 0x328   : > { %3046 = vst [vmem:[#allocation8 + $0x1c0] sm:$0xff] %v2946_v0  ;;  %v2949_v7 = vadd.f32 %v2827_v5, %v417_v63  ;;  %v439_v5 = vld [vmem:[#allocation8 + $0x288] sm:$0xff] }
 0x329   : > { %3048 = vst [vmem:[#allocation8 + $0x1d0] sm:$0xff] %v2948_v3  ;;  %3047 = vst [vmem:[#allocation8 + $0x1c8] sm:$0xff] %v2947_v4  ;;  %v1971_v10 = vpop.f32.mrb[30].mxu0  ;;  %v440_v4 = vld [vmem:[#allocation8 + $0x290] sm:$0xff] }
 0x32a   : > { %3049 = vst [vmem:[#allocation8 + $0x1d8] sm:$0xff] %v2949_v7  ;;  %v2950_v12 = vadd.f32 %v1971_v10, %v418_v6  ;;  %v2831_v13 = vpop.f32.mrb[30].mxu1  ;;  %v1973_v14 = vpop.f32.mrb[31].mxu0  ;;  %v441_v7 = vld [vmem:[#allocation8 + $0x298] sm:$0xff] }
 0x32b   : > { %v2952_v15 = vadd.f32 %v2831_v13, %v420_v8  ;;  %v2951_v16 = vadd.f32 %v1973_v14, %v419_v9  ;;  %v2833_v17 = vpop.f32.mrb[31].mxu1  ;;  %v442_v14 = vld [vmem:[#allocation8 + $0x2a0] sm:$0xff] }
 0x32c   : > { %3050 = vst [vmem:[#allocation8 + $0x1e0] sm:$0xff] %v2950_v12  ;;  %v2953_v19 = vadd.f32 %v2833_v17, %v421_v11  ;;  %v443_v17 = vld [vmem:[#allocation8 + $0x2a8] sm:$0xff] }
 0x32d   : > { %3052 = vst [vmem:[#allocation8 + $0x1f0] sm:$0xff] %v2952_v15  ;;  %3051 = vst [vmem:[#allocation8 + $0x1e8] sm:$0xff] %v2951_v16  ;;  %v1977_v22 = vpop.f32.mrb[32].mxu0  ;;  %v444_v16 = vld [vmem:[#allocation8 + $0x2b0] sm:$0xff] }
 0x32e   : > { %3053 = vst [vmem:[#allocation8 + $0x1f8] sm:$0xff] %v2953_v19  ;;  %v2954_v24 = vadd.f32 %v1977_v22, %v422_v18  ;;  %v2837_v25 = vpop.f32.mrb[32].mxu1  ;;  %v1979_v26 = vpop.f32.mrb[33].mxu0  ;;  %v445_v19 = vld [vmem:[#allocation8 + $0x2b8] sm:$0xff] }
 0x32f   : > { %v2956_v27 = vadd.f32 %v2837_v25, %v424_v20  ;;  %v2955_v28 = vadd.f32 %v1979_v26, %v423_v21  ;;  %v2839_v29 = vpop.f32.mrb[33].mxu1  ;;  %v446_v26 = vld [vmem:[#allocation8 + $0x2c0] sm:$0xff] }
 0x330   : > { %3054 = vst [vmem:[#allocation8 + $0x200] sm:$0xff] %v2954_v24  ;;  %v2957_v31 = vadd.f32 %v2839_v29, %v425_v23  ;;  %v447_v29 = vld [vmem:[#allocation8 + $0x2c8] sm:$0xff] }
 0x331   : > { %3056 = vst [vmem:[#allocation8 + $0x210] sm:$0xff] %v2956_v27  ;;  %3055 = vst [vmem:[#allocation8 + $0x208] sm:$0xff] %v2955_v28  ;;  %v1983_v34 = vpop.f32.mrb[34].mxu0  ;;  %v448_v28 = vld [vmem:[#allocation8 + $0x2d0] sm:$0xff] }
 0x332   : > { %3057 = vst [vmem:[#allocation8 + $0x218] sm:$0xff] %v2957_v31  ;;  %v2958_v36 = vadd.f32 %v1983_v34, %v426_v30  ;;  %v2843_v37 = vpop.f32.mrb[34].mxu1  ;;  %v1985_v38 = vpop.f32.mrb[35].mxu0  ;;  %v449_v31 = vld [vmem:[#allocation8 + $0x2d8] sm:$0xff] }
 0x333   : > { %v2960_v39 = vadd.f32 %v2843_v37, %v428_v32  ;;  %v2959_v40 = vadd.f32 %v1985_v38, %v427_v33  ;;  %v2845_v41 = vpop.f32.mrb[35].mxu1  ;;  %v450_v38 = vld [vmem:[#allocation8 + $0x2e0] sm:$0xff] }
 0x334   : > { %3058 = vst [vmem:[#allocation8 + $0x220] sm:$0xff] %v2958_v36  ;;  %v2961_v43 = vadd.f32 %v2845_v41, %v429_v35  ;;  %v451_v41 = vld [vmem:[#allocation8 + $0x2e8] sm:$0xff] }
 0x335   : > { %3060 = vst [vmem:[#allocation8 + $0x230] sm:$0xff] %v2960_v39  ;;  %3059 = vst [vmem:[#allocation8 + $0x228] sm:$0xff] %v2959_v40  ;;  %v1989_v46 = vpop.f32.mrb[36].mxu0  ;;  %v452_v40 = vld [vmem:[#allocation8 + $0x2f0] sm:$0xff] }
 0x336   : > { %3061 = vst [vmem:[#allocation8 + $0x238] sm:$0xff] %v2961_v43  ;;  %v2962_v48 = vadd.f32 %v1989_v46, %v430_v42  ;;  %v2849_v49 = vpop.f32.mrb[36].mxu1  ;;  %v1991_v50 = vpop.f32.mrb[37].mxu0  ;;  %v453_v43 = vld [vmem:[#allocation8 + $0x2f8] sm:$0xff] }
 0x337   : > { %v2964_v51 = vadd.f32 %v2849_v49, %v432_v44  ;;  %v2963_v52 = vadd.f32 %v1991_v50, %v431_v45  ;;  %v2851_v53 = vpop.f32.mrb[37].mxu1  ;;  %v454_v50 = vld [vmem:[#allocation8 + $0x300] sm:$0xf] }
 0x338   : > { %3062 = vst [vmem:[#allocation8 + $0x240] sm:$0xff] %v2962_v48  ;;  %v2965_v55 = vadd.f32 %v2851_v53, %v433_v47  ;;  %v455_v53 = vld [vmem:[#allocation8 + $0x308] sm:$0xf] }
 0x339   : > { %3064 = vst [vmem:[#allocation8 + $0x250] sm:$0xff] %v2964_v51  ;;  %3063 = vst [vmem:[#allocation8 + $0x248] sm:$0xff] %v2963_v52  ;;  %v1995_v58 = vpop.f32.mrb[38].mxu0  ;;  %v456_v52 = vld [vmem:[#allocation8 + $0x310] sm:$0xf] }
 0x33a   : > { %3065 = vst [vmem:[#allocation8 + $0x258] sm:$0xff] %v2965_v55  ;;  %v2966_v60 = vadd.f32 %v1995_v58, %v434_v54  ;;  %v2855_v61 = vpop.f32.mrb[38].mxu1  ;;  %v1997_v62 = vpop.f32.mrb[39].mxu0  ;;  %v457_v55 = vld [vmem:[#allocation8 + $0x318] sm:$0xf] }
 0x33b   : > { %v2968_v63 = vadd.f32 %v2855_v61, %v436_v56  ;;  %v2967_v0 = vadd.f32 %v1997_v62, %v435_v57  ;;  %v2857_v1 = vpop.f32.mrb[39].mxu1 }
 0x33c   : > { %3066 = vst [vmem:[#allocation8 + $0x260] sm:$0xff] %v2966_v60  ;;  %v2969_v3 = vadd.f32 %v2857_v1, %v437_v59 }
 0x33d   : > { %3068 = vst [vmem:[#allocation8 + $0x270] sm:$0xff] %v2968_v63  ;;  %3067 = vst [vmem:[#allocation8 + $0x268] sm:$0xff] %v2967_v0  ;;  %v2001_v6 = vpop.f32.mrb[40].mxu0 }
 0x33e   : > { %3069 = vst [vmem:[#allocation8 + $0x278] sm:$0xff] %v2969_v3  ;;  %v2970_v8 = vadd.f32 %v2001_v6, %v438_v2  ;;  %v2861_v9 = vpop.f32.mrb[40].mxu1  ;;  %v2003_v10 = vpop.f32.mrb[41].mxu0 }
 0x33f   : > { %v2972_v11 = vadd.f32 %v2861_v9, %v440_v4  ;;  %v2971_v12 = vadd.f32 %v2003_v10, %v439_v5  ;;  %v2863_v13 = vpop.f32.mrb[41].mxu1 }
 0x340   : > { %3070 = vst [vmem:[#allocation8 + $0x280] sm:$0xff] %v2970_v8  ;;  %v2973_v15 = vadd.f32 %v2863_v13, %v441_v7 }
 0x341   : > { %3072 = vst [vmem:[#allocation8 + $0x290] sm:$0xff] %v2972_v11  ;;  %3071 = vst [vmem:[#allocation8 + $0x288] sm:$0xff] %v2971_v12  ;;  %v2007_v18 = vpop.f32.mrb[42].mxu0 }
 0x342   : > { %3073 = vst [vmem:[#allocation8 + $0x298] sm:$0xff] %v2973_v15  ;;  %v2974_v20 = vadd.f32 %v2007_v18, %v442_v14  ;;  %v2867_v21 = vpop.f32.mrb[42].mxu1  ;;  %v2009_v22 = vpop.f32.mrb[43].mxu0 }
 0x343   : > { %v2976_v23 = vadd.f32 %v2867_v21, %v444_v16  ;;  %v2975_v24 = vadd.f32 %v2009_v22, %v443_v17  ;;  %v2869_v25 = vpop.f32.mrb[43].mxu1 }
 0x344   : > { %3074 = vst [vmem:[#allocation8 + $0x2a0] sm:$0xff] %v2974_v20  ;;  %v2977_v27 = vadd.f32 %v2869_v25, %v445_v19 }
 0x345   : > { %3076 = vst [vmem:[#allocation8 + $0x2b0] sm:$0xff] %v2976_v23  ;;  %3075 = vst [vmem:[#allocation8 + $0x2a8] sm:$0xff] %v2975_v24  ;;  %v2013_v30 = vpop.f32.mrb[44].mxu0 }
 0x346   : > { %3077 = vst [vmem:[#allocation8 + $0x2b8] sm:$0xff] %v2977_v27  ;;  %v2978_v32 = vadd.f32 %v2013_v30, %v446_v26  ;;  %v2873_v33 = vpop.f32.mrb[44].mxu1  ;;  %v2015_v34 = vpop.f32.mrb[45].mxu0 }
 0x347   : > { %v2980_v35 = vadd.f32 %v2873_v33, %v448_v28  ;;  %v2979_v36 = vadd.f32 %v2015_v34, %v447_v29  ;;  %v2875_v37 = vpop.f32.mrb[45].mxu1 }
 0x348   : > { %3078 = vst [vmem:[#allocation8 + $0x2c0] sm:$0xff] %v2978_v32  ;;  %v2981_v39 = vadd.f32 %v2875_v37, %v449_v31 }
 0x349   : > { %3080 = vst [vmem:[#allocation8 + $0x2d0] sm:$0xff] %v2980_v35  ;;  %3079 = vst [vmem:[#allocation8 + $0x2c8] sm:$0xff] %v2979_v36  ;;  %v2019_v42 = vpop.f32.mrb[46].mxu0 }
 0x34a   : > { %3081 = vst [vmem:[#allocation8 + $0x2d8] sm:$0xff] %v2981_v39  ;;  %v2982_v44 = vadd.f32 %v2019_v42, %v450_v38  ;;  %v2879_v45 = vpop.f32.mrb[46].mxu1  ;;  %v2021_v46 = vpop.f32.mrb[47].mxu0 }
 0x34b   : > { %v2984_v47 = vadd.f32 %v2879_v45, %v452_v40  ;;  %v2983_v48 = vadd.f32 %v2021_v46, %v451_v41  ;;  %v2881_v49 = vpop.f32.mrb[47].mxu1 }
 0x34c   : > { %3082 = vst [vmem:[#allocation8 + $0x2e0] sm:$0xff] %v2982_v44  ;;  %v2985_v51 = vadd.f32 %v2881_v49, %v453_v43 }
 0x34d   : > { %3084 = vst [vmem:[#allocation8 + $0x2f0] sm:$0xff] %v2984_v47  ;;  %3083 = vst [vmem:[#allocation8 + $0x2e8] sm:$0xff] %v2983_v48  ;;  %v2025_v54 = vpop.f32.mrb[48].mxu0 }
 0x34e   : > { %3085 = vst [vmem:[#allocation8 + $0x2f8] sm:$0xff] %v2985_v51  ;;  %v2986_v56 = vadd.f32 %v2025_v54, %v454_v50  ;;  %v2885_v57 = vpop.f32.mrb[48].mxu1  ;;  %v2027_v58 = vpop.f32.mrb[49].mxu0 }
 0x34f   : > { %v2988_v59 = vadd.f32 %v2885_v57, %v456_v52  ;;  %v2987_v60 = vadd.f32 %v2027_v58, %v455_v53  ;;  %v2887_v61 = vpop.f32.mrb[49].mxu1 }
 0x350   : > { %3086 = vst [vmem:[#allocation8 + $0x300] sm:$0xf] %v2986_v56  ;;  %v2989_v62 = vadd.f32 %v2887_v61, %v457_v55 }
 0x351   : > { %3088 = vst [vmem:[#allocation8 + $0x310] sm:$0xf] %v2988_v59  ;;  %3087 = vst [vmem:[#allocation8 + $0x308] sm:$0xf] %v2987_v60 }
 0x352   : > { %3089 = vst [vmem:[#allocation8 + $0x318] sm:$0xf] %v2989_v62 }
 0x353   : > { %4186 = shalt.err (!%p4183_p6)
}
 0x354   : > { %s4187_s24 = scalar_lea.hbm %s5264_s3, 12800 }
 0x355   : > { %p4188_p4 = scmp.ne.s32.totalorder %s5264_s3, %s4187_s24  ;;  %p4193_p8 = scmp.lt.u32.totalorder %s4187_s24, %s5264_s3 }
 0x357   : > { %p4189_p9 = pnand %p4188_p4, %p4042_p12 }
 0x359   : > { %p4190_p3 = pneg %p4189_p9 }
 0x35b   : > { %p4195_p7 = pnand %p4193_p8, %p4190_p3 }
 0x35d   : > { %4198 = shalt.err (!%p4195_p7)
}
 0x35e   : > { %s4256_s19 = smov 512   ;;  %s4257_s21 = smov 32  }
 0x35f   : > { %4025 = dma.vmem_to_hbm [thread:$0]  (%p4042_p12), %s3097_s23, 12800, %s5264_s3, [#allocation4], %s4256_s19, %s4256_s19, %s4257_s21  }
 0x360   : > { %4228 = dma.done.wait (%p4042_p12), [#allocation4], 12800  }
 0x361   : > { %4230 = vsyncadd (%p4042_p12), [#allocation4], 4294954496 }
 0x362 PF: > { %p17_p11 = scmp.ge.s32.totalorder %s4300_s17, 4   ;;  %s5280_s12 = smov %s4237_s13 }
 0x363   : > { %s5281_s13 = smov %s4241_s14  ;;  %s5282_s14 = smov %s4310_s20 }
 0x364   : > { %s5283_s15 = smov %s4300_s17  ;;  %19 = sbr.rel (!%p17_p11) target bundleno = 6 (0x6), region = 90 }
 0x36b   :  { %3112 = vsyncpa [#allocation3], 1 }
 0x36c   :  { %3114 = vsyncpa [#allocation3 + $0x1], 1 }
 0x36d   :  { %3115 = vsyncpa [#allocation6], 1 }
 0x36e   :  { %3117 = vsyncpa [#allocation6 + $0x1], 1 }
 0x36f   :  { %3118 = vsyncpa [#allocation4], 1 }
 0x370   :  { %3120 = vsyncpa [#allocation4 + $0x1], 1 }

</bundles_post_ra>
